<compile_context>
chip_gen: v5e
topology: v5e:2x2
jax: 0.10.0
libtpu: 0.0.40
codegen_flags: <defaults>
</compile_context>

<pallas_src>
import jax
import jax.numpy as jnp
from jax.experimental import pallas as pl
from jax.experimental.pallas import tpu as pltpu


def attention_pool_kernel(x_ref, pos0_ref, posx_ref, segch_ref, seghc_ref,
                          wq_ref, bq_ref, wk_ref, bk_ref, wv_ref, bv_ref,
                          wc_ref, bc_ref, out_ref):
    # x_ref:    (B, HW, C) tokens of this batch block (bf16)
    # pos0_ref: (1, C)     positional embedding of the mean/query token (bf16)
    # posx_ref: (HW, C)    positional embedding of the grid tokens (bf16)
    # segch_ref:(C, H)     0/1 head-segment matrix, channels -> heads (bf16)
    # seghc_ref:(H, C)     0/1 head-segment matrix, heads -> channels (bf16)
    # wq/wk/wv: (C, C)     projections (in, out), bf16; biases (1, C) f32
    # wc_ref:   (C, OD)    output projection bf16; bc_ref (1, OD) f32
    # out_ref:  (B, OD)    pooled output rows (f32)
    B, HW, C = x_ref.shape
    num_heads = segch_ref.shape[1]
    head_dim = C // num_heads
    scale = head_dim ** -0.5
    f32 = jnp.float32

    x = x_ref[...]                                                  # (B, HW, C) bf16
    bf = x.dtype

    # Query token per batch element = mean of its HW tokens (f32 acc) + pos[0].
    mean_tok = jnp.mean(x.astype(f32), axis=1)                      # (B, C) f32
    q_tok = (mean_tok + pos0_ref[...].astype(f32)).astype(bf)       # (B, C) bf16

    # Grid tokens + positional embedding, flattened so the K/V projections see
    # M = B*HW rows (fills the MXU M dimension).
    tok = (x + posx_ref[...]).reshape(B * HW, C)                    # (B*HW, C) bf16

    # K / V projections of the grid tokens (bf16 x bf16, f32 accumulation).
    # When C % 128 == 0 these can be fused into a single (C, 2C) matmul.
    k_x = jnp.dot(tok, wk_ref[...], preferred_element_type=f32) + bk_ref[...]
    v_x = jnp.dot(tok, wv_ref[...], preferred_element_type=f32) + bv_ref[...]
    k_x = k_x.reshape(B, HW, C)                                     # (B, HW, C) f32
    v_x = v_x.reshape(B, HW, C)                                     # (B, HW, C) f32

    # Projections of the B query tokens: their Q, plus their own K/V which act
    # as key/value #0 (softmax folds them in as an extra term below).
    q = jnp.dot(q_tok, wq_ref[...], preferred_element_type=f32) + bq_ref[...]
    q = q * scale                                                   # (B, C) f32
    k_m = jnp.dot(q_tok, wk_ref[...], preferred_element_type=f32) + bk_ref[...]
    v_m = jnp.dot(q_tok, wv_ref[...], preferred_element_type=f32) + bv_ref[...]

    # Single-query multi-head scores via the precomputed head-segment matrix:
    #   s[b, l, h] = sum_c (k[b,l,c] * q[b,c]) * seg_c2h[c, h]
    kq = (k_x * q[:, None, :]).astype(bf).reshape(B * HW, C)
    s_x = jnp.dot(kq, segch_ref[...],
                  preferred_element_type=f32).reshape(B, HW, num_heads)
    s_m = jnp.dot((k_m * q).astype(bf), segch_ref[...],
                  preferred_element_type=f32)                       # (B, H)

    # Softmax over the HW + 1 keys (mean token handled as the extra key).
    m = jnp.maximum(jnp.max(s_x, axis=1), s_m)                      # (B, H)
    p_x = jnp.exp(s_x - m[:, None, :])                              # (B, HW, H)
    p_m = jnp.exp(s_m - m)                                          # (B, H)
    inv = pl.reciprocal(jnp.sum(p_x, axis=1) + p_m, approx=True)    # (B, H)

    # Expand per-head probabilities back to channel width, combine with V.
    p_x_c = jnp.dot((p_x * inv[:, None, :]).astype(bf).reshape(B * HW, num_heads),
                    seghc_ref[...],
                    preferred_element_type=f32).reshape(B, HW, C)
    p_m_c = jnp.dot((p_m * inv).astype(bf), seghc_ref[...],
                    preferred_element_type=f32)                     # (B, C)
    attn = jnp.sum(p_x_c * v_x, axis=1) + p_m_c * v_m               # (B, C) f32

    # Output projection.
    out = jnp.dot(attn.astype(bf), wc_ref[...],
                  preferred_element_type=f32) + bc_ref[...]         # (B, OD)
    out_ref[...] = out.astype(out_ref.dtype)


def _const_spec(shape):
    # Constant-index-map operand: fetched once; single-buffered because it
    # never changes across grid steps (double-buffering it is pure VMEM waste).
    return pl.BlockSpec(shape, lambda b: (0,) * len(shape),
                        pipeline_mode=pl.Buffered(1))


def prepare_params(params, num_heads, compute_dtype=jnp.bfloat16):
    """One-time parameter prep: bf16 casts + head-segment matrices.

    Do this at parameter-load time, NOT per forward call, so the per-call path
    never re-reads/re-writes the weights through XLA.
    """
    C = params["wq"].shape[0]
    assert C % num_heads == 0
    head_dim = C // num_heads
    # 0/1 head-segment matrices (exact in bf16): reduce C -> heads and expand
    # heads -> C as plain MXU matmuls inside the kernel (no per-head slicing).
    seg_c2h = (jnp.arange(C)[:, None] // head_dim
               == jnp.arange(num_heads)[None, :]).astype(compute_dtype)  # (C, H)
    pos = params["pos"].astype(compute_dtype)
    return {
        "pos0": pos[:1],
        "posx": pos[1:],
        "seg_c2h": seg_c2h,
        "seg_h2c": jnp.transpose(seg_c2h),
        "wq": params["wq"].astype(compute_dtype),
        "wk": params["wk"].astype(compute_dtype),
        "wv": params["wv"].astype(compute_dtype),
        "wc": params["wc"].astype(compute_dtype),
        "bq": params["bq"].astype(jnp.float32),
        "bk": params["bk"].astype(jnp.float32),
        "bv": params["bv"].astype(jnp.float32),
        "bc": params["bc"].astype(jnp.float32),
    }


def attention_pool2d(x_nchw, prep, num_heads, *, block_b=None):
    N, C, H, W = x_nchw.shape
    HW = H * W
    OD = prep["wc"].shape[1]
    assert C % num_heads == 0
    compute_dtype = prep["wq"].dtype

    # Glue: NCHW -> (N, HW, C) token layout; matmul operands in bf16
    # (accumulation stays f32 inside the kernel).
    x_tok = jnp.transpose(x_nchw.reshape(N, C, HW), (0, 2, 1)).astype(compute_dtype)

    # Batch-block size: aim for >= 256 MXU rows per step and full-sublane
    # (>= 8 row) output stores; pad the batch if it does not divide evenly.
    if block_b is None:
        block_b = min(N, max(8, pl.cdiv(256, HW)))
    n_pad = pl.cdiv(N, block_b) * block_b
    if n_pad != N:
        x_tok = jnp.pad(x_tok, ((0, n_pad - N), (0, 0), (0, 0)))
    grid = (n_pad // block_b,)

    out = pl.pallas_call(
        attention_pool_kernel,
        out_shape=jax.ShapeDtypeStruct((n_pad, OD), jnp.float32),
        grid_spec=pltpu.PrefetchScalarGridSpec(
            num_scalar_prefetch=0,
            grid=grid,
            in_specs=[
                pl.BlockSpec((block_b, HW, C), lambda b: (b, 0, 0)),  # x tokens
                _const_spec((1, C)),                                  # pos[0]
                _const_spec((HW, C)),                                 # pos[1:]
                _const_spec((C, num_heads)),                          # seg C->H
                _const_spec((num_heads, C)),                          # seg H->C
                _const_spec((C, C)),                                  # wq
                _const_spec((1, C)),                                  # bq
                _const_spec((C, C)),                                  # wk
                _const_spec((1, C)),                                  # bk
                _const_spec((C, C)),                                  # wv
                _const_spec((1, C)),                                  # bv
                _const_spec((C, OD)),                                 # wc
                _const_spec((1, OD)),                                 # bc
            ],
            out_specs=pl.BlockSpec((block_b, OD), lambda b: (b, 0)),
        ),
        compiler_params=pltpu.CompilerParams(
            dimension_semantics=("parallel",),
            # 48 MiB: ~16 MiB headroom on v7x (64 MiB/TC); well within
            # v6e/v5e's 128 MiB (raise to ~100 MiB there for huge B_blk).
            vmem_limit_bytes=48 * 1024 * 1024,
        ),
    )(x_tok, prep["pos0"], prep["posx"], prep["seg_c2h"], prep["seg_h2c"],
      prep["wq"], prep["bq"], prep["wk"], prep["bk"],
      prep["wv"], prep["bv"], prep["wc"], prep["bc"])
    return out[:N]


def attention_pool2d_reference(x_nchw, params, num_heads):
    """Pure-JAX f32 reference matching torch F.multi_head_attention_forward."""
    N, C, H, W = x_nchw.shape
    x = jnp.transpose(x_nchw.reshape(N, C, H * W), (2, 0, 1))        # (HW, N, C)
    x = jnp.concatenate([x.mean(axis=0, keepdims=True), x], axis=0)  # (L, N, C)
    x = x + params["pos"][:, None, :]
    head_dim = C // num_heads

    q = x[:1] @ params["wq"] + params["bq"][0]   # (1, N, C)
    k = x @ params["wk"] + params["bk"][0]       # (L, N, C)
    v = x @ params["wv"] + params["bv"][0]

    def split(t):  # (Lt, N, C) -> (N, heads, Lt, hd)
        Lt = t.shape[0]
        return jnp.transpose(t.reshape(Lt, N, num_heads, head_dim), (1, 2, 0, 3))

    qh = split(q) * head_dim ** -0.5
    kh = split(k)
    vh = split(v)
    s = jnp.einsum('nhqd,nhkd->nhqk', qh, kh)
    p = jax.nn.softmax(s, axis=-1)
    o = jnp.einsum('nhqk,nhkd->nhqd', p, vh)                          # (N, heads, 1, hd)
    o = jnp.transpose(o, (2, 0, 1, 3)).reshape(1, N, C)
    out = o @ params["wc"] + params["bc"][0]
    return out[0]


def init_params(key, spacial_dim, embed_dim, output_dim):
    L = spacial_dim ** 2 + 1
    ks = jax.random.split(key, 9)
    scale = embed_dim ** -0.5
    params = {
        "pos": jax.random.normal(ks[0], (L, embed_dim), jnp.float32) * scale,
        # weights stored as (in_features, out_features) == torch_weight.T
        "wq": jax.random.normal(ks[1], (embed_dim, embed_dim), jnp.float32) * scale,
        "bq": jax.random.normal(ks[2], (1, embed_dim), jnp.float32) * 0.02,
        "wk": jax.random.normal(ks[3], (embed_dim, embed_dim), jnp.float32) * scale,
        "bk": jax.random.normal(ks[4], (1, embed_dim), jnp.float32) * 0.02,
        "wv": jax.random.normal(ks[5], (embed_dim, embed_dim), jnp.float32) * scale,
        "bv": jax.random.normal(ks[6], (1, embed_dim), jnp.float32) * 0.02,
        "wc": jax.random.normal(ks[7], (embed_dim, output_dim), jnp.float32) * scale,
        "bc": jax.random.normal(ks[8], (1, output_dim), jnp.float32) * 0.02,
    }
    return params


if __name__ == "__main__":
    # small deterministic config: spacial_dim=8, embed_dim=32, heads=4,
    # output_dim=64; batch=16 so the kernel runs 2 grid steps of B_blk=8
    # (>=256 MXU rows per step, full-sublane output stores, grid % 2 == 0).
    batch = 16
    spacial_dim = 8
    embed_dim = 32
    num_heads = 4
    output_dim = 64

    key = jax.random.PRNGKey(0)
    k_x, k_p = jax.random.split(key)
    x = jax.random.normal(k_x, (batch, embed_dim, spacial_dim, spacial_dim),
                          jnp.float32)
    params = init_params(k_p, spacial_dim, embed_dim, output_dim)

    # One-time weight prep (bf16 casts + head-segment matrices), outside the
    # per-call path.
    prep = prepare_params(params, num_heads)

    out = attention_pool2d(x, prep, num_heads)
    out = jax.block_until_ready(out)

    ref = attention_pool2d_reference(x, params, num_heads)
    assert out.shape == (batch, output_dim)
    # bf16 matmul operands (f32 accumulation) + approx reciprocal -> loosened tol.
    assert jnp.allclose(out, ref, rtol=5e-2, atol=5e-2), (
        f"max abs err {jnp.max(jnp.abs(out - ref))}")
    print("KERNEL_OK")
</pallas_src>

<mosaic_0001>
module attributes {stable_mosaic.version = 11 : i64} {
  func.func @attention_pool_kernel(%arg0: i32, %arg1: memref<8x64x32xbf16, #tpu.memory_space<vmem>>, %arg2: memref<1x32xbf16, #tpu.memory_space<vmem>>, %arg3: memref<64x32xbf16, #tpu.memory_space<vmem>>, %arg4: memref<32x4xbf16, #tpu.memory_space<vmem>>, %arg5: memref<4x32xbf16, #tpu.memory_space<vmem>>, %arg6: memref<32x32xbf16, #tpu.memory_space<vmem>>, %arg7: memref<1x32xf32, #tpu.memory_space<vmem>>, %arg8: memref<32x32xbf16, #tpu.memory_space<vmem>>, %arg9: memref<1x32xf32, #tpu.memory_space<vmem>>, %arg10: memref<32x32xbf16, #tpu.memory_space<vmem>>, %arg11: memref<1x32xf32, #tpu.memory_space<vmem>>, %arg12: memref<32x64xbf16, #tpu.memory_space<vmem>>, %arg13: memref<1x64xf32, #tpu.memory_space<vmem>>, %arg14: memref<8x64xf32, #tpu.memory_space<vmem>>) attributes {dimension_semantics = [#tpu.dimension_semantics<parallel>], iteration_bounds = array<i64: 2>, scalar_prefetch = 0 : i64, scratch_operands = 0 : i64, tpu.core_type = #tpu.core_type<tc>, window_params = [{transform_indices = @transform_0, window_bounds = array<i64: 8, 64, 32>}, {pipeline_mode = #tpu.pipeline_mode<synchronous>, transform_indices = @transform_1, window_bounds = array<i64: 1, 32>}, {pipeline_mode = #tpu.pipeline_mode<synchronous>, transform_indices = @transform_2, window_bounds = array<i64: 64, 32>}, {pipeline_mode = #tpu.pipeline_mode<synchronous>, transform_indices = @transform_3, window_bounds = array<i64: 32, 4>}, {pipeline_mode = #tpu.pipeline_mode<synchronous>, transform_indices = @transform_4, window_bounds = array<i64: 4, 32>}, {pipeline_mode = #tpu.pipeline_mode<synchronous>, transform_indices = @transform_5, window_bounds = array<i64: 32, 32>}, {pipeline_mode = #tpu.pipeline_mode<synchronous>, transform_indices = @transform_6, window_bounds = array<i64: 1, 32>}, {pipeline_mode = #tpu.pipeline_mode<synchronous>, transform_indices = @transform_7, window_bounds = array<i64: 32, 32>}, {pipeline_mode = #tpu.pipeline_mode<synchronous>, transform_indices = @transform_8, window_bounds = array<i64: 1, 32>}, {pipeline_mode = #tpu.pipeline_mode<synchronous>, transform_indices = @transform_9, window_bounds = array<i64: 32, 32>}, {pipeline_mode = #tpu.pipeline_mode<synchronous>, transform_indices = @transform_10, window_bounds = array<i64: 1, 32>}, {pipeline_mode = #tpu.pipeline_mode<synchronous>, transform_indices = @transform_11, window_bounds = array<i64: 32, 64>}, {pipeline_mode = #tpu.pipeline_mode<synchronous>, transform_indices = @transform_12, window_bounds = array<i64: 1, 64>}, {transform_indices = @transform_13, window_bounds = array<i64: 8, 64>}]} {
    %c0 = arith.constant 0 : index
    %c0_0 = arith.constant 0 : index
    %c0_1 = arith.constant 0 : index
    %0 = vector.load %arg1[%c0, %c0_0, %c0_1] : memref<8x64x32xbf16, #tpu.memory_space<vmem>>, vector<8x64x32xbf16>
    %1 = arith.extf %0 : vector<8x64x32xbf16> to vector<8x64x32xf32>
    %cst = arith.constant dense<0.000000e+00> : vector<8x32xf32>
    %2 = vector.multi_reduction <add>, %1, %cst [1] : vector<8x64x32xf32> to vector<8x32xf32>
    %cst_2 = arith.constant 6.400000e+01 : f32
    %3 = vector.broadcast %cst_2 : f32 to vector<8x32xf32>
    %4 = arith.divf %2, %3 : vector<8x32xf32>
    %c0_3 = arith.constant 0 : index
    %c0_4 = arith.constant 0 : index
    %5 = vector.load %arg2[%c0_3, %c0_4] : memref<1x32xbf16, #tpu.memory_space<vmem>>, vector<1x32xbf16>
    %6 = arith.extf %5 : vector<1x32xbf16> to vector<1x32xf32>
    %7 = vector.broadcast %6 : vector<1x32xf32> to vector<8x32xf32>
    %8 = arith.addf %4, %7 : vector<8x32xf32>
    %9 = arith.truncf %8 : vector<8x32xf32> to vector<8x32xbf16>
    %c0_5 = arith.constant 0 : index
    %c0_6 = arith.constant 0 : index
    %10 = vector.load %arg3[%c0_5, %c0_6] : memref<64x32xbf16, #tpu.memory_space<vmem>>, vector<64x32xbf16>
    %11 = vector.shape_cast %10 : vector<64x32xbf16> to vector<1x64x32xbf16>
    %12 = vector.broadcast %11 : vector<1x64x32xbf16> to vector<8x64x32xbf16>
    %13 = arith.addf %0, %12 : vector<8x64x32xbf16>
    %14 = vector.shape_cast %13 : vector<8x64x32xbf16> to vector<512x32xbf16>
    %c0_7 = arith.constant 0 : index
    %c0_8 = arith.constant 0 : index
    %15 = vector.load %arg8[%c0_7, %c0_8] : memref<32x32xbf16, #tpu.memory_space<vmem>>, vector<32x32xbf16>
    %cst_9 = arith.constant dense<0.000000e+00> : vector<512x32xf32>
    %16 = tpu.matmul %14, %15, %cst_9 {dimension_numbers = #tpu.dot_dimension_numbers<[1], [0], [0], [1], [0, 0, 1, 1], [], []>} : vector<512x32xbf16>, vector<32x32xbf16>, vector<512x32xf32> -> vector<512x32xf32>
    %c0_10 = arith.constant 0 : index
    %c0_11 = arith.constant 0 : index
    %17 = vector.load %arg9[%c0_10, %c0_11] : memref<1x32xf32, #tpu.memory_space<vmem>>, vector<1x32xf32>
    %18 = vector.broadcast %17 : vector<1x32xf32> to vector<512x32xf32>
    %19 = arith.addf %16, %18 : vector<512x32xf32>
    %c0_12 = arith.constant 0 : index
    %c0_13 = arith.constant 0 : index
    %20 = vector.load %arg10[%c0_12, %c0_13] : memref<32x32xbf16, #tpu.memory_space<vmem>>, vector<32x32xbf16>
    %cst_14 = arith.constant dense<0.000000e+00> : vector<512x32xf32>
    %21 = tpu.matmul %14, %20, %cst_14 {dimension_numbers = #tpu.dot_dimension_numbers<[1], [0], [0], [1], [0, 0, 1, 1], [], []>} : vector<512x32xbf16>, vector<32x32xbf16>, vector<512x32xf32> -> vector<512x32xf32>
    %c0_15 = arith.constant 0 : index
    %c0_16 = arith.constant 0 : index
    %22 = vector.load %arg11[%c0_15, %c0_16] : memref<1x32xf32, #tpu.memory_space<vmem>>, vector<1x32xf32>
    %23 = vector.broadcast %22 : vector<1x32xf32> to vector<512x32xf32>
    %24 = arith.addf %21, %23 : vector<512x32xf32>
    %25 = vector.shape_cast %19 : vector<512x32xf32> to vector<8x64x32xf32>
    %26 = vector.shape_cast %24 : vector<512x32xf32> to vector<8x64x32xf32>
    %c0_17 = arith.constant 0 : index
    %c0_18 = arith.constant 0 : index
    %27 = vector.load %arg6[%c0_17, %c0_18] : memref<32x32xbf16, #tpu.memory_space<vmem>>, vector<32x32xbf16>
    %cst_19 = arith.constant dense<0.000000e+00> : vector<8x32xf32>
    %28 = tpu.matmul %9, %27, %cst_19 {dimension_numbers = #tpu.dot_dimension_numbers<[1], [0], [0], [1], [0, 0, 1, 1], [], []>} : vector<8x32xbf16>, vector<32x32xbf16>, vector<8x32xf32> -> vector<8x32xf32>
    %c0_20 = arith.constant 0 : index
    %c0_21 = arith.constant 0 : index
    %29 = vector.load %arg7[%c0_20, %c0_21] : memref<1x32xf32, #tpu.memory_space<vmem>>, vector<1x32xf32>
    %30 = vector.broadcast %29 : vector<1x32xf32> to vector<8x32xf32>
    %31 = arith.addf %28, %30 : vector<8x32xf32>
    %cst_22 = arith.constant 0.353553385 : f32
    %32 = vector.broadcast %cst_22 : f32 to vector<8x32xf32>
    %33 = arith.mulf %31, %32 : vector<8x32xf32>
    %c0_23 = arith.constant 0 : index
    %c0_24 = arith.constant 0 : index
    %34 = vector.load %arg8[%c0_23, %c0_24] : memref<32x32xbf16, #tpu.memory_space<vmem>>, vector<32x32xbf16>
    %cst_25 = arith.constant dense<0.000000e+00> : vector<8x32xf32>
    %35 = tpu.matmul %9, %34, %cst_25 {dimension_numbers = #tpu.dot_dimension_numbers<[1], [0], [0], [1], [0, 0, 1, 1], [], []>} : vector<8x32xbf16>, vector<32x32xbf16>, vector<8x32xf32> -> vector<8x32xf32>
    %c0_26 = arith.constant 0 : index
    %c0_27 = arith.constant 0 : index
    %36 = vector.load %arg9[%c0_26, %c0_27] : memref<1x32xf32, #tpu.memory_space<vmem>>, vector<1x32xf32>
    %37 = vector.broadcast %36 : vector<1x32xf32> to vector<8x32xf32>
    %38 = arith.addf %35, %37 : vector<8x32xf32>
    %c0_28 = arith.constant 0 : index
    %c0_29 = arith.constant 0 : index
    %39 = vector.load %arg10[%c0_28, %c0_29] : memref<32x32xbf16, #tpu.memory_space<vmem>>, vector<32x32xbf16>
    %cst_30 = arith.constant dense<0.000000e+00> : vector<8x32xf32>
    %40 = tpu.matmul %9, %39, %cst_30 {dimension_numbers = #tpu.dot_dimension_numbers<[1], [0], [0], [1], [0, 0, 1, 1], [], []>} : vector<8x32xbf16>, vector<32x32xbf16>, vector<8x32xf32> -> vector<8x32xf32>
    %c0_31 = arith.constant 0 : index
    %c0_32 = arith.constant 0 : index
    %41 = vector.load %arg11[%c0_31, %c0_32] : memref<1x32xf32, #tpu.memory_space<vmem>>, vector<1x32xf32>
    %42 = vector.broadcast %41 : vector<1x32xf32> to vector<8x32xf32>
    %43 = arith.addf %40, %42 : vector<8x32xf32>
    %44 = vector.shape_cast %33 : vector<8x32xf32> to vector<8x1x32xf32>
    %45 = vector.broadcast %44 : vector<8x1x32xf32> to vector<8x64x32xf32>
    %46 = arith.mulf %25, %45 : vector<8x64x32xf32>
    %47 = arith.truncf %46 : vector<8x64x32xf32> to vector<8x64x32xbf16>
    %48 = vector.shape_cast %47 : vector<8x64x32xbf16> to vector<512x32xbf16>
    %c0_33 = arith.constant 0 : index
    %c0_34 = arith.constant 0 : index
    %49 = vector.load %arg4[%c0_33, %c0_34] : memref<32x4xbf16, #tpu.memory_space<vmem>>, vector<32x4xbf16>
    %cst_35 = arith.constant dense<0.000000e+00> : vector<512x4xf32>
    %50 = tpu.matmul %48, %49, %cst_35 {dimension_numbers = #tpu.dot_dimension_numbers<[1], [0], [0], [1], [0, 0, 1, 1], [], []>} : vector<512x32xbf16>, vector<32x4xbf16>, vector<512x4xf32> -> vector<512x4xf32>
    %51 = vector.shape_cast %50 : vector<512x4xf32> to vector<8x64x4xf32>
    %52 = arith.mulf %38, %33 : vector<8x32xf32>
    %53 = arith.truncf %52 : vector<8x32xf32> to vector<8x32xbf16>
    %c0_36 = arith.constant 0 : index
    %c0_37 = arith.constant 0 : index
    %54 = vector.load %arg4[%c0_36, %c0_37] : memref<32x4xbf16, #tpu.memory_space<vmem>>, vector<32x4xbf16>
    %cst_38 = arith.constant dense<0.000000e+00> : vector<8x4xf32>
    %55 = tpu.matmul %53, %54, %cst_38 {dimension_numbers = #tpu.dot_dimension_numbers<[1], [0], [0], [1], [0, 0, 1, 1], [], []>} : vector<8x32xbf16>, vector<32x4xbf16>, vector<8x4xf32> -> vector<8x4xf32>
    %cst_39 = arith.constant dense<0xFF800000> : vector<8x4xf32>
    %56 = vector.multi_reduction <maximumf>, %51, %cst_39 [1] : vector<8x64x4xf32> to vector<8x4xf32>
    %57 = arith.maximumf %56, %55 : vector<8x4xf32>
    %58 = vector.shape_cast %57 : vector<8x4xf32> to vector<8x1x4xf32>
    %59 = vector.broadcast %58 : vector<8x1x4xf32> to vector<8x64x4xf32>
    %60 = arith.subf %51, %59 : vector<8x64x4xf32>
    %61 = math.exp %60 : vector<8x64x4xf32>
    %62 = arith.subf %55, %57 : vector<8x4xf32>
    %63 = math.exp %62 : vector<8x4xf32>
    %cst_40 = arith.constant dense<0.000000e+00> : vector<8x4xf32>
    %64 = vector.multi_reduction <add>, %61, %cst_40 [1] : vector<8x64x4xf32> to vector<8x4xf32>
    %65 = arith.addf %64, %63 : vector<8x4xf32>
    %66 = tpu.reciprocal %65 {approx = true} : vector<8x4xf32> -> vector<8x4xf32>
    %67 = vector.shape_cast %66 : vector<8x4xf32> to vector<8x1x4xf32>
    %68 = vector.broadcast %67 : vector<8x1x4xf32> to vector<8x64x4xf32>
    %69 = arith.mulf %61, %68 : vector<8x64x4xf32>
    %70 = arith.truncf %69 : vector<8x64x4xf32> to vector<8x64x4xbf16>
    %71 = vector.shape_cast %70 : vector<8x64x4xbf16> to vector<512x4xbf16>
    %c0_41 = arith.constant 0 : index
    %c0_42 = arith.constant 0 : index
    %72 = vector.load %arg5[%c0_41, %c0_42] : memref<4x32xbf16, #tpu.memory_space<vmem>>, vector<4x32xbf16>
    %cst_43 = arith.constant dense<0.000000e+00> : vector<512x32xf32>
    %73 = tpu.matmul %71, %72, %cst_43 {dimension_numbers = #tpu.dot_dimension_numbers<[1], [0], [0], [1], [0, 0, 1, 1], [], []>} : vector<512x4xbf16>, vector<4x32xbf16>, vector<512x32xf32> -> vector<512x32xf32>
    %74 = vector.shape_cast %73 : vector<512x32xf32> to vector<8x64x32xf32>
    %75 = arith.mulf %63, %66 : vector<8x4xf32>
    %76 = arith.truncf %75 : vector<8x4xf32> to vector<8x4xbf16>
    %c0_44 = arith.constant 0 : index
    %c0_45 = arith.constant 0 : index
    %77 = vector.load %arg5[%c0_44, %c0_45] : memref<4x32xbf16, #tpu.memory_space<vmem>>, vector<4x32xbf16>
    %cst_46 = arith.constant dense<0.000000e+00> : vector<8x32xf32>
    %78 = tpu.matmul %76, %77, %cst_46 {dimension_numbers = #tpu.dot_dimension_numbers<[1], [0], [0], [1], [0, 0, 1, 1], [], []>} : vector<8x4xbf16>, vector<4x32xbf16>, vector<8x32xf32> -> vector<8x32xf32>
    %79 = arith.mulf %74, %26 : vector<8x64x32xf32>
    %cst_47 = arith.constant dense<0.000000e+00> : vector<8x32xf32>
    %80 = vector.multi_reduction <add>, %79, %cst_47 [1] : vector<8x64x32xf32> to vector<8x32xf32>
    %81 = arith.mulf %78, %43 : vector<8x32xf32>
    %82 = arith.addf %80, %81 : vector<8x32xf32>
    %83 = arith.truncf %82 : vector<8x32xf32> to vector<8x32xbf16>
    %c0_48 = arith.constant 0 : index
    %c0_49 = arith.constant 0 : index
    %84 = vector.load %arg12[%c0_48, %c0_49] : memref<32x64xbf16, #tpu.memory_space<vmem>>, vector<32x64xbf16>
    %cst_50 = arith.constant dense<0.000000e+00> : vector<8x64xf32>
    %85 = tpu.matmul %83, %84, %cst_50 {dimension_numbers = #tpu.dot_dimension_numbers<[1], [0], [0], [1], [0, 0, 1, 1], [], []>} : vector<8x32xbf16>, vector<32x64xbf16>, vector<8x64xf32> -> vector<8x64xf32>
    %c0_51 = arith.constant 0 : index
    %c0_52 = arith.constant 0 : index
    %86 = vector.load %arg13[%c0_51, %c0_52] : memref<1x64xf32, #tpu.memory_space<vmem>>, vector<1x64xf32>
    %87 = vector.broadcast %86 : vector<1x64xf32> to vector<8x64xf32>
    %88 = arith.addf %85, %87 : vector<8x64xf32>
    %c0_53 = arith.constant 0 : index
    %c0_54 = arith.constant 0 : index
    %89 = vector.load %arg14[%c0_53, %c0_54] : memref<8x64xf32, #tpu.memory_space<vmem>>, vector<8x64xf32>
    tpu.vector_store %arg14[%c0_53, %c0_54], %88 {strides = array<i32>} : memref<8x64xf32, #tpu.memory_space<vmem>>, vector<8x64xf32>,
    return
  }
  func.func @transform_0(%arg0: i32) -> (i32, i32, i32) {
    %c0_i32 = arith.constant 0 : i32
    %c0_i32_0 = arith.constant 0 : i32
    %c0_i32_1 = arith.constant 0 : i32
    return %arg0, %c0_i32, %c0_i32_0 : i32, i32, i32
  }
  func.func @transform_1(%arg0: i32) -> (i32, i32) {
    %c0_i32 = arith.constant 0 : i32
    %c0_i32_0 = arith.constant 0 : i32
    %c0_i32_1 = arith.constant 0 : i32
    return %c0_i32, %c0_i32_0 : i32, i32
  }
  func.func @transform_2(%arg0: i32) -> (i32, i32) {
    %c0_i32 = arith.constant 0 : i32
    %c0_i32_0 = arith.constant 0 : i32
    %c0_i32_1 = arith.constant 0 : i32
    return %c0_i32, %c0_i32_0 : i32, i32
  }
  func.func @transform_3(%arg0: i32) -> (i32, i32) {
    %c0_i32 = arith.constant 0 : i32
    %c0_i32_0 = arith.constant 0 : i32
    %c0_i32_1 = arith.constant 0 : i32
    return %c0_i32, %c0_i32_0 : i32, i32
  }
  func.func @transform_4(%arg0: i32) -> (i32, i32) {
    %c0_i32 = arith.constant 0 : i32
    %c0_i32_0 = arith.constant 0 : i32
    %c0_i32_1 = arith.constant 0 : i32
    return %c0_i32, %c0_i32_0 : i32, i32
  }
  func.func @transform_5(%arg0: i32) -> (i32, i32) {
    %c0_i32 = arith.constant 0 : i32
    %c0_i32_0 = arith.constant 0 : i32
    %c0_i32_1 = arith.constant 0 : i32
    return %c0_i32, %c0_i32_0 : i32, i32
  }
  func.func @transform_6(%arg0: i32) -> (i32, i32) {
    %c0_i32 = arith.constant 0 : i32
    %c0_i32_0 = arith.constant 0 : i32
    %c0_i32_1 = arith.constant 0 : i32
    return %c0_i32, %c0_i32_0 : i32, i32
  }
  func.func @transform_7(%arg0: i32) -> (i32, i32) {
    %c0_i32 = arith.constant 0 : i32
    %c0_i32_0 = arith.constant 0 : i32
    %c0_i32_1 = arith.constant 0 : i32
    return %c0_i32, %c0_i32_0 : i32, i32
  }
  func.func @transform_8(%arg0: i32) -> (i32, i32) {
    %c0_i32 = arith.constant 0 : i32
    %c0_i32_0 = arith.constant 0 : i32
    %c0_i32_1 = arith.constant 0 : i32
    return %c0_i32, %c0_i32_0 : i32, i32
  }
  func.func @transform_9(%arg0: i32) -> (i32, i32) {
    %c0_i32 = arith.constant 0 : i32
    %c0_i32_0 = arith.constant 0 : i32
    %c0_i32_1 = arith.constant 0 : i32
    return %c0_i32, %c0_i32_0 : i32, i32
  }
  func.func @transform_10(%arg0: i32) -> (i32, i32) {
    %c0_i32 = arith.constant 0 : i32
    %c0_i32_0 = arith.constant 0 : i32
    %c0_i32_1 = arith.constant 0 : i32
    return %c0_i32, %c0_i32_0 : i32, i32
  }
  func.func @transform_11(%arg0: i32) -> (i32, i32) {
    %c0_i32 = arith.constant 0 : i32
    %c0_i32_0 = arith.constant 0 : i32
    %c0_i32_1 = arith.constant 0 : i32
    return %c0_i32, %c0_i32_0 : i32, i32
  }
  func.func @transform_12(%arg0: i32) -> (i32, i32) {
    %c0_i32 = arith.constant 0 : i32
    %c0_i32_0 = arith.constant 0 : i32
    %c0_i32_1 = arith.constant 0 : i32
    return %c0_i32, %c0_i32_0 : i32, i32
  }
  func.func @transform_13(%arg0: i32) -> (i32, i32) {
    %c0_i32 = arith.constant 0 : i32
    %c0_i32_0 = arith.constant 0 : i32
    return %arg0, %c0_i32 : i32, i32
  }
}

</mosaic_0001>

<bundles_post_ra>
// kernel: tpu_custom_call.1
= control target key start
LH: loop header
LB: loop body
LE: loop exit
PB: predicated region body
PF: predicated region fallthrough
CT: control target
= control target key end

     0   :  { %s7167_s0 = inlined_call_operand.vmem [shape: bf16[16,64,32], index: 0, kind: input, shape index: {}]   ;;  %s7168_s1 = inlined_call_operand.vmem [shape: bf16[1,32], index: 1, kind: input, shape index: {}]   ;;  %s7169_s2 = inlined_call_operand.vmem [shape: bf16[64,32], index: 2, kind: input, shape index: {}]   ;;  %s7170_s3 = inlined_call_operand.vmem [shape: bf16[32,4], index: 3, kind: input, shape index: {}]   ;;  %s7171_s4 = inlined_call_operand.vmem [shape: bf16[4,32], index: 4, kind: input, shape index: {}]   ;;  %s7172_s5 = inlined_call_operand.vmem [shape: bf16[32,32], index: 5, kind: input, shape index: {}]   ;;  %s7173_s6 = inlined_call_operand.vmem [shape: f32[1,32], index: 6, kind: input, shape index: {}]   ;;  %s7174_s7 = inlined_call_operand.vmem [shape: bf16[32,32], index: 7, kind: input, shape index: {}]   ;;  %s7175_s8 = inlined_call_operand.vmem [shape: f32[1,32], index: 8, kind: input, shape index: {}]   ;;  %s7176_s9 = inlined_call_operand.vmem [shape: bf16[32,32], index: 9, kind: input, shape index: {}]   ;;  %s7177_s10 = inlined_call_operand.vmem [shape: f32[1,32], index: 10, kind: input, shape index: {}]   ;;  %s7178_s11 = inlined_call_operand.vmem [shape: bf16[32,64], index: 11, kind: input, shape index: {}]   ;;  %s7179_s12 = inlined_call_operand.vmem [shape: f32[1,64], index: 12, kind: input, shape index: {}]   ;;  %s7180_s13 = inlined_call_operand.hbm [shape: f32[16,64], index: 13, kind: output, shape index: {}]  }
   0x1   :  { %7268 = sst [smem:[#allocation62_spill]] %s7167_s0 }
   0x2   :  { %7269 = sst [smem:[#allocation63_spill]] %s7168_s1 }
   0x3   :  { %18 = vsyncpa [#allocation3], 0 }
   0x4   :  { %20 = vsyncpa [#allocation3 + $0x1], 0  ;;  %s4604_s25 = smov 0   ;;  %s4606_s26 = smov 0  }
   0x5   :  { %s4608_s27 = smov 0   ;;  %s4610_s28 = smov 0  }
   0x6 LB: > { %7270 = sst [smem:[#allocation5_spill]] %s4527_s27  ;;  %s3900_s29 = sadd.s32 4294967295, %s4531_s28   ;;  %s4531_s28 = sphi %s4610_s28, %s7597_s28   ;;  %s4527_s27 = sphi %s4608_s27, %s7599_s27   ;;  %s4523_s26 = sphi %s4606_s26, %s7601_s26   ;;  %s4519_s25 = sphi %s4604_s25, %s7600_s25  }
   0x7   : > { %s3901_s30 = sadd.s32 4294967294, %s4531_s28   ;;  %s4627_s14 = sadd.s32 1, %s4531_s28  }
   0x8   : > { %7271 = sst [smem:[#allocation6_spill]] %s4627_s14  ;;  %s311_s15 = sadd.s32 1, %s4527_s27 }
   0x9   : > { %s308_s16 = ssub.s32 %s4531_s28, %s4627_s14  ;;  %p321_p0 = scmp.ne.s32.totalorder %s4527_s27, %s4523_s26 }
   0xa   : > { %p309_p1 = scmp.eq.s32.totalorder %s308_s16, 0  ;;  %p322_p2 = scmp.eq.s32.totalorder %s3900_s29, 1 }
   0xb   : > { %p327_p3 = scmp.ne.s32.totalorder %s4523_s26, %s4519_s25  ;;  %p328_p4 = scmp.eq.s32.totalorder %s3901_s30, 1 }
   0xc   : > { %s4637_s17 = scalar_select %p309_p1, %s4527_s27, %s311_s15  }
   0xd   : > { %p4639_p5 = por %p322_p2, %p321_p0  ;;  %p4643_p6 = por %p328_p4, %p327_p3 }
   0xe   : > { %7272 = sst [smem:[#allocation7_spill]] %s4637_s17  ;;  %p3904_p7 = scmp.ge.s32.totalorder %s4531_s28, 1 }
   0xf   : > { %p392_p8 = scmp.lt.s32.totalorder %s4531_s28, 3 }
  0x11   : > { %p393_p9 = pnand %p3904_p7, %p392_p8 }
  0x13   : > { %396 = sbr.rel (%p393_p9) target bundleno = 2185 (0x889), region = 72 }
  0x18   : > { %v4089_v0 = vld [vmem:[%s7174_s7 + $0x8] sm:$0xff]  ;;  %s4652_s22 = sshll.u32 %s3900_s29, 3  ;;  %v4088_v1 = vld [vmem:[%s7174_s7] sm:$0xff]  ;;  %s7275_s0 = sld [smem:[#allocation62_spill]]  ;;  %vm573_vm0 = vcmask 261120   ;;  %v4274_v49 = vld [vmem:[%s7169_s2 + $0x10] sm:$0xff]  }
  0x19   : > { %p438_p10 = scmp.lt.s32.totalorder %s4652_s22, 15  ;;  %1202 = vmatpush.bf16.msra.mxu0 %v4089_v0  ;;  %1635 = vmatpush.bf16.msra.mxu3 %v4089_v0  ;;  %v4227_v2 = vld [vmem:[%s7169_s2] sm:$0xff]   ;;  %v4093_v3 = vld [vmem:[%s7172_s5 + $0x8] sm:$0xff]  ;;  %v4708_v51 = vunpack.c.l.bf16 %v4274_v49  ;;  %v4710_v52 = vunpack.c.h.bf16 %v4274_v49  ;;  %s7321_s1 = sld [smem:[#allocation63_spill]]  ;;  %vm1579_vm2 = vcmask 1041409   ;;  %vm1582_vm3 = vcmask 1042434  }
  0x1a   : > { %v4670_v4 = vunpack.c.l.bf16 %v4227_v2  ;;  %v4672_v5 = vunpack.c.h.bf16 %v4227_v2  ;;  %v4273_v17 = vld [vmem:[%s7169_s2 + $0x8] sm:$0xff]   ;;  %vm1585_vm4 = vcmask 1043459   ;;  %vm1588_vm5 = vcmask 1044484   ;;  %s3837_s24 = scalar_lea.hbm %s7180_s13, %s4652_s22 }
  0x1b   : > { %s439_s30 = scalar_select %p438_p10, %s4652_s22, 15  ;;  %v4686_v25 = vunpack.c.l.bf16 %v4273_v17  ;;  %v4688_v26 = vunpack.c.h.bf16 %v4273_v17  ;;  %vm1591_vm6 = vcmask 1045509   ;;  %vm1594_vm7 = vcmask 1046534  }
  0x1c   : > { %vm1597_vm8 = vcmask 1047559   ;;  %vm2266_vm9 = vcmask 31744   ;;  %vm3278_vm10 = vcmask 1041408   ;;  %s3841_s20 = sshll.u32 %s3837_s24, 4  ;;  %vm3824_vm11 = vcmask 523264   ;;  %s3842_s20 = int_to_ptr.hbm [resolvable:$true] %s3841_s20 }
  0x1d   : > { %s4087_s29 = sshll.u32 %s439_s30, 5  ;;  %1203 = vmatpush.bf16.msra.mxu0 %v4088_v1  ;;  %1636 = vmatpush.bf16.msra.mxu3 %v4088_v1  ;;  %v4275_v1 = vld [vmem:[%s7169_s2 + $0x18] sm:$0xff]  }
  0x1e   : > { %s4668_s14 = scalar_lea.vmem %s7275_s0, %s4087_s29  ;;  %s4483_s0 = sshra.s32 %s3842_s20, 4  ;;  %s4484_s0 = int_to_ptr.hbm [resolvable:$true] %s4483_s0 }
  0x1f   : > { %v4099_v6 = vld [vmem:[%s4668_s14] sm:$0xff]   ;;  %v4242_v7 = vld [vmem:[%s4668_s14 + $0x8] sm:$0xff]   ;;  %v4243_v12 = vld [vmem:[%s4668_s14 + $0x10] sm:$0xff]   ;;  %p4490_p0 = scmp.lt.s32.totalorder %s4484_s0, %s7180_s13 }
  0x20   : > { %v4100_v8 = vunpack.c.l.bf16 %v4099_v6  ;;  %v4101_v9 = vunpack.c.h.bf16 %v4099_v6  ;;  %v4104_v10 = vunpack.c.l.bf16 %v4242_v7  ;;  %v4105_v11 = vunpack.c.h.bf16 %v4242_v7  ;;  %v4244_v37 = vld [vmem:[%s4668_s14 + $0x18] sm:$0xff]   ;;  %v4245_v55 = vld [vmem:[%s4668_s14 + $0x20] sm:$0xff]  }
  0x21   : > { %1621 = vmatpush.bf16.msrb.mxu0 %v4093_v3  ;;  %v4108_v23 = vunpack.c.l.bf16 %v4243_v12  ;;  %v4109_v29 = vunpack.c.h.bf16 %v4243_v12  ;;  %v4112_v39 = vunpack.c.l.bf16 %v4244_v37  ;;  %v4113_v40 = vunpack.c.h.bf16 %v4244_v37 }
  0x22   : > { %v574_v13 = vsel %vm573_vm0, %v4100_v8, 0.0  ;;  %v575_v14 = vsel %vm573_vm0, %v4101_v9, 0.0  ;;  %v792_v15 = vadd.f32 %v4670_v4, %v4100_v8  ;;  %v793_v16 = vadd.f32 %v4672_v5, %v4101_v9  ;;  %v4246_v9 = vld [vmem:[%s4668_s14 + $0x28] sm:$0xff]  }
  0x23   : > { %v576_v18 = vadd.f32 %v575_v14, %v574_v13  ;;  %v577_v19 = vsel %vm573_vm0, %v4104_v10, 0.0  ;;  %v579_v22 = vsel %vm573_vm0, %v4105_v11, 0.0  ;;  %v581_v30 = vsel %vm573_vm0, %v4108_v23, 0.0 }
  0x24   : > { %v856_v20 = vpack.c.bf16 %v792_v15, %v792_v15  ;;  %v857_v21 = vpack.c.bf16 %v793_v16, %v793_v16  ;;  %v583_v33 = vsel %vm573_vm0, %v4109_v29, 0.0  ;;  %v794_v35 = vadd.f32 %v4686_v25, %v4104_v10 }
  0x25   : > { %v578_v24 = vadd.f32 %v577_v19, %v576_v18  ;;  %v795_v36 = vadd.f32 %v4688_v26, %v4105_v11  ;;  %v585_v41 = vsel %vm573_vm0, %v4112_v39, 0.0  ;;  %v587_v42 = vsel %vm573_vm0, %v4113_v40, 0.0 }
  0x26   : > { %v992_v27 = vunpack.c.l.b16 %v856_v20  ;;  %v993_v28 = vunpack.c.l.b16 %v857_v21  ;;  %v858_v43 = vpack.c.bf16 %v794_v35, %v794_v35  ;;  %v796_v53 = vadd.f32 %v4708_v51, %v4108_v23  ;;  %v4247_v23 = vld [vmem:[%s4668_s14 + $0x30] sm:$0xff]  }
  0x27   : > { %v580_v31 = vadd.f32 %v579_v22, %v578_v24  ;;  %v859_v44 = vpack.c.bf16 %v795_v36, %v795_v36  ;;  %v797_v54 = vadd.f32 %v4710_v52, %v4109_v29  ;;  %v4116_v56 = vunpack.c.l.bf16 %v4245_v55 }
  0x28   : > { %v4691_v32 = vpack.c.b16 %v993_v28, %v992_v27  ;;  %v994_v47 = vunpack.c.l.b16 %v858_v43  ;;  %v4117_v57 = vunpack.c.h.bf16 %v4245_v55  ;;  %v860_v60 = vpack.c.bf16 %v796_v53, %v796_v53 }
  0x29   : > { %v582_v34 = vadd.f32 %v581_v30, %v580_v31  ;;  %v995_v48 = vunpack.c.l.b16 %v859_v44  ;;  %v595_v58 = vsel %vm573_vm0, %v4116_v56, 0.0  ;;  %v861_v61 = vpack.c.bf16 %v797_v54, %v797_v54 }
  0x2a   : > { %3917 = vmatmul.msk.bf16.vlgmr.msra.gmra.mxu0 %vm573_vm0, %v4691_v32  ;;  %v596_v59 = vsel %vm573_vm0, %v4117_v57, 0.0  ;;  %v996_v63 = vunpack.c.l.b16 %v860_v60  ;;  %v4724_v3 = vunpack.c.l.bf16 %v4275_v1  ;;  %v4726_v6 = vunpack.c.h.bf16 %v4275_v1 }
  0x2b   : > { %v584_v38 = vadd.f32 %v583_v33, %v582_v34  ;;  %v4706_v50 = vpack.c.b16 %v995_v48, %v994_v47  ;;  %v597_v62 = vadd.f32 %v596_v59, %v595_v58  ;;  %v997_v0 = vunpack.c.l.b16 %v861_v61 }
  0x2c   : > { %v798_v7 = vadd.f32 %v4724_v3, %v4112_v39  ;;  %v799_v8 = vadd.f32 %v4726_v6, %v4113_v40  ;;  %v4120_v10 = vunpack.c.l.bf16 %v4246_v9  ;;  %v4121_v11 = vunpack.c.h.bf16 %v4246_v9  ;;  %v4248_v40 = vld [vmem:[%s4668_s14 + $0x38] sm:$0xff]  }
  0x2d   : > { %v586_v45 = vadd.f32 %v585_v41, %v584_v38  ;;  %v4722_v2 = vpack.c.b16 %v997_v0, %v996_v63  ;;  %v800_v21 = vadd.f32 %v4670_v4, %v4116_v56  ;;  %v801_v22 = vadd.f32 %v4672_v5, %v4117_v57 }
  0x2e   : > { %v598_v12 = vsel %vm573_vm0, %v4120_v10, 0.0  ;;  %v600_v13 = vsel %vm573_vm0, %v4121_v11, 0.0  ;;  %v862_v14 = vpack.c.bf16 %v798_v7, %v798_v7  ;;  %v863_v15 = vpack.c.bf16 %v799_v8, %v799_v8 }
  0x2f   : > { %v4701_v46 = vadd.f32 %v587_v42, %v586_v45  ;;  %7276 = vst [vmem:[#allocation8_spill] sm:$0xff] %v4722_v2  ;;  %v599_v16 = vadd.f32 %v598_v12, %v597_v62  ;;  %v4124_v24 = vunpack.c.l.bf16 %v4247_v23  ;;  %v4125_v27 = vunpack.c.h.bf16 %v4247_v23  ;;  %v4249_v62 = vld [vmem:[%s4668_s14 + $0x40] sm:$0xff]  }
  0x30   : > { %v998_v18 = vunpack.c.l.b16 %v862_v14  ;;  %v999_v19 = vunpack.c.l.b16 %v863_v15  ;;  %v864_v30 = vpack.c.bf16 %v800_v21, %v800_v21  ;;  %v865_v31 = vpack.c.bf16 %v801_v22, %v801_v22 }
  0x31   : > { %v601_v17 = vadd.f32 %v600_v13, %v599_v16  ;;  %v602_v28 = vsel %vm573_vm0, %v4124_v24, 0.0  ;;  %v604_v29 = vsel %vm573_vm0, %v4125_v27, 0.0  ;;  %v802_v38 = vadd.f32 %v4686_v25, %v4120_v10  ;;  %v4250_v16 = vld [vmem:[%s4668_s14 + $0x48] sm:$0xff]  }
  0x32   : > { %v4735_v20 = vpack.c.b16 %v999_v19, %v998_v18  ;;  %v1000_v35 = vunpack.c.l.b16 %v864_v30  ;;  %v1001_v36 = vunpack.c.l.b16 %v865_v31  ;;  %v803_v39 = vadd.f32 %v4688_v26, %v4121_v11 }
  0x33   : > { %v603_v33 = vadd.f32 %v602_v28, %v601_v17  ;;  %v4128_v41 = vunpack.c.l.bf16 %v4248_v40  ;;  %v4129_v42 = vunpack.c.h.bf16 %v4248_v40  ;;  %v866_v45 = vpack.c.bf16 %v802_v38, %v802_v38 }
  0x34   : > { %7277 = vst [vmem:[#allocation9_spill] sm:$0xff] %v4735_v20  ;;  %v4744_v37 = vpack.c.b16 %v1001_v36, %v1000_v35  ;;  %v867_v47 = vpack.c.bf16 %v803_v39, %v803_v39  ;;  %v804_v56 = vadd.f32 %v4708_v51, %v4124_v24  ;;  %v805_v57 = vadd.f32 %v4710_v52, %v4125_v27 }
  0x35   : > { %v605_v34 = vadd.f32 %v604_v29, %v603_v33  ;;  %v606_v43 = vsel %vm573_vm0, %v4128_v41, 0.0  ;;  %v608_v44 = vsel %vm573_vm0, %v4129_v42, 0.0  ;;  %v1002_v53 = vunpack.c.l.b16 %v866_v45 }
  0x36   : > { %7278 = vst [vmem:[#allocation10_spill] sm:$0xff] %v4744_v37  ;;  %v1003_v54 = vunpack.c.l.b16 %v867_v47  ;;  %v868_v58 = vpack.c.bf16 %v804_v56, %v804_v56  ;;  %v869_v59 = vpack.c.bf16 %v805_v57, %v805_v57  ;;  %v4132_v0 = vunpack.c.l.bf16 %v4249_v62  ;;  %v4252_v57 = vld [vmem:[%s4668_s14 + $0x58] sm:$0xff]  }
  0x37   : > { %v607_v48 = vadd.f32 %v606_v43, %v605_v34  ;;  %v4133_v1 = vunpack.c.h.bf16 %v4249_v62  ;;  %v806_v10 = vadd.f32 %v4724_v3, %v4128_v41  ;;  %v807_v11 = vadd.f32 %v4726_v6, %v4129_v42  ;;  %v4251_v34 = vld [vmem:[%s4668_s14 + $0x50] sm:$0xff]  }
  0x38   : > { %v4755_v55 = vpack.c.b16 %v1003_v54, %v1002_v53  ;;  %v1004_v60 = vunpack.c.l.b16 %v868_v58  ;;  %v1005_v61 = vunpack.c.l.b16 %v869_v59  ;;  %v616_v7 = vsel %vm573_vm0, %v4132_v0, 0.0 }
  0x39   : > { %v4753_v49 = vadd.f32 %v608_v44, %v607_v48  ;;  %v617_v8 = vsel %vm573_vm0, %v4133_v1, 0.0  ;;  %v870_v12 = vpack.c.bf16 %v806_v10, %v806_v10  ;;  %v871_v13 = vpack.c.bf16 %v807_v11, %v807_v11 }
  0x3a   : > { %3918 = vmatmul.msk.bf16.gmra.mxu0 %vm573_vm0, %v4706_v50  ;;  %7279 = vst [vmem:[#allocation11_spill] sm:$0xff] %v4755_v55  ;;  %v4762_v63 = vpack.c.b16 %v1005_v61, %v1004_v60  ;;  %v618_v9 = vadd.f32 %v617_v8, %v616_v7  ;;  %v4136_v18 = vunpack.c.l.bf16 %v4250_v16  ;;  %v4137_v19 = vunpack.c.h.bf16 %v4250_v16 }
  0x3b   : > { %v1006_v14 = vunpack.c.l.b16 %v870_v12  ;;  %v1007_v15 = vunpack.c.l.b16 %v871_v13  ;;  %v808_v24 = vadd.f32 %v4670_v4, %v4132_v0  ;;  %v809_v27 = vadd.f32 %v4672_v5, %v4133_v1 }
  0x3c   : > { %7280 = vst [vmem:[#allocation12_spill] sm:$0xff] %v4762_v63  ;;  %v619_v21 = vsel %vm573_vm0, %v4136_v18, 0.0  ;;  %v621_v22 = vsel %vm573_vm0, %v4137_v19, 0.0  ;;  %v4140_v36 = vunpack.c.l.bf16 %v4251_v34  ;;  %v4141_v38 = vunpack.c.h.bf16 %v4251_v34 }
  0x3d   : > { %v4771_v17 = vpack.c.b16 %v1007_v15, %v1006_v14  ;;  %v620_v23 = vadd.f32 %v619_v21, %v618_v9  ;;  %v872_v29 = vpack.c.bf16 %v808_v24, %v808_v24  ;;  %v873_v30 = vpack.c.bf16 %v809_v27, %v809_v27  ;;  %v4253_v15 = vld [vmem:[%s4668_s14 + $0x60] sm:$0xff]  }
  0x3e   : > { %v623_v40 = vsel %vm573_vm0, %v4140_v36, 0.0  ;;  %v625_v41 = vsel %vm573_vm0, %v4141_v38, 0.0  ;;  %v810_v43 = vadd.f32 %v4686_v25, %v4136_v18  ;;  %v811_v44 = vadd.f32 %v4688_v26, %v4137_v19 }
  0x3f   : > { %7281 = vst [vmem:[#allocation13_spill] sm:$0xff] %v4771_v17  ;;  %v622_v28 = vadd.f32 %v621_v22, %v620_v23  ;;  %v1008_v31 = vunpack.c.l.b16 %v872_v29  ;;  %v1009_v33 = vunpack.c.l.b16 %v873_v30  ;;  %v4144_v59 = vunpack.c.l.bf16 %v4252_v57 }
  0x40   : > { %v874_v47 = vpack.c.bf16 %v810_v43, %v810_v43  ;;  %v875_v48 = vpack.c.bf16 %v811_v44, %v811_v44  ;;  %v4145_v60 = vunpack.c.h.bf16 %v4252_v57  ;;  %v812_v7 = vadd.f32 %v4708_v51, %v4140_v36  ;;  %v4254_v36 = vld [vmem:[%s4668_s14 + $0x68] sm:$0xff]  }
  0x41   : > { %v4780_v35 = vpack.c.b16 %v1009_v33, %v1008_v31  ;;  %v624_v42 = vadd.f32 %v623_v40, %v622_v28  ;;  %v627_v62 = vsel %vm573_vm0, %v4144_v59, 0.0  ;;  %v813_v8 = vadd.f32 %v4710_v52, %v4141_v38 }
  0x42   : > { %v1010_v54 = vunpack.c.l.b16 %v874_v47  ;;  %v1011_v56 = vunpack.c.l.b16 %v875_v48  ;;  %v629_v0 = vsel %vm573_vm0, %v4145_v60, 0.0  ;;  %v876_v10 = vpack.c.bf16 %v812_v7, %v812_v7 }
  0x43   : > { %7282 = vst [vmem:[#allocation14_spill] sm:$0xff] %v4780_v35  ;;  %v626_v45 = vadd.f32 %v625_v41, %v624_v42  ;;  %v877_v11 = vpack.c.bf16 %v813_v8, %v813_v8  ;;  %v4148_v18 = vunpack.c.l.bf16 %v4253_v15  ;;  %v4149_v19 = vunpack.c.h.bf16 %v4253_v15 }
  0x44   : > { %v4793_v58 = vpack.c.b16 %v1011_v56, %v1010_v54  ;;  %v1012_v13 = vunpack.c.l.b16 %v876_v10  ;;  %v814_v27 = vadd.f32 %v4724_v3, %v4144_v59  ;;  %v815_v28 = vadd.f32 %v4726_v6, %v4145_v60 }
  0x45   : > { %v628_v1 = vadd.f32 %v627_v62, %v626_v45  ;;  %v1013_v14 = vunpack.c.l.b16 %v877_v11  ;;  %v637_v22 = vsel %vm573_vm0, %v4148_v18, 0.0  ;;  %v638_v23 = vsel %vm573_vm0, %v4149_v19, 0.0 }
  0x46   : > { %7283 = vst [vmem:[#allocation15_spill] sm:$0xff] %v4793_v58  ;;  %v639_v24 = vadd.f32 %v638_v23, %v637_v22  ;;  %v878_v29 = vpack.c.bf16 %v814_v27, %v814_v27  ;;  %v879_v30 = vpack.c.bf16 %v815_v28, %v815_v28  ;;  %v4152_v40 = vunpack.c.l.bf16 %v4254_v36 }
  0x47   : > { %v4803_v9 = vadd.f32 %v629_v0, %v628_v1  ;;  %v4808_v16 = vpack.c.b16 %v1013_v14, %v1012_v13  ;;  %v4153_v41 = vunpack.c.h.bf16 %v4254_v36  ;;  %v816_v47 = vadd.f32 %v4670_v4, %v4148_v18  ;;  %v4255_v0 = vld [vmem:[%s4668_s14 + $0x70] sm:$0xff]  }
  0x48   : > { %v1014_v33 = vunpack.c.l.b16 %v878_v29  ;;  %v1015_v34 = vunpack.c.l.b16 %v879_v30  ;;  %v640_v43 = vsel %vm573_vm0, %v4152_v40, 0.0  ;;  %v817_v48 = vadd.f32 %v4672_v5, %v4149_v19  ;;  %v4256_v29 = vld [vmem:[%s4668_s14 + $0x78] sm:$0xff]  }
  0x49   : > { %7284 = vst [vmem:[#allocation16_spill] sm:$0xff] %v4808_v16  ;;  %v642_v44 = vsel %vm573_vm0, %v4153_v41, 0.0  ;;  %v641_v45 = vadd.f32 %v640_v43, %v639_v24  ;;  %v880_v56 = vpack.c.bf16 %v816_v47, %v816_v47  ;;  %v4156_v7 = vunpack.c.l.bf16 %v4255_v0 }
  0x4a   : > { %3919 = vmatmul.msk.bf16.gmra.mxu0 %vm573_vm0, %v4722_v2  ;;  %v4821_v38 = vpack.c.b16 %v1015_v34, %v1014_v33  ;;  %v881_v57 = vpack.c.bf16 %v817_v48, %v817_v48  ;;  %v4157_v8 = vunpack.c.h.bf16 %v4255_v0  ;;  %v818_v15 = vadd.f32 %v4686_v25, %v4152_v40 }
  0x4b   : > { %v643_v54 = vadd.f32 %v642_v44, %v641_v45  ;;  %v1016_v60 = vunpack.c.l.b16 %v880_v56  ;;  %v644_v11 = vsel %vm573_vm0, %v4156_v7, 0.0  ;;  %v819_v18 = vadd.f32 %v4688_v26, %v4153_v41 }
  0x4c   : > { %7285 = vst [vmem:[#allocation17_spill] sm:$0xff] %v4821_v38  ;;  %v1017_v62 = vunpack.c.l.b16 %v881_v57  ;;  %v646_v13 = vsel %vm573_vm0, %v4157_v8, 0.0  ;;  %v882_v22 = vpack.c.bf16 %v818_v15, %v818_v15  ;;  %v4160_v33 = vunpack.c.l.bf16 %v4256_v29 }
  0x4d   : > { %v645_v14 = vadd.f32 %v644_v11, %v643_v54  ;;  %v883_v23 = vpack.c.bf16 %v819_v18, %v819_v18  ;;  %v4161_v34 = vunpack.c.h.bf16 %v4256_v29  ;;  %v820_v44 = vadd.f32 %v4708_v51, %v4156_v7 }
  0x4e   : > { %v4834_v1 = vpack.c.b16 %v1017_v62, %v1016_v60  ;;  %v1018_v27 = vunpack.c.l.b16 %v882_v22  ;;  %v648_v43 = vsel %vm573_vm0, %v4160_v33, 0.0  ;;  %v821_v45 = vadd.f32 %v4710_v52, %v4157_v8  ;;  %v4257_v62 = vld [vmem:[%s4668_s14 + $0x80] sm:$0xff]  }
  0x4f   : > { %v647_v19 = vadd.f32 %v646_v13, %v645_v14  ;;  %v1019_v28 = vunpack.c.l.b16 %v883_v23  ;;  %v650_v40 = vsel %vm573_vm0, %v4161_v34, 0.0  ;;  %v884_v48 = vpack.c.bf16 %v820_v44, %v820_v44  ;;  %v4092_v22 = vld [vmem:[%s7172_s5] sm:$0xff] }
  0x50   : > { %7286 = vst [vmem:[#allocation18_spill] sm:$0xff] %v4834_v1  ;;  %v885_v54 = vpack.c.bf16 %v821_v45, %v821_v45  ;;  %v4164_v11 = vunpack.c.l.bf16 %v4257_v62  ;;  %v4165_v13 = vunpack.c.h.bf16 %v4257_v62  ;;  %v822_v18 = vadd.f32 %v4724_v3, %v4160_v33  ;;  %1622 = vmatpush.bf16.msrb.mxu0 %v4092_v22 }
  0x51   : > { %v4847_v30 = vpack.c.b16 %v1019_v28, %v1018_v27  ;;  %v649_v41 = vadd.f32 %v648_v43, %v647_v19  ;;  %v1020_v57 = vunpack.c.l.b16 %v884_v48  ;;  %v823_v19 = vadd.f32 %v4726_v6, %v4161_v34 }
  0x52   : > { %v1021_v60 = vunpack.c.l.b16 %v885_v54  ;;  %v658_v7 = vsel %vm573_vm0, %v4164_v11, 0.0  ;;  %v659_v8 = vsel %vm573_vm0, %v4165_v13, 0.0  ;;  %v886_v23 = vpack.c.bf16 %v822_v18, %v822_v18 }
  0x53   : > { %7287 = vst [vmem:[#allocation19_spill] sm:$0xff] %v4847_v30  ;;  %v4857_v47 = vadd.f32 %v650_v40, %v649_v41  ;;  %v660_v15 = vadd.f32 %v659_v8, %v658_v7  ;;  %v887_v27 = vpack.c.bf16 %v823_v19, %v823_v19  ;;  %v4258_v40 = vld [vmem:[%s4668_s14 + $0x88] sm:$0xff]  }
  0x54   : > { %v4862_v0 = vpack.c.b16 %v1021_v60, %v1020_v57  ;;  %v1022_v29 = vunpack.c.l.b16 %v886_v23  ;;  %v4168_v44 = vunpack.c.l.bf16 %v4258_v40  ;;  %v4169_v45 = vunpack.c.h.bf16 %v4258_v40  ;;  %v4259_v23 = vld [vmem:[%s4668_s14 + $0x90] sm:$0xff]  }
  0x55   : > { %v1023_v43 = vunpack.c.l.b16 %v887_v27  ;;  %v824_v57 = vadd.f32 %v4670_v4, %v4164_v11  ;;  %v825_v60 = vadd.f32 %v4672_v5, %v4165_v13 }
  0x56   : > { %7288 = vst [vmem:[#allocation20_spill] sm:$0xff] %v4862_v0  ;;  %v661_v34 = vsel %vm573_vm0, %v4168_v44, 0.0  ;;  %v663_v48 = vsel %vm573_vm0, %v4169_v45, 0.0 }
  0x57   : > { %v4878_v41 = vpack.c.b16 %v1023_v43, %v1022_v29  ;;  %v662_v54 = vadd.f32 %v661_v34, %v660_v15  ;;  %v888_v7 = vpack.c.bf16 %v824_v57, %v824_v57  ;;  %v889_v8 = vpack.c.bf16 %v825_v60, %v825_v60 }
  0x58   : > { %v4172_v29 = vunpack.c.l.bf16 %v4259_v23  ;;  %v4173_v15 = vunpack.c.h.bf16 %v4259_v23  ;;  %v826_v34 = vadd.f32 %v4686_v25, %v4168_v44 }
  0x59   : > { %7289 = vst [vmem:[#allocation21_spill] sm:$0xff] %v4878_v41  ;;  %v664_v62 = vadd.f32 %v663_v48, %v662_v54  ;;  %v1024_v19 = vunpack.c.l.b16 %v888_v7  ;;  %v1025_v22 = vunpack.c.l.b16 %v889_v8  ;;  %v827_v48 = vadd.f32 %v4688_v26, %v4169_v45 }
  0x5a   : > { %3920 = vmatmul.msk.bf16.gmra.mxu0 %vm573_vm0, %v4735_v20  ;;  %v665_v40 = vsel %vm573_vm0, %v4172_v29, 0.0  ;;  %v667_v11 = vsel %vm573_vm0, %v4173_v15, 0.0  ;;  %v890_v57 = vpack.c.bf16 %v826_v34, %v826_v34 }
  0x5b   : > { %v4891_v27 = vpack.c.b16 %v1025_v22, %v1024_v19  ;;  %v666_v13 = vadd.f32 %v665_v40, %v664_v62  ;;  %v891_v60 = vpack.c.bf16 %v827_v48, %v827_v48  ;;  %v4260_v22 = vld [vmem:[%s4668_s14 + $0x98] sm:$0xff]  }
  0x5c   : > { %v1026_v8 = vunpack.c.l.b16 %v890_v57  ;;  %v4177_v62 = vunpack.c.h.bf16 %v4260_v22 }
  0x5d   : > { %7290 = vst [vmem:[#allocation22_spill] sm:$0xff] %v4891_v27  ;;  %v668_v54 = vadd.f32 %v667_v11, %v666_v13  ;;  %v1027_v19 = vunpack.c.l.b16 %v891_v60  ;;  %v828_v11 = vadd.f32 %v4708_v51, %v4172_v29  ;;  %v829_v13 = vadd.f32 %v4710_v52, %v4173_v15 }
  0x5e   : > { %v671_v44 = vsel %vm573_vm0, %v4177_v62, 0.0 }
  0x5f   : > { %v4904_v23 = vpack.c.b16 %v1027_v19, %v1026_v8  ;;  %v892_v48 = vpack.c.bf16 %v828_v11, %v828_v11  ;;  %v893_v57 = vpack.c.bf16 %v829_v13, %v829_v13  ;;  %v831_v11 = vadd.f32 %v4726_v6, %v4177_v62 }
  0x61   : > { %7291 = vst [vmem:[#allocation23_spill] sm:$0xff] %v4904_v23  ;;  %v1028_v8 = vunpack.c.l.b16 %v892_v48  ;;  %v1029_v19 = vunpack.c.l.b16 %v893_v57  ;;  %v895_v48 = vpack.c.bf16 %v831_v11, %v831_v11 }
  0x6a   : > { %3921 = vmatmul.msk.bf16.gmra.mxu0 %vm573_vm0, %v4744_v37 }
  0x7a   : > { %3922 = vmatmul.msk.bf16.gmra.mxu0 %vm573_vm0, %v4755_v55 }
  0x8a   : > { %3923 = vmatmul.msk.bf16.gmra.mxu0 %vm573_vm0, %v4762_v63 }
  0x9a   : > { %3924 = vmatmul.msk.bf16.gmra.mxu0 %vm573_vm0, %v4771_v17 }
  0xa7   : > { %v4782_v39 = vpop.f32.mrf.mxu0 }
  0xaa   : > { %3925 = vmatmul.msk.bf16.gmra.mxu0 %vm573_vm0, %v4780_v35 }
  0xaf   : > { %v4790_v53 = vpop.f32.mrf.mxu0 }
  0xb7   : > { %v4795_v61 = vpop.f32.mrf.mxu0 }
  0xba   : > { %3926 = vmatmul.msk.bf16.gmra.mxu0 %vm573_vm0, %v4793_v58 }
  0xbf   : > { %v4805_v12 = vpop.f32.mrf.mxu0 }
  0xc7   : > { %v4810_v21 = vpop.f32.mrf.mxu0 }
  0xca   : > { %3927 = vmatmul.msk.bf16.gmra.mxu0 %vm573_vm0, %v4808_v16  ;;  %v4263_v16 = vld [vmem:[%s4668_s14 + $0xb0] sm:$0xff]  }
  0xcb   : > { %v4188_v35 = vunpack.c.l.bf16 %v4263_v16 }
  0xcf   : > { %v4818_v31 = vpop.f32.mrf.mxu0 }
  0xd7   : > { %v4823_v42 = vpop.f32.mrf.mxu0 }
  0xda   : > { %3928 = vmatmul.msk.bf16.gmra.mxu0 %vm573_vm0, %v4821_v38 }
  0xdf   : > { %v4831_v59 = vpop.f32.mrf.mxu0 }
  0xe7   : > { %v4836_v10 = vpop.f32.mrf.mxu0 }
  0xea   : > { %3929 = vmatmul.msk.bf16.gmra.mxu0 %vm573_vm0, %v4834_v1 }
  0xef   : > { %v4844_v24 = vpop.f32.mrf.mxu0 }
  0xf7   : > { %v4849_v36 = vpop.f32.mrf.mxu0 }
  0xfa   : > { %3930 = vmatmul.msk.bf16.gmra.mxu0 %vm573_vm0, %v4847_v30 }
  0xff   : > { %v4859_v56 = vpop.f32.mrf.mxu0 }
 0x107   : > { %v4864_v14 = vpop.f32.mrf.mxu0 }
 0x10a   : > { %3931 = vmatmul.msk.bf16.gmra.mxu0 %vm573_vm0, %v4862_v0  ;;  %v4919_v0 = vpack.c.b16 %v1029_v19, %v1028_v8  ;;  %v1031_v19 = vunpack.c.l.b16 %v895_v48 }
 0x10c   : > { %7292 = vst [vmem:[#allocation24_spill] sm:$0xff] %v4919_v0 }
 0x10f   : > { %v4875_v28 = vpop.f32.mrf.mxu0 }
 0x117   : > { %v4880_v33 = vpop.f32.mrf.mxu0 }
 0x11a   : > { %3932 = vmatmul.msk.bf16.gmra.mxu0 %vm573_vm0, %v4878_v41  ;;  %v4176_v41 = vunpack.c.l.bf16 %v4260_v22  ;;  %v4261_v22 = vld [vmem:[%s4668_s14 + $0xa0] sm:$0xff]  }
 0x11f   : > { %v4888_v18 = vpop.f32.mrf.mxu0 }
 0x127   : > { %v4893_v43 = vpop.f32.mrf.mxu0 }
 0x12a   : > { %3933 = vmatmul.msk.bf16.gmra.mxu0 %vm573_vm0, %v4891_v27  ;;  %v669_v27 = vsel %vm573_vm0, %v4176_v41, 0.0 }
 0x12b   : > { %v670_v45 = vadd.f32 %v669_v27, %v668_v54  ;;  %v4180_v27 = vunpack.c.l.bf16 %v4261_v22  ;;  %v4181_v54 = vunpack.c.h.bf16 %v4261_v22  ;;  %v4262_v22 = vld [vmem:[%s4668_s14 + $0xa8] sm:$0xff]  }
 0x12c   : > { %v4184_v1 = vunpack.c.l.bf16 %v4262_v22  ;;  %v4185_v38 = vunpack.c.h.bf16 %v4262_v22 }
 0x12d   : > { %v4914_v34 = vadd.f32 %v671_v44, %v670_v45  ;;  %v679_v29 = vsel %vm573_vm0, %v4180_v27, 0.0  ;;  %v680_v15 = vsel %vm573_vm0, %v4181_v54, 0.0  ;;  %v830_v45 = vadd.f32 %v4724_v3, %v4176_v41 }
 0x12e   : > { %v681_v44 = vadd.f32 %v680_v15, %v679_v29  ;;  %v682_v15 = vsel %vm573_vm0, %v4184_v1, 0.0  ;;  %v684_v41 = vsel %vm573_vm0, %v4185_v38, 0.0  ;;  %v832_v62 = vadd.f32 %v4670_v4, %v4180_v27 }
 0x12f   : > { %v4901_v7 = vpop.f32.mrf.mxu0  ;;  %v894_v13 = vpack.c.bf16 %v830_v45, %v830_v45  ;;  %v833_v45 = vadd.f32 %v4672_v5, %v4181_v54 }
 0x131   : > { %v1030_v8 = vunpack.c.l.b16 %v894_v13  ;;  %v896_v13 = vpack.c.bf16 %v832_v62, %v832_v62  ;;  %v897_v48 = vpack.c.bf16 %v833_v45, %v833_v45 }
 0x133   : > { %v1033_v22 = vunpack.c.l.b16 %v897_v48 }
 0x137   : > { %v4906_v40 = vpop.f32.mrf.mxu0 }
 0x13a   : > { %3934 = vmatmul.msk.bf16.gmra.mxu0 %vm573_vm0, %v4904_v23  ;;  %v4932_v23 = vpack.c.b16 %v1031_v19, %v1030_v8  ;;  %v1032_v19 = vunpack.c.l.b16 %v896_v13 }
 0x13c   : > { %7294 = vst [vmem:[#allocation26_spill] sm:$0xff] %v4932_v23  ;;  %v4945_v58 = vpack.c.b16 %v1033_v22, %v1032_v19  ;;  %v4264_v22 = vld [vmem:[%s4668_s14 + $0xb8] sm:$0xff]  }
 0x13d   : > { %v4192_v63 = vunpack.c.l.bf16 %v4264_v22  ;;  %v4193_v55 = vunpack.c.h.bf16 %v4264_v22 }
 0x13e   : > { %7297 = vst [vmem:[#allocation29_spill] sm:$0xff] %v4945_v58 }
 0x13f   : > { %v4916_v60 = vpop.f32.mrf.mxu0 }
 0x147   : > { %v4921_v30 = vpop.f32.mrf.mxu0 }
 0x14a   : > { %3935 = vmatmul.msk.bf16.gmra.mxu0 %vm573_vm0, %v4919_v0  ;;  %v683_v0 = vadd.f32 %v682_v15, %v681_v44  ;;  %v4189_v44 = vunpack.c.h.bf16 %v4263_v16 }
 0x14c   : > { %v685_v11 = vadd.f32 %v684_v41, %v683_v0  ;;  %v688_v27 = vsel %vm573_vm0, %v4189_v44, 0.0  ;;  %v834_v0 = vadd.f32 %v4686_v25, %v4184_v1  ;;  %v835_v41 = vadd.f32 %v4688_v26, %v4185_v38 }
 0x14d   : > { %v692_v1 = vsel %vm573_vm0, %v4193_v55, 0.0  ;;  %v836_v38 = vadd.f32 %v4708_v51, %v4188_v35 }
 0x14e   : > { %v898_v45 = vpack.c.bf16 %v834_v0, %v834_v0  ;;  %v899_v13 = vpack.c.bf16 %v835_v41, %v835_v41 }
 0x14f   : > { %v4929_v57 = vpop.f32.mrf.mxu0  ;;  %v900_v0 = vpack.c.bf16 %v836_v38, %v836_v38 }
 0x150   : > { %7293 = vst [vmem:[#allocation25_spill] sm:$0xff] %v4929_v57  ;;  %v1034_v16 = vunpack.c.l.b16 %v898_v45  ;;  %v1035_v19 = vunpack.c.l.b16 %v899_v13 }
 0x151   : > { %v1036_v13 = vunpack.c.l.b16 %v900_v0 }
 0x152   : > { %v4958_v17 = vpack.c.b16 %v1035_v19, %v1034_v16 }
 0x154   : > { %7300 = vst [vmem:[#allocation32_spill] sm:$0xff] %v4958_v17 }
 0x157   : > { %v4934_v29 = vpop.f32.mrf.mxu0 }
 0x158   : > { %7295 = vst [vmem:[#allocation27_spill] sm:$0xff] %v4934_v29 }
 0x15a   : > { %3936 = vmatmul.msk.bf16.gmra.mxu0 %vm573_vm0, %v4932_v23  ;;  %v686_v23 = vsel %vm573_vm0, %v4188_v35, 0.0  ;;  %v838_v35 = vadd.f32 %v4724_v3, %v4192_v63 }
 0x15b   : > { %v687_v54 = vadd.f32 %v686_v23, %v685_v11  ;;  %v690_v11 = vsel %vm573_vm0, %v4192_v63, 0.0 }
 0x15d   : > { %v689_v62 = vadd.f32 %v688_v27, %v687_v54  ;;  %v837_v27 = vadd.f32 %v4710_v52, %v4189_v44  ;;  %v839_v44 = vadd.f32 %v4726_v6, %v4193_v55 }
 0x15f   : > { %v4942_v8 = vpop.f32.mrf.mxu0  ;;  %v901_v41 = vpack.c.bf16 %v837_v27, %v837_v27  ;;  %v4265_v27 = vld [vmem:[%s4668_s14 + $0xc0] sm:$0xff]  }
 0x160   : > { %7296 = vst [vmem:[#allocation28_spill] sm:$0xff] %v4942_v8 }
 0x161   : > { %v1037_v16 = vunpack.c.l.b16 %v901_v41  ;;  %v4196_v41 = vunpack.c.l.bf16 %v4265_v27 }
 0x163   : > { %v4972_v19 = vpack.c.b16 %v1037_v16, %v1036_v13  ;;  %v4197_v13 = vunpack.c.h.bf16 %v4265_v27  ;;  %v840_v63 = vadd.f32 %v4670_v4, %v4196_v41 }
 0x165   : > { %7303 = vst [vmem:[#allocation35_spill] sm:$0xff] %v4972_v19  ;;  %v841_v55 = vadd.f32 %v4672_v5, %v4197_v13 }
 0x167   : > { %v4947_v15 = vpop.f32.mrf.mxu0 }
 0x168   : > { %7298 = vst [vmem:[#allocation30_spill] sm:$0xff] %v4947_v15 }
 0x16a   : > { %3937 = vmatmul.msk.bf16.gmra.mxu0 %vm573_vm0, %v4945_v58  ;;  %v691_v58 = vadd.f32 %v690_v11, %v689_v62  ;;  %v903_v62 = vpack.c.bf16 %v839_v44, %v839_v44  ;;  %v905_v44 = vpack.c.bf16 %v841_v55, %v841_v55 }
 0x16c   : > { %v4968_v54 = vadd.f32 %v692_v1, %v691_v58  ;;  %v902_v58 = vpack.c.bf16 %v838_v35, %v838_v35  ;;  %v1039_v38 = vunpack.c.l.b16 %v903_v62  ;;  %v904_v35 = vpack.c.bf16 %v840_v63, %v840_v63 }
 0x16d   : > { %v1041_v62 = vunpack.c.l.b16 %v905_v44 }
 0x16e   : > { %v1038_v1 = vunpack.c.l.b16 %v902_v58  ;;  %v1040_v58 = vunpack.c.l.b16 %v904_v35 }
 0x16f   : > { %v4955_v48 = vpop.f32.mrf.mxu0 }
 0x170   : > { %7299 = vst [vmem:[#allocation31_spill] sm:$0xff] %v4955_v48  ;;  %v4983_v0 = vpack.c.b16 %v1039_v38, %v1038_v1  ;;  %v4266_v1 = vld [vmem:[%s4668_s14 + $0xc8] sm:$0xff]   ;;  %v4994_v38 = vpack.c.b16 %v1041_v62, %v1040_v58  ;;  %v4267_v58 = vld [vmem:[%s4668_s14 + $0xd0] sm:$0xff]   ;;  %v589_v48 = vrot.slane %v4701_v46, 4 }
 0x171   : > { %v4200_v27 = vunpack.c.l.bf16 %v4266_v1 }
 0x172   : > { %7306 = vst [vmem:[#allocation38_spill] sm:$0xff] %v4983_v0 }
 0x173   : > { %7309 = vst [vmem:[#allocation41_spill] sm:$0xff] %v4994_v38 }
 0x177   : > { %v4960_v23 = vpop.f32.mrf.mxu0 }
 0x178   : > { %7301 = vst [vmem:[#allocation33_spill] sm:$0xff] %v4960_v23 }
 0x17a   : > { %3938 = vmatmul.msk.bf16.gmra.mxu0 %vm573_vm0, %v4958_v17  ;;  %v4201_v17 = vunpack.c.h.bf16 %v4266_v1  ;;  %v4204_v1 = vunpack.c.l.bf16 %v4267_v58 }
 0x17c   : > { %v843_v63 = vadd.f32 %v4688_v26, %v4201_v17 }
 0x17e   : > { %v907_v20 = vpack.c.bf16 %v843_v63, %v843_v63 }
 0x17f   : > { %v4970_v45 = vpop.f32.mrf.mxu0 }
 0x180   : > { %7302 = vst [vmem:[#allocation34_spill] sm:$0xff] %v4970_v45  ;;  %v1043_v44 = vunpack.c.l.b16 %v907_v20 }
 0x187   : > { %v4974_v22 = vpop.f32.mrf.mxu0 }
 0x188   : > { %7304 = vst [vmem:[#allocation36_spill] sm:$0xff] %v4974_v22  ;;  %v4268_v22 = vld [vmem:[%s4668_s14 + $0xd8] sm:$0xff]  }
 0x18a   : > { %3939 = vmatmul.msk.bf16.gmra.mxu0 %vm573_vm0, %v4972_v19 }
 0x18f   : > { %v4980_v11 = vpop.f32.mrf.mxu0 }
 0x190   : > { %7305 = vst [vmem:[#allocation37_spill] sm:$0xff] %v4980_v11 }
 0x197   : > { %v4985_v16 = vpop.f32.mrf.mxu0 }
 0x198   : > { %7307 = vst [vmem:[#allocation39_spill] sm:$0xff] %v4985_v16  ;;  %v4205_v16 = vunpack.c.h.bf16 %v4267_v58  ;;  %v4209_v58 = vunpack.c.h.bf16 %v4268_v22 }
 0x19a   : > { %3940 = vmatmul.msk.bf16.gmra.mxu0 %vm573_vm0, %v4983_v0  ;;  %v842_v0 = vadd.f32 %v4686_v25, %v4200_v27 }
 0x19c   : > { %v906_v55 = vpack.c.bf16 %v842_v0, %v842_v0  ;;  %v845_v0 = vadd.f32 %v4710_v52, %v4205_v16 }
 0x19e   : > { %v1042_v35 = vunpack.c.l.b16 %v906_v55  ;;  %v909_v11 = vpack.c.bf16 %v845_v0, %v845_v0  ;;  %v703_v0 = vsel %vm573_vm0, %v4200_v27, 0.0 }
 0x19f   : > { %v4991_v19 = vpop.f32.mrf.mxu0 }
 0x1a0   : > { %7308 = vst [vmem:[#allocation40_spill] sm:$0xff] %v4991_v19  ;;  %v5005_v62 = vpack.c.b16 %v1043_v44, %v1042_v35  ;;  %v1045_v20 = vunpack.c.l.b16 %v909_v11  ;;  %v4208_v44 = vunpack.c.l.bf16 %v4268_v22  ;;  %v847_v11 = vadd.f32 %v4726_v6, %v4209_v58 }
 0x1a2   : > { %7312 = vst [vmem:[#allocation44_spill] sm:$0xff] %v5005_v62 }
 0x1a7   : > { %v4996_v37 = vpop.f32.mrf.mxu0 }
 0x1a8   : > { %7310 = vst [vmem:[#allocation42_spill] sm:$0xff] %v4996_v37 }
 0x1aa   : > { %3941 = vmatmul.msk.bf16.gmra.mxu0 %vm573_vm0, %v4994_v38  ;;  %v844_v38 = vadd.f32 %v4708_v51, %v4204_v1 }
 0x1ac   : > { %v908_v63 = vpack.c.bf16 %v844_v38, %v844_v38  ;;  %v846_v38 = vadd.f32 %v4724_v3, %v4208_v44 }
 0x1ae   : > { %v1044_v55 = vunpack.c.l.b16 %v908_v63  ;;  %v910_v22 = vpack.c.bf16 %v846_v38, %v846_v38  ;;  %v5035_v38 = vld [vmem:[%s4668_s14 + $0xe8] sm:$0xff]  }
 0x1af   : > { %v5002_v19 = vpop.f32.mrf.mxu0 }
 0x1b0   : > { %7311 = vst [vmem:[#allocation43_spill] sm:$0xff] %v5002_v19  ;;  %v5016_v35 = vpack.c.b16 %v1045_v20, %v1044_v55  ;;  %v911_v55 = vpack.c.bf16 %v847_v11, %v847_v11 }
 0x1b2   : > { %7315 = vst [vmem:[#allocation47_spill] sm:$0xff] %v5016_v35 }
 0x1b7   : > { %v5007_v37 = vpop.f32.mrf.mxu0 }
 0x1b8   : > { %7313 = vst [vmem:[#allocation45_spill] sm:$0xff] %v5007_v37  ;;  %v700_v37 = vsel %vm573_vm0, %v4196_v41, 0.0  ;;  %v705_v41 = vsel %vm573_vm0, %v4201_v17, 0.0 }
 0x1ba   : > { %3942 = vmatmul.msk.bf16.gmra.mxu0 %vm573_vm0, %v5005_v62  ;;  %v701_v62 = vsel %vm573_vm0, %v4197_v13, 0.0  ;;  %v4533_v13 = vmov 64.0  }
 0x1bb   : > { %v702_v23 = vadd.f32 %v701_v62, %v700_v37  ;;  %4320 = vrcp.f32 %v4533_v13  ;;  %v4269_v37 = vld [vmem:[%s4668_s14 + $0xe0] sm:$0xff]  }
 0x1bc   : > { %v4212_v15 = vunpack.c.l.bf16 %v4269_v37  ;;  %v4213_v27 = vunpack.c.h.bf16 %v4269_v37 }
 0x1bd   : > { %v704_v63 = vadd.f32 %v703_v0, %v702_v23  ;;  %v610_v23 = vrot.slane %v4753_v49, 4 }
 0x1be   : > { %v721_v13 = vsel %vm573_vm0, %v4212_v15, 0.0 }
 0x1bf   : > { %v5013_v19 = vpop.f32.mrf.mxu0  ;;  %v706_v62 = vadd.f32 %v705_v41, %v704_v63  ;;  %v722_v63 = vsel %vm573_vm0, %v4213_v27, 0.0  ;;  %v7208_v41 = vunpack.c.l.bf16 %v5035_v38 }
 0x1c0   : > { %7314 = vst [vmem:[#allocation46_spill] sm:$0xff] %v5013_v19  ;;  %v707_v19 = vsel %vm573_vm0, %v4204_v1, 0.0  ;;  %v723_v8 = vadd.f32 %v722_v63, %v721_v13  ;;  %v652_v13 = vrot.slane %v4857_v47, 4 }
 0x1c1   : > { %v5037_v11 = vpop.eup %4320  ;;  %v708_v17 = vadd.f32 %v707_v19, %v706_v62 }
 0x1c2   : > { %v743_v37 = vmul.f32 64.0, %v5037_v11  ;;  %vm747_vm1 = vweird.f32 %v5037_v11 }
 0x1c7   : > { %v5020_v45 = vpop.f32.mrf.mxu0 }
 0x1c8   : > { %7316 = vst [vmem:[#allocation48_spill] sm:$0xff] %v5020_v45  ;;  %v1046_v45 = vunpack.c.l.b16 %v910_v22  ;;  %v709_v22 = vsel %vm573_vm0, %v4205_v16, 0.0  ;;  %v724_v16 = vsel %vm573_vm0, %v7208_v41, 0.0  ;;  %v713_v41 = vsel %vm573_vm0, %v4209_v58, 0.0 }
 0x1c9   : > { %v710_v19 = vadd.f32 %v709_v22, %v708_v17  ;;  %v725_v63 = vadd.f32 %v724_v16, %v723_v8  ;;  %v653_v8 = vadd.f32 %v652_v13, %v4857_v47 }
 0x1ca   : > { %3943 = vmatmul.msk.bf16.gmra.mxu0 %vm573_vm0, %v5016_v35  ;;  %v1047_v35 = vunpack.c.l.b16 %v911_v55  ;;  %v590_v55 = vadd.f32 %v589_v48, %v4701_v46  ;;  %v631_v46 = vrot.slane %v4803_v9, 4  ;;  %v711_v48 = vsel %vm573_vm0, %v4208_v44, 0.0  ;;  %v5067_v44 = vld [vmem:[%s4668_s14 + $0xf0] sm:$0xff]  }
 0x1cb   : > { %v7212_v47 = vunpack.c.h.bf16 %v5067_v44 }
 0x1cc   : > { %v5039_v0 = vpack.c.b16 %v1047_v35, %v1046_v45  ;;  %v848_v45 = vadd.f32 %v4670_v4, %v4212_v15  ;;  %v849_v35 = vadd.f32 %v4672_v5, %v4213_v27  ;;  %v591_v62 = vrot.slane %v590_v55, 2 }
 0x1cd   : > { %v712_v4 = vadd.f32 %v711_v48, %v710_v19  ;;  %v632_v22 = vadd.f32 %v631_v46, %v4803_v9  ;;  %v7211_v9 = vunpack.c.l.bf16 %v5067_v44  ;;  %v694_v46 = vrot.slane %v4968_v54, 4  ;;  %v757_v48 = vld [vmem:[%s7321_s1] sm:$0x1]  ;;  %s4485_s1 = scalar_lea.hbm %s4484_s0, 8 }
 0x1ce   : > { %7318 = vst [vmem:[#allocation50_spill] sm:$0xff] %v5039_v0  ;;  %v912_v15 = vpack.c.bf16 %v848_v45, %v848_v45  ;;  %v913_v5 = vpack.c.bf16 %v849_v35, %v849_v35  ;;  %p4486_p11 = scmp.ne.s32.totalorder %s4484_s0, %s4485_s1 }
 0x1cf   : > { %v5028_v20 = vpop.f32.mrf.mxu0  ;;  %v714_v45 = vadd.f32 %v713_v41, %v712_v4  ;;  %v633_v58 = vrot.slane %v632_v22, 2  ;;  %v728_v41 = vsel %vm573_vm0, %v7211_v9, 0.0  ;;  %v695_v9 = vadd.f32 %v694_v46, %v4968_v54 }
 0x1d0   : > { %7317 = vst [vmem:[#allocation49_spill] sm:$0xff] %v5028_v20  ;;  %v611_v20 = vadd.f32 %v610_v23, %v4753_v49  ;;  %v4217_v49 = vunpack.c.h.bf16 %v5035_v38  ;;  %v744_v23 = vsub.f32 1.0, %v743_v37  ;;  %v673_v37 = vrot.slane %v4914_v34, 4  ;;  %p4487_p12 = pnand %p4486_p11, %p4639_p5 }
 0x1d1   : > { %v1048_v35 = vunpack.c.l.b16 %v912_v15  ;;  %v1049_v16 = vunpack.c.l.b16 %v913_v5  ;;  %v715_v4 = vrot.slane %v714_v45, 4  ;;  %v7324_v54 = vunpack.c.l.bf16 %v5035_v38 }
 0x1d2   : > { %v612_v17 = vrot.slane %v611_v20, 2  ;;  %v726_v27 = vsel %vm573_vm0, %v4217_v49, 0.0  ;;  %v745_v2 = vmul.f32 %v5037_v11, %v744_v23  ;;  %v851_v46 = vadd.f32 %v4688_v26, %v4217_v49  ;;  %p4488_p13 = pneg %p4487_p12 }
 0x1d3   : > { %v727_v19 = vadd.f32 %v726_v27, %v725_v63  ;;  %v5085_v63 = vld [vmem:[%s4668_s14 + $0xf8] sm:$0xff]   ;;  %v5087_v15 = vpack.c.b16 %v1049_v16, %v1048_v35  ;;  %v758_v27 = vunpack.c.l.bf16 %v757_v48  ;;  %s434_s14 = sand.u32 1, %s4523_s26  }
 0x1d4   : > { %v613_v29 = vadd.f32 %v612_v17, %v611_v20  ;;  %v674_v20 = vadd.f32 %v673_v37, %v4914_v34  ;;  %v654_v17 = vrot.slane %v653_v8, 2  ;;  %v730_v34 = vsel %vm573_vm0, %v7212_v47, 0.0  ;;  %s3905_s27 = sshll.u32 %s434_s14, 3  ;;  %s3827_s21 = scalar_lea.sflag [#allocation3], %s434_s14 }
 0x1d5   : > { %v729_v13 = vadd.f32 %v728_v41, %v727_v19  ;;  %7322 = vst [vmem:[#allocation53_spill] sm:$0xff] %v5087_v15  ;;  %v7213_v5 = vunpack.c.l.bf16 %v5085_v63  ;;  %v634_v37 = vadd.f32 %v633_v58, %v632_v22  ;;  %v7214_v41 = vunpack.c.h.bf16 %v5085_v63  ;;  %s436_s16 = scalar_lea.vmem [#allocation2], %s3905_s27  ;;  %s4489_s27 = scalar_lea.hbm %s7180_s13, 16 }
 0x1d6   : > { %v614_v23 = vrot.slane %v613_v29, 1  ;;  %v675_v19 = vrot.slane %v674_v20, 2  ;;  %v655_v48 = vadd.f32 %v654_v17, %v653_v8  ;;  %v716_v58 = vadd.f32 %v715_v4, %v714_v45  ;;  %s3839_s29 = sshll.u32 %s436_s16, 4  ;;  %p4491_p1 = scmp.lt.s32.totalorder %s4489_s27, %s4485_s1  ;;  %s3840_s29 = int_to_ptr.vmem [resolvable:$true] %s3839_s29 }
 0x1d7   : > { %v5044_v1 = vpop.f32.mrf.mxu0  ;;  %v732_v35 = vsel %vm573_vm0, %v7213_v5, 0.0  ;;  %v915_v38 = vpack.c.bf16 %v851_v46, %v851_v46 }
 0x1d8   : > { %7319 = vst [vmem:[#allocation51_spill] sm:$0xff] %v5044_v1  ;;  %v592_v1 = vadd.f32 %v591_v62, %v590_v55  ;;  %v746_v62 = vadd.f32 %v5037_v11, %v745_v2  ;;  %v731_v2 = vadd.f32 %v730_v34, %v729_v13  ;;  %v615_v47 = vadd.f32 %v614_v23, %v613_v29  ;;  %p4492_p2 = por %p4491_p1, %p4490_p0 }
 0x1d9   : > { %v635_v13 = vrot.slane %v634_v37, 1  ;;  %v696_v34 = vrot.slane %v695_v9, 2  ;;  %v676_v8 = vadd.f32 %v675_v19, %v674_v20  ;;  %v656_v23 = vrot.slane %v655_v48, 1 }
 0x1da   : > { %3944 = vmatmul.msk.bf16.gmra.mxu0 %vm573_vm0, %v5039_v0  ;;  %v593_v55 = vrot.slane %v592_v1, 1  ;;  %v748_v16 = vsel %vm747_vm1, %v5037_v11, %v746_v62  ;;  %v733_v22 = vadd.f32 %v732_v35, %v731_v2  ;;  %v759_v62 = vperm.slane %v758_v27, 0  ;;  %p4493_p3 = pnand %p4492_p2, %p4488_p13 }
 0x1db   : > { %v750_v45 = vmul.f32 %v748_v16, %v615_v47  ;;  %v717_v4 = vrot.slane %v716_v58, 2  ;;  %v636_v35 = vadd.f32 %v635_v13, %v634_v37  ;;  %v677_v5 = vrot.slane %v676_v8, 1 }
 0x1dc   : > { %v594_v57 = vadd.f32 %v593_v55, %v592_v1  ;;  %v850_v1 = vadd.f32 %v4686_v25, %v7324_v54  ;;  %v734_v55 = vsel %vm573_vm0, %v7214_v41, 0.0  ;;  %v697_v25 = vadd.f32 %v696_v34, %v695_v9 }
 0x1dd   : > { %v735_v11 = vadd.f32 %v734_v55, %v733_v22  ;;  %v761_v41 = vadd.f32 %v759_v62, %v750_v45  ;;  %v718_v20 = vadd.f32 %v717_v4, %v716_v58  ;;  %v751_v27 = vmul.f32 %v748_v16, %v636_v35 }
 0x1de   : > { %v749_v29 = vmul.f32 %v748_v16, %v594_v57  ;;  %v914_v2 = vpack.c.bf16 %v850_v1, %v850_v1  ;;  %v1051_v57 = vunpack.c.l.b16 %v915_v38  ;;  %v698_v47 = vrot.slane %v697_v25, 1 }
 0x1df   : > { %v5064_v0 = vpop.f32.mrf.mxu0  ;;  %v736_v17 = vrot.slane %v735_v11, 4  ;;  %v7325_v1 = vunpack.c.l.bf16 %v5067_v44  ;;  %v678_v9 = vadd.f32 %v677_v5, %v676_v8  ;;  %v719_v46 = vrot.slane %v718_v20, 1 }
 0x1e0   : > { %7320 = vst [vmem:[#allocation52_spill] sm:$0xff] %v5064_v0  ;;  %v760_v49 = vadd.f32 %v759_v62, %v749_v29  ;;  %v1050_v22 = vunpack.c.l.b16 %v914_v2  ;;  %v769_v13 = vpack.c.bf16 %v761_v41, %v761_v41  ;;  %v699_v34 = vadd.f32 %v698_v47, %v697_v25 }
 0x1e1   : > { %v737_v26 = vadd.f32 %v736_v17, %v735_v11  ;;  %v852_v37 = vadd.f32 %v4708_v51, %v7325_v1  ;;  %v753_v17 = vmul.f32 %v748_v16, %v678_v9  ;;  %v762_v38 = vadd.f32 %v759_v62, %v751_v27 }
 0x1e2   : > { %v768_v55 = vpack.c.bf16 %v760_v49, %v760_v49  ;;  %v5117_v45 = vpack.c.b16 %v1051_v57, %v1050_v22  ;;  %v754_v2 = vmul.f32 %v748_v16, %v699_v34  ;;  %v1571_v22 = vunpack.c.l.b16 %v769_v13 }
 0x1e3   : > { %v916_v5 = vpack.c.bf16 %v852_v37, %v852_v37  ;;  %v764_v41 = vadd.f32 %v759_v62, %v753_v17 }
 0x1e4   : > { %7326 = vst [vmem:[#allocation55_spill] sm:$0xff] %v5117_v45  ;;  %v765_v25 = vadd.f32 %v759_v62, %v754_v2  ;;  %v1570_v47 = vunpack.c.l.b16 %v768_v55  ;;  %v1578_v9 = vrot.slane %v1571_v22, 7 }
 0x1e5   : > { %v772_v49 = vpack.c.bf16 %v764_v41, %v764_v41 }
 0x1e7   : > { %v5094_v0 = vpop.f32.mrf.mxu0  ;;  %v1574_v37 = vunpack.c.l.b16 %v772_v49  ;;  %v7330_v49 = vunpack.c.h.bf16 %v5085_v63 }
 0x1e8   : > { %7323 = vst [vmem:[#allocation54_spill] sm:$0xff] %v5094_v0  ;;  %v738_v0 = vrot.slane %v737_v26, 2 }
 0x1e9   : > { %v1587_v55 = vrot.slane %v1574_v37, 4  ;;  %v855_v22 = vadd.f32 %v4726_v6, %v7330_v49 }
 0x1ea   : > { %3945 = vmatmul.msk.bf16.gmra.mxu0 %vm573_vm0, %v5087_v15  ;;  %v657_v15 = vadd.f32 %v656_v23, %v655_v48  ;;  %v739_v19 = vadd.f32 %v738_v0, %v737_v26  ;;  %v7327_v48 = vunpack.c.h.bf16 %v5067_v44  ;;  %v720_v23 = vadd.f32 %v719_v46, %v718_v20 }
 0x1eb   : > { %v773_v20 = vpack.c.bf16 %v765_v25, %v765_v25 }
 0x1ec   : > { %v740_v11 = vrot.slane %v739_v19, 1  ;;  %v752_v29 = vmul.f32 %v748_v16, %v657_v15  ;;  %v853_v58 = vadd.f32 %v4710_v52, %v7327_v48  ;;  %v755_v8 = vmul.f32 %v748_v16, %v720_v23 }
 0x1ed   : > { %v770_v15 = vpack.c.bf16 %v762_v38, %v762_v38  ;;  %v1052_v23 = vunpack.c.l.b16 %v916_v5 }
 0x1ee   : > { %v741_v4 = vadd.f32 %v740_v11, %v739_v19  ;;  %v763_v51 = vadd.f32 %v759_v62, %v752_v29  ;;  %v917_v44 = vpack.c.bf16 %v853_v58, %v853_v58  ;;  %v766_v52 = vadd.f32 %v759_v62, %v755_v8 }
 0x1ef   : > { %v5112_v54 = vpop.f32.mrf.mxu0  ;;  %v1572_v19 = vunpack.c.l.b16 %v770_v15  ;;  %v1580_v29 = vsel %vm1579_vm2, %v1578_v9, %v1570_v47 }
 0x1f0   : > { %v756_v35 = vmul.f32 %v748_v16, %v741_v4  ;;  %v771_v26 = vpack.c.bf16 %v763_v51, %v763_v51  ;;  %v774_v27 = vpack.c.bf16 %v766_v52, %v766_v52  ;;  %v1575_v16 = vunpack.c.l.b16 %v773_v20 }
 0x1f1   : > { %v1581_v34 = vrot.slane %v1572_v19, 6  ;;  %v1053_v51 = vunpack.c.l.b16 %v917_v44  ;;  %v7329_v44 = vunpack.c.l.bf16 %v5085_v63  ;;  %v919_v20 = vpack.c.bf16 %v855_v22, %v855_v22  ;;  %v7332_v22 = vld [vmem:[#allocation25_spill] sm:$0xff] }
 0x1f2   : > { %v767_v57 = vadd.f32 %v759_v62, %v756_v35  ;;  %v1573_v1 = vunpack.c.l.b16 %v771_v26  ;;  %v1576_v11 = vunpack.c.l.b16 %v774_v27  ;;  %v1590_v4 = vrot.slane %v1575_v16, 3 }
 0x1f3   : > { %v1583_v62 = vsel %vm1582_vm3, %v1581_v34, %v1580_v29  ;;  %v5135_v5 = vpack.c.b16 %v1053_v51, %v1052_v23  ;;  %v854_v52 = vadd.f32 %v4724_v3, %v7329_v44  ;;  %v1055_v27 = vunpack.c.l.b16 %v919_v20  ;;  %v4090_v23 = vld [vmem:[%s7176_s9] sm:$0xff]  ;;  %v7334_v20 = vld [vmem:[#allocation8_spill] sm:$0xff] }
 0x1f4   : > { %v775_v46 = vpack.c.bf16 %v767_v57, %v767_v57  ;;  %v1584_v48 = vrot.slane %v1573_v1, 5  ;;  %v1593_v38 = vrot.slane %v1576_v11, 2  ;;  %v4094_v51 = vld [vmem:[%s7170_s3] sm:$0xff] }
 0x1f5   : > { %7328 = vst [vmem:[#allocation56_spill] sm:$0xff] %v5135_v5  ;;  %v918_v57 = vpack.c.bf16 %v854_v52, %v854_v52 }
 0x1f6   : > { %v1577_v13 = vunpack.c.l.b16 %v775_v46  ;;  %v1586_v17 = vsel %vm1585_vm4, %v1584_v48, %v1583_v62 }
 0x1f7   : > { %v5122_v0 = vpop.f32.mrf.mxu0  ;;  %v1589_v2 = vsel %vm1588_vm5, %v1587_v55, %v1586_v17  ;;  %v1054_v19 = vunpack.c.l.b16 %v918_v57  ;;  %v4091_v55 = vld [vmem:[%s7176_s9 + $0x8] sm:$0xff] }
 0x1f8   : > { %v1592_v8 = vsel %vm1591_vm6, %v1590_v4, %v1589_v2  ;;  %v1596_v41 = vrot.slane %v1577_v13, 1  ;;  %1648 = vmatpush.bf16.msra.mxu2 %v4091_v55  ;;  %1391 = vmatpush.bf16.msra.mxu1 %v4091_v55  ;;  %v4095_v4 = vld [vmem:[%s7170_s3 + $0x8] sm:$0xff] }
 0x1f9   : > { %v1595_v35 = vsel %vm1594_vm7, %v1593_v38, %v1592_v8  ;;  %v5150_v1 = vpack.c.b16 %v1055_v27, %v1054_v19  ;;  %2085 = vmatpush.bf16.msrb.mxu3 %v4095_v4  ;;  %v7333_v57 = vld [vmem:[#allocation27_spill] sm:$0xff] }
 0x1fa   : > { %3946 = vmatmul.msk.bf16.gmra.mxu0 %vm573_vm0, %v5117_v45  ;;  %v1598_v25 = vsel %vm1597_vm8, %v1596_v41, %v1595_v35  ;;  %v7350_v45 = vld [vmem:[#allocation43_spill] sm:$0xff] }
 0x1fb   : > { %v1599_v15 = vpack.c.b16 %v1598_v25, %v1598_v25  ;;  %7331 = vst [vmem:[#allocation57_spill] sm:$0xff] %v5150_v1 }
 0x1fc   : > { %1649 = vmatpush.bf16.msra.mxu2 %v4090_v23  ;;  %1392 = vmatpush.bf16.msra.mxu1 %v4090_v23  ;;  %v7338_v23 = vld [vmem:[#allocation33_spill] sm:$0xff] }
 0x1fd   : > { %3998 = vmatmul.msk.bf16.vlgmr.msra.gmra.mxu3 %vm573_vm0, %v1599_v15 }
 0x1fe   : > { %2086 = vmatpush.bf16.msrb.mxu3 %v4094_v51 }
 0x1ff   : > { %v5127_v58 = vpop.f32.mrf.mxu0  ;;  %3999 = vmatmul.msk.bf16.vlgmr.msra.gmra.mxu2 %vm573_vm0, %v1599_v15  ;;  %3957 = vmatmul.msk.bf16.vlgmr.msra.gmra.mxu1 %vm573_vm0, %v4691_v32  ;;  %v5209_v32 = vld [vmem:[%s7175_s8] ss:$0 sm:$0xff] }
 0x200   : > { %2259 = vmatpush.bf16.msrb.mxu2 %v4095_v4  ;;  %v5215_v25 = vadd.f32 %v5209_v32, %v4782_v39  ;;  %v5223_v44 = vadd.f32 %v5209_v32, %v4795_v61  ;;  %v5231_v52 = vadd.f32 %v5209_v32, %v4810_v21  ;;  %v5235_v39 = vadd.f32 %v5209_v32, %v4818_v31 }
 0x201   : > { %v5243_v61 = vadd.f32 %v5209_v32, %v4831_v59  ;;  %v5251_v21 = vadd.f32 %v5209_v32, %v4844_v24  ;;  %v5255_v31 = vadd.f32 %v5209_v32, %v4849_v36  ;;  %v5263_v59 = vadd.f32 %v5209_v32, %v4864_v14 }
 0x202   : > { %v5271_v24 = vadd.f32 %v5209_v32, %v4880_v33  ;;  %v5275_v36 = vadd.f32 %v5209_v32, %v4888_v18  ;;  %v5283_v14 = vadd.f32 %v5209_v32, %v4901_v7  ;;  %v5291_v33 = vadd.f32 %v5209_v32, %v4916_v60  ;;  %v7336_v60 = vld [vmem:[#allocation30_spill] sm:$0xff] }
 0x203   : > { %v5295_v18 = vadd.f32 %v5209_v32, %v4921_v30  ;;  %v5303_v7 = vadd.f32 %v5209_v32, %v7333_v57  ;;  %v5313_v27 = vadd.f32 %v5209_v32, %v7336_v60  ;;  %v7337_v30 = vld [vmem:[#allocation31_spill] sm:$0xff]  ;;  %v5321_v4 = vadd.f32 %v5209_v32, %v7338_v23 }
 0x204   : > { %2260 = vmatpush.bf16.msrb.mxu2 %v4094_v51  ;;  %v5317_v55 = vadd.f32 %v5209_v32, %v7337_v30  ;;  %v7339_v51 = vld [vmem:[#allocation34_spill] sm:$0xff]  ;;  %v7344_v60 = vld [vmem:[#allocation39_spill] sm:$0xff] }
 0x205   : > { %v5337_v30 = vadd.f32 %v5209_v32, %v7344_v60 }
 0x207   : > { %v5137_v26 = vpop.f32.mrf.mxu0  ;;  %7345 = vst [vmem:[#allocation8_spill] sm:$0xff] %v5337_v30  ;;  %v7355_v30 = vld [vmem:[#allocation48_spill] sm:$0xff] }
 0x20a   : > { %3947 = vmatmul.msk.bf16.gmra.mxu0 %vm573_vm0, %v5135_v5  ;;  %v7348_v5 = vld [vmem:[#allocation42_spill] sm:$0xff] }
 0x20f   : > { %v5148_v47 = vpop.f32.mrf.mxu0  ;;  %3958 = vmatmul.msk.bf16.gmra.mxu1 %vm573_vm0, %v4706_v50  ;;  %v5227_v50 = vadd.f32 %v5209_v32, %v4805_v12  ;;  %v5247_v12 = vadd.f32 %v5209_v32, %v4836_v10  ;;  %v5267_v10 = vadd.f32 %v5209_v32, %v4875_v28  ;;  %v5287_v28 = vadd.f32 %v5209_v32, %v4906_v40  ;;  %v7335_v40 = vld [vmem:[#allocation28_spill] sm:$0xff] }
 0x210   : > { %v5309_v19 = vadd.f32 %v5209_v32, %v7335_v40 }
 0x217   : > { %v5152_v37 = vpop.f32.mrf.mxu0 }
 0x21a   : > { %3948 = vmatmul.msk.bf16.gmra.mxu0 %vm573_vm0, %v5150_v1  ;;  %v7346_v1 = vld [vmem:[#allocation40_spill] sm:$0xff] }
 0x21b   : > { %v5341_v23 = vadd.f32 %v5209_v32, %v7346_v1  ;;  %v5361_v1 = vadd.f32 %v5209_v32, %v7355_v30 }
 0x21d   : > { %7347 = vst [vmem:[#allocation28_spill] sm:$0xff] %v5341_v23  ;;  %v7356_v23 = vld [vmem:[#allocation49_spill] sm:$0xff] }
 0x21f   : > { %v5156_v9 = vpop.f32.mrf.mxu0  ;;  %3959 = vmatmul.msk.bf16.gmra.mxu1 %vm573_vm0, %v7334_v20  ;;  %v7342_v20 = vld [vmem:[#allocation37_spill] sm:$0xff] }
 0x220   : > { %v5333_v40 = vadd.f32 %v5209_v32, %v7342_v20 }
 0x222   : > { %7343 = vst [vmem:[#allocation27_spill] sm:$0xff] %v5333_v40  ;;  %v7353_v40 = vld [vmem:[#allocation46_spill] sm:$0xff] }
 0x223   : > { %v5357_v60 = vadd.f32 %v5209_v32, %v7353_v40 }
 0x225   : > { %7354 = vst [vmem:[#allocation33_spill] sm:$0xff] %v5357_v60  ;;  %v7360_v60 = vld [vmem:[#allocation54_spill] sm:$0xff] }
 0x226   : > { %v5380_v30 = vadd.f32 %v5209_v32, %v7360_v60  ;;  %v5400_v60 = vadd.f32 %v5209_v32, %v5148_v47 }
 0x227   : > { %v5158_v3 = vpop.f32.mrf.mxu0 }
 0x22a   : > { %3997 = vmatmul.msk.bf16.vlgmr.msrb.gmra.mxu0 %vm573_vm0, %v1599_v15  ;;  %v5219_v15 = vadd.f32 %v5209_v32, %v4790_v53  ;;  %v5239_v53 = vadd.f32 %v5209_v32, %v4823_v42  ;;  %v5259_v42 = vadd.f32 %v5209_v32, %v4859_v56  ;;  %v5279_v56 = vadd.f32 %v5209_v32, %v4893_v43 }
 0x22b   : > { %v5299_v43 = vadd.f32 %v5209_v32, %v7332_v22  ;;  %v7340_v22 = vld [vmem:[#allocation36_spill] sm:$0xff] }
 0x22c   : > { %v5329_v57 = vadd.f32 %v5209_v32, %v7340_v22  ;;  %v5349_v22 = vadd.f32 %v5209_v32, %v7350_v45  ;;  %7361 = vst [vmem:[#allocation36_spill] sm:$0xff] %v5400_v60 }
 0x22e   : > { %7341 = vst [vmem:[#allocation25_spill] sm:$0xff] %v5329_v57  ;;  %v7351_v57 = vld [vmem:[#allocation45_spill] sm:$0xff] }
 0x22f   : > { %v5161_v6 = vpop.f32.mrf.mxu0  ;;  %v5353_v20 = vadd.f32 %v5209_v32, %v7351_v57  ;;  %v4317_v57 = vld [vmem:[%s7173_s6] ss:$0 sm:$0xff] }
 0x231   : > { %7352 = vst [vmem:[#allocation31_spill] sm:$0xff] %v5353_v20  ;;  %v7359_v20 = vld [vmem:[#allocation52_spill] sm:$0xff] }
 0x232   : > { %v5376_v40 = vadd.f32 %v5209_v32, %v7359_v20  ;;  %v5396_v20 = vadd.f32 %v5209_v32, %v5137_v26  ;;  %v5416_v26 = vadd.f32 %v5209_v32, %v5161_v6 }
 0x237   : > { %v5163_v63 = vpop.f32.mrf.mxu0 }
 0x238   : > { %v5420_v47 = vadd.f32 %v5209_v32, %v5163_v63 }
 0x23f   : > { %v5165_v46 = vpop.f32.mrf.mxu0 }
 0x247   : > { %v5167_v16 = vpop.f32.mrf.mxu0 }
 0x24f   : > { %v5169_v34 = vpop.f32.mrf.mxu0 }
 0x257   : > { %v5171_v11 = vpop.f32.mrf.mxu0 }
 0x258   : > { %v5436_v6 = vadd.f32 %v5209_v32, %v5171_v11 }
 0x25a   : > { %7366 = vst [vmem:[#allocation43_spill] sm:$0xff] %v5436_v6 }
 0x25f   : > { %v5173_v29 = vpop.f32.mrf.mxu0 }
 0x260   : > { %v5440_v63 = vadd.f32 %v5209_v32, %v5173_v29 }
 0x262   : > { %7367 = vst [vmem:[#allocation45_spill] sm:$0xff] %v5440_v63 }
 0x267   : > { %v5175_v48 = vpop.f32.mrf.mxu0 }
 0x26f   : > { %v5177_v13 = vpop.f32.mrf.mxu0 }
 0x277   : > { %v5179_v62 = vpop.f32.mrf.mxu0 }
 0x27f   : > { %v5187_v17 = vpop.f32.mrf.mxu0 }
 0x280   : > { %v5197_v38 = vpop.f32.mrf.mxu3  ;;  %v5458_v11 = vadd.f32 %v5209_v32, %v5187_v17 }
 0x287   : > { %v5195_v2 = vpop.f32.mrf.mxu0 }
 0x288   : > { %v1640_v41 = vpop.f32.mrf.mxu3 }
 0x289   : > { %v5325_v41 = vadd.f32 %v5209_v32, %v7339_v51  ;;  %v5345_v51 = vadd.f32 %v5209_v32, %v7348_v5  ;;  %v5365_v5 = vadd.f32 %v5209_v32, %v7356_v23  ;;  %v5384_v23 = vadd.f32 %v5209_v32, %v5112_v54 }
 0x28a   : > { %v5404_v54 = vadd.f32 %v5209_v32, %v5152_v37  ;;  %v5424_v37 = vadd.f32 %v5209_v32, %v5165_v46  ;;  %v5444_v46 = vadd.f32 %v5209_v32, %v5175_v48  ;;  %v5464_v48 = vadd.f32 %v5209_v32, %v5195_v2 }
 0x28b   : > { %7349 = vst [vmem:[#allocation30_spill] sm:$0xff] %v5345_v51  ;;  %v7357_v51 = vld [vmem:[#allocation51_spill] sm:$0xff] }
 0x28c   : > { %v5369_v45 = vadd.f32 %v5209_v32, %v7357_v51  ;;  %v5388_v51 = vadd.f32 %v5209_v32, %v5122_v0  ;;  %v5408_v0 = vadd.f32 %v5209_v32, %v5156_v9  ;;  %7363 = vst [vmem:[#allocation39_spill] sm:$0xff] %v5424_v37  ;;  %v5428_v9 = vadd.f32 %v5209_v32, %v5167_v16 }
 0x28d   : > { %7368 = vst [vmem:[#allocation46_spill] sm:$0xff] %v5444_v46  ;;  %v1639_v16 = vadd.f32 %v5209_v32, %v5197_v38 }
 0x28e   : > { %7358 = vst [vmem:[#allocation34_spill] sm:$0xff] %v5369_v45  ;;  %v5392_v45 = vadd.f32 %v5209_v32, %v5127_v58  ;;  %v5412_v58 = vadd.f32 %v5209_v32, %v5158_v3  ;;  %v5432_v3 = vadd.f32 %v5209_v32, %v5169_v34  ;;  %v5450_v34 = vadd.f32 %v5209_v32, %v5177_v13 }
 0x28f   : > { %v5202_v8 = vpop.f32.mrf.mxu0  ;;  %7364 = vst [vmem:[#allocation40_spill] sm:$0xff] %v5428_v9 }
 0x290   : > { %7362 = vst [vmem:[#allocation37_spill] sm:$0xff] %v5412_v58  ;;  %v5468_v38 = vadd.f32 %v5209_v32, %v5202_v8 }
 0x291   : > { %7365 = vst [vmem:[#allocation42_spill] sm:$0xff] %v5432_v3 }
 0x292   : > { %7369 = vst [vmem:[#allocation48_spill] sm:$0xff] %v5450_v34 }
 0x293   : > { %7371 = vst [vmem:[#allocation51_spill] sm:$0xff] %v5458_v11 }
 0x294   : > { %7372 = vst [vmem:[#allocation52_spill] sm:$0xff] %v5464_v48 }
 0x295   : > { %7373 = vst [vmem:[#allocation54_spill] sm:$0xff] %v5468_v38 }
 0x297   : > { %v5211_v35 = vpop.f32.mrf.mxu0 }
 0x298   : > { %v5472_v13 = vadd.f32 %v5209_v32, %v5211_v35 }
 0x29a   : > { %7374 = vst [vmem:[#allocation58_spill] sm:$0xff] %v5472_v13 }
 0x29f   : > { %v1362_v49 = vpop.f32.mrf.mxu0 }
 0x2a7   : > { %v1624_v60 = vpop.f32.mrf.mxu0 }
 0x2a8   : > { %v1625_v58 = vadd.f32 %v4317_v57, %v1624_v60  ;;  %v5454_v57 = vadd.f32 %v5209_v32, %v5179_v62  ;;  %v5475_v62 = vadd.f32 %v5209_v32, %v1362_v49 }
 0x2aa   : > { %7370 = vst [vmem:[#allocation49_spill] sm:$0xff] %v5454_v57  ;;  %v5460_v29 = vmul.f32 0.35355338, %v1625_v58 }
 0x2ab   : > { %7375 = vst [vmem:[#allocation59_spill] sm:$0xff] %v5475_v62 }
 0x2ac   : > { %v1658_v17 = vrot.slane %v5460_v29, 3  ;;  %v1659_v60 = vrot.slane %v5460_v29, 4  ;;  %v1660_v58 = vrot.slane %v5460_v29, 5  ;;  %v1661_v2 = vrot.slane %v5460_v29, 6 }
 0x2ad   : > { %v1662_v48 = vrot.slane %v5460_v29, 7  ;;  %v1663_v8 = vperm.slane %v5460_v29, 0  ;;  %v2248_v38 = vmul.f32 %v1639_v16, %v5460_v29  ;;  %v1656_v35 = vrot.slane %v5460_v29, 1 }
 0x2ae   : > { %v5485_v13 = vperm.slane %v1658_v17, 0  ;;  %v5487_v32 = vperm.slane %v1659_v60, 0  ;;  %v5489_v49 = vperm.slane %v1660_v58, 0  ;;  %v5491_v62 = vperm.slane %v1661_v2, 0  ;;  %v7377_v58 = vld [vmem:[#allocation9_spill] sm:$0xff] }
 0x2af   : > { %v5493_v11 = vperm.slane %v1662_v48, 0  ;;  %v2249_v57 = vpack.c.bf16 %v2248_v38, %v2248_v38  ;;  %v1626_v34 = vpop.f32.mrf.mxu0  ;;  %v1679_v46 = vmul.f32 %v1663_v8, %v5215_v25  ;;  %v1680_v63 = vmul.f32 %v1663_v8, %v5219_v15  ;;  %3960 = vmatmul.msk.bf16.gmra.mxu1 %vm573_vm0, %v7377_v58 }
 0x2b0   : > { %v1681_v16 = vmul.f32 %v1663_v8, %v5223_v44  ;;  %v1682_v6 = vmul.f32 %v1663_v8, %v5227_v50  ;;  %v1683_v17 = vmul.f32 %v1663_v8, %v5231_v52  ;;  %v1684_v60 = vmul.f32 %v1663_v8, %v5235_v39 }
 0x2b1   : > { %7376 = vst [vmem:[#allocation60_spill] sm:$0xff] %v5493_v11  ;;  %4040 = vmatmul.msk.bf16.vlgmr.msrb.gmra.mxu2 %vm573_vm0, %v2249_v57  ;;  %v1743_v48 = vpack.c.bf16 %v1679_v46, %v1679_v46  ;;  %v1744_v38 = vpack.c.bf16 %v1680_v63, %v1680_v63  ;;  %v1685_v34 = vmul.f32 %v1663_v8, %v5239_v53 }
 0x2b2   : > { %v1686_v25 = vmul.f32 %v1663_v8, %v5243_v61  ;;  %v1745_v15 = vpack.c.bf16 %v1681_v16, %v1681_v16  ;;  %v1746_v2 = vpack.c.bf16 %v1682_v6, %v1682_v6  ;;  %v1747_v44 = vpack.c.bf16 %v1683_v17, %v1683_v17 }
 0x2b3   : > { %v1748_v11 = vpack.c.bf16 %v1684_v60, %v1684_v60  ;;  %v1875_v50 = vunpack.c.l.b16 %v1743_v48  ;;  %v1876_v3 = vunpack.c.l.b16 %v1744_v38  ;;  %v1749_v52 = vpack.c.bf16 %v1685_v34, %v1685_v34 }
 0x2b4   : > { %v1750_v9 = vpack.c.bf16 %v1686_v25, %v1686_v25  ;;  %v5506_v39 = vunpack.c.l.b16 %v1745_v15  ;;  %v5508_v37 = vunpack.c.l.b16 %v1746_v2  ;;  %v5510_v58 = vunpack.c.l.b16 %v1747_v44 }
 0x2b5   : > { %v5512_v46 = vunpack.c.l.b16 %v1748_v11  ;;  %v1939_v63 = vpack.c.b16 %v1876_v3, %v1875_v50  ;;  %v5514_v53 = vunpack.c.l.b16 %v1749_v52  ;;  %v1664_v6 = vperm.slane %v1656_v35, 0 }
 0x2b6   : > { %v5516_v61 = vunpack.c.l.b16 %v1750_v9  ;;  %v1940_v57 = vpack.c.b16 %v5508_v37, %v5506_v39  ;;  %v1657_v16 = vrot.slane %v5460_v29, 2  ;;  %v1703_v17 = vmul.f32 %v5485_v13, %v5313_v27  ;;  %v7382_v37 = vld [vmem:[#allocation28_spill] sm:$0xff] }
 0x2b7   : > { %v1941_v8 = vpack.c.b16 %v5512_v46, %v5510_v58  ;;  %4008 = vmatmul.msk.bf16.vlgmr.msrb.gmra.mxu3 %vm573_vm0, %v1939_v63  ;;  %v1687_v9 = vmul.f32 %v1664_v6, %v5247_v12  ;;  %v1688_v11 = vmul.f32 %v1664_v6, %v5251_v21  ;;  %v1689_v35 = vmul.f32 %v1664_v6, %v5255_v31 }
 0x2b8   : > { %v1690_v60 = vmul.f32 %v1664_v6, %v5259_v42  ;;  %v1691_v48 = vmul.f32 %v1664_v6, %v5263_v59  ;;  %v1692_v29 = vmul.f32 %v1664_v6, %v5267_v10  ;;  %v1693_v38 = vmul.f32 %v1664_v6, %v5271_v24 }
 0x2b9   : > { %v1751_v27 = vpack.c.bf16 %v1687_v9, %v1687_v9  ;;  %v1752_v34 = vpack.c.bf16 %v1688_v11, %v1688_v11  ;;  %v1753_v25 = vpack.c.bf16 %v1689_v35, %v1689_v35  ;;  %v1694_v15 = vmul.f32 %v1664_v6, %v5275_v36  ;;  %v7398_v35 = vld [vmem:[#allocation60_spill] sm:$0xff] }
 0x2ba   : > { %v1754_v2 = vpack.c.bf16 %v1690_v60, %v1690_v60  ;;  %v1755_v44 = vpack.c.bf16 %v1691_v48, %v1691_v48  ;;  %v1756_v12 = vpack.c.bf16 %v1692_v29, %v1692_v29  ;;  %v1757_v50 = vpack.c.bf16 %v1693_v38, %v1693_v38 }
 0x2bb   : > { %v5536_v21 = vunpack.c.l.b16 %v1751_v27  ;;  %v5538_v31 = vunpack.c.l.b16 %v1752_v34  ;;  %v5540_v42 = vunpack.c.l.b16 %v1753_v25  ;;  %v1758_v59 = vpack.c.bf16 %v1694_v15, %v1694_v15 }
 0x2bc   : > { %v5542_v52 = vunpack.c.l.b16 %v1754_v2  ;;  %v5544_v10 = vunpack.c.l.b16 %v1755_v44  ;;  %v5546_v24 = vunpack.c.l.b16 %v1756_v12  ;;  %v5548_v63 = vunpack.c.l.b16 %v1757_v50  ;;  %v7378_v2 = vld [vmem:[#allocation10_spill] sm:$0xff] }
 0x2bd   : > { %v5552_v6 = vunpack.c.l.b16 %v1758_v59  ;;  %v1665_v9 = vperm.slane %v1657_v16, 0  ;;  %v1704_v11 = vmul.f32 %v5485_v13, %v5317_v55  ;;  %v1767_v48 = vpack.c.bf16 %v1703_v17, %v1703_v17 }
 0x2be   : > { %v1705_v29 = vmul.f32 %v5485_v13, %v5321_v4  ;;  %v1710_v39 = vmul.f32 %v5485_v13, %v7382_v37  ;;  %v7384_v37 = vld [vmem:[#allocation31_spill] sm:$0xff] }
 0x2bf   : > { %v1695_v27 = vmul.f32 %v1665_v9, %v5279_v56  ;;  %v1696_v16 = vmul.f32 %v1665_v9, %v5283_v14  ;;  %v1697_v34 = vmul.f32 %v1665_v9, %v5287_v28  ;;  %v1698_v55 = vmul.f32 %v1665_v9, %v5291_v33  ;;  %3961 = vmatmul.msk.bf16.gmra.mxu1 %vm573_vm0, %v7378_v2 }
 0x2c0   : > { %v1699_v25 = vmul.f32 %v1665_v9, %v5295_v18  ;;  %v1700_v15 = vmul.f32 %v1665_v9, %v5299_v43  ;;  %v1701_v17 = vmul.f32 %v1665_v9, %v5303_v7  ;;  %v1702_v56 = vmul.f32 %v1665_v9, %v5309_v19  ;;  %v7397_v19 = vld [vmem:[#allocation46_spill] sm:$0xff] }
 0x2c1   : > { %v1759_v4 = vpack.c.bf16 %v1695_v27, %v1695_v27  ;;  %v1760_v44 = vpack.c.bf16 %v1696_v16, %v1696_v16  ;;  %v1761_v12 = vpack.c.bf16 %v1697_v34, %v1697_v34  ;;  %v1762_v50 = vpack.c.bf16 %v1698_v55, %v1698_v55 }
 0x2c2   : > { %v1763_v14 = vpack.c.bf16 %v1699_v25, %v1699_v25  ;;  %v1764_v59 = vpack.c.bf16 %v1700_v15, %v1700_v15  ;;  %v1765_v28 = vpack.c.bf16 %v1701_v17, %v1701_v17  ;;  %v1766_v43 = vpack.c.bf16 %v1702_v56, %v1702_v56  ;;  %v7387_v15 = vld [vmem:[#allocation11_spill] sm:$0xff] }
 0x2c3   : > { %v5574_v38 = vunpack.c.l.b16 %v1759_v4  ;;  %v5576_v33 = vunpack.c.l.b16 %v1760_v44  ;;  %v5578_v18 = vunpack.c.l.b16 %v1761_v12  ;;  %v5580_v7 = vunpack.c.l.b16 %v1762_v50  ;;  %v7379_v4 = vld [vmem:[#allocation25_spill] sm:$0xff]  ;;  %v7380_v12 = vld [vmem:[#allocation27_spill] sm:$0xff] }
 0x2c4   : > { %v5582_v60 = vunpack.c.l.b16 %v1763_v14  ;;  %v5584_v27 = vunpack.c.l.b16 %v1764_v59  ;;  %v5586_v16 = vunpack.c.l.b16 %v1765_v28  ;;  %v5590_v9 = vunpack.c.l.b16 %v1766_v43  ;;  %v7383_v43 = vld [vmem:[#allocation30_spill] sm:$0xff] }
 0x2c5   : > { %v1768_v34 = vpack.c.bf16 %v1704_v11, %v1704_v11  ;;  %v5592_v55 = vunpack.c.l.b16 %v1767_v48  ;;  %v1706_v17 = vmul.f32 %v5485_v13, %v5325_v41  ;;  %v1769_v2 = vpack.c.bf16 %v1705_v29, %v1705_v29  ;;  %v7381_v41 = vld [vmem:[#allocation8_spill] sm:$0xff] }
 0x2c6   : > { %v1707_v44 = vmul.f32 %v5485_v13, %v7379_v4  ;;  %v1708_v56 = vmul.f32 %v5485_v13, %v7380_v12  ;;  %v1709_v29 = vmul.f32 %v5485_v13, %v7381_v41 }
 0x2c7   : > { %4009 = vmatmul.msk.bf16.gmra.mxu3 %vm573_vm0, %v1940_v57  ;;  %v5606_v48 = vunpack.c.l.b16 %v1768_v34  ;;  %v1770_v50 = vpack.c.bf16 %v1706_v17, %v1706_v17  ;;  %v5612_v14 = vunpack.c.l.b16 %v1769_v2  ;;  %v1711_v34 = vmul.f32 %v5487_v32, %v7383_v43 }
 0x2c8   : > { %v1771_v59 = vpack.c.bf16 %v1707_v44, %v1707_v44  ;;  %v1772_v28 = vpack.c.bf16 %v1708_v56, %v1708_v56  ;;  %v1773_v12 = vpack.c.bf16 %v1709_v29, %v1709_v29  ;;  %v1774_v17 = vpack.c.bf16 %v1710_v39, %v1710_v39 }
 0x2c9   : > { %v5622_v4 = vunpack.c.l.b16 %v1770_v50  ;;  %v1712_v2 = vmul.f32 %v5487_v32, %v5349_v22  ;;  %v1775_v13 = vpack.c.bf16 %v1711_v34, %v1711_v34  ;;  %v1713_v57 = vmul.f32 %v5487_v32, %v7384_v37 }
 0x2ca   : > { %v5626_v11 = vunpack.c.l.b16 %v1771_v59  ;;  %v5628_v41 = vunpack.c.l.b16 %v1772_v28  ;;  %v5634_v56 = vunpack.c.l.b16 %v1773_v12  ;;  %v5636_v50 = vunpack.c.l.b16 %v1774_v17  ;;  %v7385_v59 = vld [vmem:[#allocation33_spill] sm:$0xff] }
 0x2cb   : > { %v1776_v29 = vpack.c.bf16 %v1712_v2, %v1712_v2  ;;  %v5640_v22 = vunpack.c.l.b16 %v1775_v13  ;;  %v1714_v28 = vmul.f32 %v5487_v32, %v7385_v59  ;;  %v1777_v43 = vpack.c.bf16 %v1713_v57, %v1713_v57  ;;  %v7386_v13 = vld [vmem:[#allocation34_spill] sm:$0xff]  ;;  %v7396_v59 = vld [vmem:[#allocation45_spill] sm:$0xff] }
 0x2cc   : > { %v1715_v12 = vmul.f32 %v5487_v32, %v5361_v1  ;;  %v1716_v17 = vmul.f32 %v5487_v32, %v5365_v5  ;;  %v1717_v39 = vmul.f32 %v5487_v32, %v7386_v13  ;;  %v1718_v57 = vmul.f32 %v5487_v32, %v5376_v40 }
 0x2cd   : > { %v5646_v37 = vunpack.c.l.b16 %v1776_v29  ;;  %v1778_v2 = vpack.c.bf16 %v1714_v28, %v1714_v28  ;;  %v5652_v44 = vunpack.c.l.b16 %v1777_v43  ;;  %v1719_v1 = vmul.f32 %v5489_v49, %v5380_v30 }
 0x2ce   : > { %v1779_v29 = vpack.c.bf16 %v1715_v12, %v1715_v12  ;;  %v1780_v34 = vpack.c.bf16 %v1716_v17, %v1716_v17  ;;  %v1781_v28 = vpack.c.bf16 %v1717_v39, %v1717_v39  ;;  %v1782_v43 = vpack.c.bf16 %v1718_v57, %v1718_v57 }
 0x2cf   : > { %3962 = vmatmul.msk.bf16.gmra.mxu1 %vm573_vm0, %v7387_v15  ;;  %v5664_v5 = vunpack.c.l.b16 %v1778_v2  ;;  %v1720_v13 = vmul.f32 %v5489_v49, %v5384_v23  ;;  %v1783_v32 = vpack.c.bf16 %v1719_v1, %v1719_v1  ;;  %v1721_v12 = vmul.f32 %v5489_v49, %v5388_v51 }
 0x2d0   : > { %v5668_v25 = vunpack.c.l.b16 %v1779_v29  ;;  %v5670_v40 = vunpack.c.l.b16 %v1780_v34  ;;  %v5676_v17 = vunpack.c.l.b16 %v1781_v28  ;;  %v5678_v15 = vunpack.c.l.b16 %v1782_v43  ;;  %v7388_v28 = vld [vmem:[#allocation36_spill] sm:$0xff] }
 0x2d1   : > { %v1784_v39 = vpack.c.bf16 %v1720_v13, %v1720_v13  ;;  %v5682_v23 = vunpack.c.l.b16 %v1783_v32  ;;  %v1722_v34 = vmul.f32 %v5489_v49, %v5392_v45  ;;  %v1785_v57 = vpack.c.bf16 %v1721_v12, %v1721_v12 }
 0x2d2   : > { %v1723_v1 = vmul.f32 %v5489_v49, %v5396_v20  ;;  %v1724_v43 = vmul.f32 %v5489_v49, %v7388_v28  ;;  %v1725_v32 = vmul.f32 %v5489_v49, %v5404_v54  ;;  %v1726_v45 = vmul.f32 %v5489_v49, %v5408_v0  ;;  %v7389_v28 = vld [vmem:[#allocation37_spill] sm:$0xff] }
 0x2d3   : > { %v5688_v29 = vunpack.c.l.b16 %v1784_v39  ;;  %v1786_v13 = vpack.c.bf16 %v1722_v34, %v1722_v34  ;;  %v5694_v30 = vunpack.c.l.b16 %v1785_v57  ;;  %v1727_v34 = vmul.f32 %v5491_v62, %v7389_v28 }
 0x2d4   : > { %v1787_v12 = vpack.c.bf16 %v1723_v1, %v1723_v1  ;;  %v1788_v39 = vpack.c.bf16 %v1724_v43, %v1724_v43  ;;  %v1789_v51 = vpack.c.bf16 %v1725_v32, %v1725_v32  ;;  %v1790_v54 = vpack.c.bf16 %v1726_v45, %v1726_v45  ;;  %v7392_v1 = vld [vmem:[#allocation40_spill] sm:$0xff] }
 0x2d5   : > { %v5708_v57 = vunpack.c.l.b16 %v1786_v13  ;;  %v1728_v0 = vmul.f32 %v5491_v62, %v5416_v26  ;;  %v1791_v46 = vpack.c.bf16 %v1727_v34, %v1727_v34 }
 0x2d6   : > { %v5712_v49 = vunpack.c.l.b16 %v1787_v12  ;;  %v5714_v58 = vunpack.c.l.b16 %v1788_v39  ;;  %v5720_v43 = vunpack.c.l.b16 %v1789_v51  ;;  %v5722_v13 = vunpack.c.l.b16 %v1790_v54  ;;  %v7391_v12 = vld [vmem:[#allocation39_spill] sm:$0xff]  ;;  %v7393_v54 = vld [vmem:[#allocation42_spill] sm:$0xff] }
 0x2d7   : > { %4010 = vmatmul.msk.bf16.gmra.mxu3 %vm573_vm0, %v1941_v8  ;;  %v1729_v8 = vmul.f32 %v5491_v62, %v5420_v47  ;;  %v1792_v32 = vpack.c.bf16 %v1728_v0, %v1728_v0  ;;  %v5726_v26 = vunpack.c.l.b16 %v1791_v46  ;;  %v1730_v39 = vmul.f32 %v5491_v62, %v7391_v12  ;;  %v7395_v46 = vld [vmem:[#allocation43_spill] sm:$0xff] }
 0x2d8   : > { %7390 = vst [vmem:[#allocation9_spill] sm:$0xff] %v5720_v43  ;;  %v1731_v51 = vmul.f32 %v5491_v62, %v7392_v1  ;;  %v1732_v0 = vmul.f32 %v5491_v62, %v7393_v54  ;;  %v1733_v45 = vmul.f32 %v5491_v62, %v7395_v46  ;;  %v1735_v1 = vmul.f32 %v7398_v35, %v7397_v19  ;;  %v7407_v19 = vld [vmem:[#allocation52_spill] sm:$0xff] }
 0x2d9   : > { %v1793_v28 = vpack.c.bf16 %v1729_v8, %v1729_v8  ;;  %v5732_v34 = vunpack.c.l.b16 %v1792_v32  ;;  %v1794_v20 = vpack.c.bf16 %v1730_v39, %v1730_v39  ;;  %v1734_v8 = vmul.f32 %v5491_v62, %v7396_v59  ;;  %v7402_v59 = vld [vmem:[#allocation49_spill] sm:$0xff] }
 0x2da   : > { %v1795_v32 = vpack.c.bf16 %v1731_v51, %v1731_v51  ;;  %v1796_v47 = vpack.c.bf16 %v1732_v0, %v1732_v0  ;;  %v1797_v54 = vpack.c.bf16 %v1733_v45, %v1733_v45  ;;  %v1799_v62 = vpack.c.bf16 %v1735_v1, %v1735_v1  ;;  %v7403_v51 = vld [vmem:[#allocation12_spill] sm:$0xff] }
 0x2db   : > { %v5738_v2 = vunpack.c.l.b16 %v1793_v28  ;;  %v5748_v36 = vunpack.c.l.b16 %v1794_v20  ;;  %v1798_v39 = vpack.c.bf16 %v1734_v8, %v1734_v8  ;;  %v7400_v28 = vld [vmem:[#allocation48_spill] sm:$0xff]  ;;  %v1737_v12 = vmul.f32 %v7398_v35, %v7402_v59 }
 0x2dc   : > { %v1736_v3 = vmul.f32 %v7398_v35, %v7400_v28  ;;  %v5752_v43 = vunpack.c.l.b16 %v1795_v32  ;;  %v5754_v46 = vunpack.c.l.b16 %v1796_v47  ;;  %v5762_v20 = vunpack.c.l.b16 %v1797_v54  ;;  %v7406_v32 = vld [vmem:[#allocation51_spill] sm:$0xff] }
 0x2dd   : > { %7394 = vst [vmem:[#allocation10_spill] sm:$0xff] %v5738_v2  ;;  %v5764_v45 = vunpack.c.l.b16 %v1798_v39  ;;  %v5768_v47 = vunpack.c.l.b16 %v1799_v62  ;;  %v1738_v1 = vmul.f32 %v7398_v35, %v7406_v32  ;;  %v1801_v28 = vpack.c.bf16 %v1737_v12, %v1737_v12  ;;  %v7408_v39 = vld [vmem:[#allocation54_spill] sm:$0xff] }
 0x2de   : > { %7399 = vst [vmem:[#allocation25_spill] sm:$0xff] %v5748_v36  ;;  %v1800_v0 = vpack.c.bf16 %v1736_v3, %v1736_v3  ;;  %v1739_v54 = vmul.f32 %v7398_v35, %v7407_v19  ;;  %v1740_v3 = vmul.f32 %v7398_v35, %v7408_v39  ;;  %v7409_v62 = vld [vmem:[#allocation58_spill] sm:$0xff] }
 0x2df   : > { %7401 = vst [vmem:[#allocation27_spill] sm:$0xff] %v5752_v43  ;;  %3963 = vmatmul.msk.bf16.gmra.mxu1 %vm573_vm0, %v7403_v51  ;;  %v1802_v2 = vpack.c.bf16 %v1738_v1, %v1738_v1  ;;  %v5780_v36 = vunpack.c.l.b16 %v1801_v28  ;;  %v1741_v8 = vmul.f32 %v7398_v35, %v7409_v62  ;;  %v7410_v43 = vld [vmem:[#allocation59_spill] sm:$0xff]  ;;  %v7411_v1 = vpack.c.b16 %v5516_v61, %v5514_v53  ;;  %v7412_v53 = vld [vmem:[#allocation13_spill] sm:$0xff] }
 0x2e0   : > { %7404 = vst [vmem:[#allocation8_spill] sm:$0xff] %v5762_v20  ;;  %v5774_v51 = vunpack.c.l.b16 %v1800_v0  ;;  %v1742_v12 = vmul.f32 %v7398_v35, %v7410_v43  ;;  %v1803_v0 = vpack.c.bf16 %v1739_v54, %v1739_v54  ;;  %v1804_v59 = vpack.c.bf16 %v1740_v3, %v1740_v3  ;;  %v5816_v3 = vpop.f32.mrf.mxu2 }
 0x2e1   : > { %7405 = vst [vmem:[#allocation28_spill] sm:$0xff] %v5764_v45  ;;  %v5788_v20 = vunpack.c.l.b16 %v1802_v2  ;;  %v1805_v19 = vpack.c.bf16 %v1741_v8, %v1741_v8  ;;  %v7413_v61 = vpack.c.b16 %v5538_v31, %v5536_v21  ;;  %v7419_v21 = vld [vmem:[#allocation16_spill] sm:$0xff]  ;;  %v7420_v31 = vpack.c.b16 %v5552_v6, %v5548_v63 }
 0x2e2   : > { %v1806_v45 = vpack.c.bf16 %v1742_v12, %v1742_v12  ;;  %v5794_v28 = vunpack.c.l.b16 %v1803_v0  ;;  %v5796_v39 = vunpack.c.l.b16 %v1804_v59  ;;  %v7414_v59 = vld [vmem:[#allocation14_spill] sm:$0xff]  ;;  %7415 = vst [vmem:[#allocation30_spill] sm:$0xff] %v5816_v3  ;;  %v7417_v12 = vld [vmem:[#allocation15_spill] sm:$0xff]  ;;  %v7418_v0 = vpack.c.b16 %v5546_v24, %v5544_v10 }
 0x2e3   : > { %v5800_v43 = vunpack.c.l.b16 %v1805_v19  ;;  %v7422_v19 = vpack.c.b16 %v5576_v33, %v5574_v38 }
 0x2e4   : > { %v5802_v54 = vunpack.c.l.b16 %v1806_v45  ;;  %v7416_v45 = vpack.c.b16 %v5542_v52, %v5540_v42  ;;  %v7421_v42 = vld [vmem:[#allocation17_spill] sm:$0xff] }
 0x2e7   : > { %4011 = vmatmul.msk.bf16.gmra.mxu3 %vm573_vm0, %v7411_v1 }
 0x2e8   : > { %v1653_v62 = vpop.f32.mrf.mxu2 }
 0x2ef   : > { %3964 = vmatmul.msk.bf16.gmra.mxu1 %vm573_vm0, %v7412_v53  ;;  %v7423_v53 = vpack.c.b16 %v5580_v7, %v5578_v18 }
 0x2f7   : > { %4012 = vmatmul.msk.bf16.gmra.mxu3 %vm573_vm0, %v7413_v61 }
 0x2ff   : > { %3965 = vmatmul.msk.bf16.gmra.mxu1 %vm573_vm0, %v7414_v59 }
 0x307   : > { %4013 = vmatmul.msk.bf16.gmra.mxu3 %vm573_vm0, %v7416_v45 }
 0x30f   : > { %3966 = vmatmul.msk.bf16.gmra.mxu1 %vm573_vm0, %v7417_v12 }
 0x317   : > { %4014 = vmatmul.msk.bf16.gmra.mxu3 %vm573_vm0, %v7418_v0  ;;  %v7424_v0 = vpack.c.b16 %v5584_v27, %v5582_v60 }
 0x31f   : > { %3967 = vmatmul.msk.bf16.gmra.mxu1 %vm573_vm0, %v7419_v21 }
 0x327   : > { %4015 = vmatmul.msk.bf16.gmra.mxu3 %vm573_vm0, %v7420_v31 }
 0x32f   : > { %3968 = vmatmul.msk.bf16.gmra.mxu1 %vm573_vm0, %v7421_v42 }
 0x334   : > { %v5836_v52 = vpop.f32.mrf.mxu2 }
 0x337   : > { %4016 = vmatmul.msk.bf16.gmra.mxu3 %vm573_vm0, %v7422_v19 }
 0x33a   : > { %v2088_v10 = vpop.f32.mrf.mxu3 }
 0x33b   : > { %v2267_v61 = vsel %vm2266_vm9, %v2088_v10, -inf }
 0x33c   : > { %v2264_v24 = vpop.f32.mrf.mxu2 }
 0x33d   : > { %v7425_v24 = vpack.c.b16 %v5590_v9, %v5586_v16 }
 0x342   : > { %v2090_v1 = vpop.f32.mrf.mxu3 }
 0x343   : > { %v2268_v6 = vsel %vm2266_vm9, %v2090_v1, -inf }
 0x344   : > { %v2269_v45 = vmax.f32 %v2267_v61, %v2268_v6 }
 0x347   : > { %4017 = vmatmul.msk.bf16.gmra.mxu3 %vm573_vm0, %v7423_v53 }
 0x34a   : > { %v2093_v63 = vpop.f32.mrf.mxu3 }
 0x34b   : > { %v2270_v59 = vsel %vm2266_vm9, %v2093_v63, -inf }
 0x34c   : > { %v2271_v38 = vmax.f32 %v2269_v45, %v2270_v59 }
 0x352   : > { %v2095_v33 = vpop.f32.mrf.mxu3 }
 0x353   : > { %v2272_v62 = vsel %vm2266_vm9, %v2095_v33, -inf }
 0x354   : > { %v2273_v12 = vmax.f32 %v2271_v38, %v2272_v62  ;;  %v7426_v38 = vpack.c.b16 %v5606_v48, %v5592_v55 }
 0x357   : > { %4018 = vmatmul.msk.bf16.gmra.mxu3 %vm573_vm0, %v7424_v0 }
 0x35a   : > { %v2098_v18 = vpop.f32.mrf.mxu3 }
 0x35b   : > { %v2274_v7 = vsel %vm2266_vm9, %v2098_v18, -inf }
 0x35c   : > { %v2275_v21 = vmax.f32 %v2273_v12, %v2274_v7 }
 0x362   : > { %v2100_v31 = vpop.f32.mrf.mxu3 }
 0x363   : > { %v2276_v42 = vsel %vm2266_vm9, %v2100_v31, -inf }
 0x364   : > { %v2277_v19 = vmax.f32 %v2275_v21, %v2276_v42 }
 0x367   : > { %4019 = vmatmul.msk.bf16.gmra.mxu3 %vm573_vm0, %v7425_v24 }
 0x36a   : > { %v5860_v53 = vpop.f32.mrf.mxu3 }
 0x36b   : > { %v2278_v60 = vsel %vm2266_vm9, %v5860_v53, -inf }
 0x36c   : > { %v2279_v27 = vmax.f32 %v2277_v19, %v2278_v60 }
 0x372   : > { %v5864_v6 = vpop.f32.mrf.mxu3 }
 0x373   : > { %v2280_v61 = vsel %vm2266_vm9, %v5864_v6, -inf }
 0x374   : > { %v2281_v59 = vmax.f32 %v2279_v27, %v2280_v61 }
 0x376   : > { %v2282_v45 = vrot.slane %v2281_v59, 4 }
 0x377   : > { %4020 = vmatmul.msk.bf16.gmra.mxu3 %vm573_vm0, %v7426_v38  ;;  %v7427_v38 = vpack.c.b16 %v5622_v4, %v5612_v14 }
 0x378   : > { %v2283_v16 = vmax.f32 %v2281_v59, %v2282_v45 }
 0x37a   : > { %v2284_v9 = vrot.slane %v2283_v16, 2  ;;  %v5872_v62 = vpop.f32.mrf.mxu3 }
 0x37b   : > { %v2288_v14 = vsel %vm2266_vm9, %v5872_v62, -inf }
 0x37c   : > { %v2285_v12 = vmax.f32 %v2283_v16, %v2284_v9 }
 0x37e   : > { %v2286_v0 = vrot.slane %v2285_v12, 1 }
 0x380   : > { %v2287_v7 = vmax.f32 %v2285_v12, %v2286_v0 }
 0x382   : > { %v5875_v21 = vmax.f32 %v2287_v7, %v5836_v52  ;;  %v5877_v42 = vpop.f32.mrf.mxu3 }
 0x383   : > { %v2289_v9 = vsel %vm2266_vm9, %v5877_v42, -inf }
 0x384   : > { %v5880_v19 = vperm.slane %v5875_v21, 0  ;;  %v2290_v0 = vmax.f32 %v2288_v14, %v2289_v9 }
 0x386   : > { %v2467_v24 = vsub.f32 %v2088_v10, %v5880_v19  ;;  %v2468_v55 = vsub.f32 %v2090_v1, %v5880_v19  ;;  %v2469_v48 = vsub.f32 %v2093_v63, %v5880_v19  ;;  %v2470_v60 = vsub.f32 %v2095_v33, %v5880_v19 }
 0x387   : > { %v2471_v27 = vsub.f32 %v2098_v18, %v5880_v19  ;;  %v2472_v61 = vsub.f32 %v2100_v31, %v5880_v19  ;;  %4021 = vmatmul.msk.bf16.gmra.mxu3 %vm573_vm0, %v7427_v38 }
 0x388   : > { %v2531_v10 = vmul.f32 1.442695, %v2467_v24  ;;  %v2533_v1 = vmul.f32 1.442695, %v2468_v55  ;;  %v2535_v63 = vmul.f32 1.442695, %v2469_v48 }
 0x389   : > { %v2537_v16 = vmul.f32 1.442695, %v2470_v60  ;;  %v2539_v18 = vmul.f32 1.442695, %v2471_v27  ;;  %v2541_v31 = vmul.f32 1.442695, %v2472_v61 }
 0x38a   : > { %4322 = vpow2.f32 %v2531_v10  ;;  %v5896_v33 = vpop.f32.mrf.mxu3 }
 0x38b   : > { %4324 = vpow2.f32 %v2533_v1  ;;  %v2291_v4 = vsel %vm2266_vm9, %v5896_v33, -inf }
 0x38c   : > { %4326 = vpow2.f32 %v2535_v63  ;;  %v2292_v60 = vmax.f32 %v2290_v0, %v2291_v4  ;;  %v7434_v4 = vpack.c.b16 %v5628_v41, %v5626_v11 }
 0x38d   : > { %4328 = vpow2.f32 %v2537_v16 }
 0x38e   : > { %4330 = vpow2.f32 %v2539_v18 }
 0x38f   : > { %4332 = vpow2.f32 %v2541_v31 }
 0x390   : > { %v5904_v12 = vpop.eup %4322 }
 0x391   : > { %7428 = vst [vmem:[#allocation31_spill] sm:$0xff] %v5904_v12  ;;  %v5906_v7 = vpop.eup %4324  ;;  %v2685_v24 = vsel %vm2266_vm9, %v5904_v12, 0.0 }
 0x392   : > { %7429 = vst [vmem:[#allocation33_spill] sm:$0xff] %v5906_v7  ;;  %v5910_v55 = vpop.eup %4326  ;;  %v2686_v48 = vsel %vm2266_vm9, %v5906_v7, 0.0  ;;  %v5914_v27 = vpop.f32.mrf.mxu3 }
 0x393   : > { %7430 = vst [vmem:[#allocation34_spill] sm:$0xff] %v5910_v55  ;;  %v5916_v61 = vpop.eup %4328  ;;  %v2687_v38 = vadd.f32 %v2686_v48, %v2685_v24  ;;  %v2293_v10 = vsel %vm2266_vm9, %v5914_v27, -inf  ;;  %v2688_v1 = vsel %vm2266_vm9, %v5910_v55, 0.0  ;;  %v2439_v55 = vrot.slane %v5836_v52, 4 }
 0x394   : > { %7431 = vst [vmem:[#allocation11_spill] sm:$0xff] %v5916_v61  ;;  %v2294_v63 = vmax.f32 %v2292_v60, %v2293_v10  ;;  %v5922_v16 = vpop.eup %4330  ;;  %v2690_v31 = vsel %vm2266_vm9, %v5916_v61, 0.0 }
 0x395   : > { %7432 = vst [vmem:[#allocation36_spill] sm:$0xff] %v5922_v16  ;;  %v2689_v18 = vadd.f32 %v2688_v1, %v2687_v38  ;;  %v5926_v9 = vpop.eup %4332  ;;  %v2692_v0 = vsel %vm2266_vm9, %v5922_v16, 0.0 }
 0x396   : > { %7433 = vst [vmem:[#allocation37_spill] sm:$0xff] %v5926_v9  ;;  %v2694_v48 = vsel %vm2266_vm9, %v5926_v9, 0.0  ;;  %v7453_v9 = vld [vmem:[#allocation28_spill] sm:$0xff] }
 0x397   : > { %v2691_v14 = vadd.f32 %v2690_v31, %v2689_v18  ;;  %4022 = vmatmul.msk.bf16.gmra.mxu3 %vm573_vm0, %v7434_v4  ;;  %v7436_v31 = vpack.c.b16 %v5636_v50, %v5634_v56 }
 0x399   : > { %v2693_v24 = vadd.f32 %v2692_v0, %v2691_v14 }
 0x39a   : > { %v5936_v60 = vpop.f32.mrf.mxu3 }
 0x39b   : > { %v5938_v38 = vadd.f32 %v2694_v48, %v2693_v24  ;;  %v2295_v10 = vsel %vm2266_vm9, %v5936_v60, -inf }
 0x39c   : > { %v2296_v1 = vmax.f32 %v2294_v63, %v2295_v10 }
 0x39d   : > { %7435 = vst [vmem:[#allocation39_spill] sm:$0xff] %v5938_v38 }
 0x3a2   : > { %v5942_v18 = vpop.f32.mrf.mxu3 }
 0x3a3   : > { %v2297_v11 = vsel %vm2266_vm9, %v5942_v18, -inf }
 0x3a4   : > { %v2298_v41 = vmax.f32 %v2296_v1, %v2297_v11  ;;  %v7437_v1 = vpack.c.b16 %v5646_v37, %v5640_v22 }
 0x3a7   : > { %4023 = vmatmul.msk.bf16.gmra.mxu3 %vm573_vm0, %v7436_v31 }
 0x3aa   : > { %v5950_v14 = vpop.f32.mrf.mxu3 }
 0x3ab   : > { %v2299_v4 = vsel %vm2266_vm9, %v5950_v14, -inf }
 0x3ac   : > { %v2300_v0 = vmax.f32 %v2298_v41, %v2299_v4  ;;  %v2436_v41 = vrot.slane %v5836_v52, 1 }
 0x3b2   : > { %v5954_v24 = vpop.f32.mrf.mxu3 }
 0x3b3   : > { %v2301_v63 = vsel %vm2266_vm9, %v5954_v24, -inf }
 0x3b4   : > { %v2302_v48 = vmax.f32 %v2300_v0, %v2301_v63 }
 0x3b6   : > { %v2303_v10 = vrot.slane %v2302_v48, 4 }
 0x3b7   : > { %4024 = vmatmul.msk.bf16.gmra.mxu3 %vm573_vm0, %v7437_v1 }
 0x3b8   : > { %v2304_v56 = vmax.f32 %v2302_v48, %v2303_v10  ;;  %v7438_v10 = vpack.c.b16 %v5664_v5, %v5652_v44 }
 0x3ba   : > { %v2305_v50 = vrot.slane %v2304_v56, 2  ;;  %v5962_v11 = vpop.f32.mrf.mxu3 }
 0x3bc   : > { %v2306_v31 = vmax.f32 %v2304_v56, %v2305_v50 }
 0x3be   : > { %v2307_v45 = vrot.slane %v2306_v31, 1 }
 0x3c0   : > { %v2308_v59 = vmax.f32 %v2306_v31, %v2307_v45  ;;  %v2309_v31 = vsel %vm2266_vm9, %v5962_v11, -inf }
 0x3c2   : > { %v2452_v4 = vmax.f32 %v2308_v59, %v2436_v41  ;;  %v5965_v8 = vpop.f32.mrf.mxu3 }
 0x3c3   : > { %v2310_v50 = vsel %vm2266_vm9, %v5965_v8, -inf }
 0x3c4   : > { %v5967_v2 = vperm.slane %v2452_v4, 0  ;;  %v2667_v0 = vrot.slane %v2452_v4, 7  ;;  %v2311_v4 = vmax.f32 %v2309_v31, %v2310_v50 }
 0x3c6   : > { %v2668_v1 = vsel %vm1579_vm2, %v2667_v0, %v5875_v21  ;;  %v7439_v21 = vpack.c.b16 %v5670_v40, %v5668_v25 }
 0x3c7   : > { %4025 = vmatmul.msk.bf16.gmra.mxu3 %vm573_vm0, %v7438_v10 }
 0x3ca   : > { %v5987_v56 = vpop.f32.mrf.mxu3 }
 0x3cb   : > { %v2312_v41 = vsel %vm2266_vm9, %v5987_v56, -inf }
 0x3cc   : > { %v2313_v48 = vmax.f32 %v2311_v4, %v2312_v41 }
 0x3d2   : > { %v5995_v59 = vpop.f32.mrf.mxu3 }
 0x3d3   : > { %v2314_v44 = vsel %vm2266_vm9, %v5995_v59, -inf }
 0x3d4   : > { %v2315_v5 = vmax.f32 %v2313_v48, %v2314_v44  ;;  %v7440_v48 = vpack.c.b16 %v5678_v15, %v5676_v17 }
 0x3d7   : > { %4026 = vmatmul.msk.bf16.gmra.mxu3 %vm573_vm0, %v7439_v21 }
 0x3da   : > { %v6003_v0 = vpop.f32.mrf.mxu3 }
 0x3db   : > { %v2316_v10 = vsel %vm2266_vm9, %v6003_v0, -inf }
 0x3dc   : > { %v2317_v45 = vmax.f32 %v2315_v5, %v2316_v10 }
 0x3e2   : > { %v6007_v63 = vpop.f32.mrf.mxu3 }
 0x3e3   : > { %v2318_v50 = vsel %vm2266_vm9, %v6007_v63, -inf }
 0x3e4   : > { %v2319_v31 = vmax.f32 %v2317_v45, %v2318_v50  ;;  %v7441_v45 = vpack.c.b16 %v5688_v29, %v5682_v23  ;;  %v2438_v23 = vrot.slane %v5836_v52, 3 }
 0x3e7   : > { %4027 = vmatmul.msk.bf16.gmra.mxu3 %vm573_vm0, %v7440_v48 }
 0x3ea   : > { %v6015_v25 = vpop.f32.mrf.mxu3 }
 0x3eb   : > { %v2320_v40 = vsel %vm2266_vm9, %v6015_v25, -inf }
 0x3ec   : > { %v2321_v41 = vmax.f32 %v2319_v31, %v2320_v40  ;;  %v2437_v31 = vrot.slane %v5836_v52, 2 }
 0x3f2   : > { %v6019_v4 = vpop.f32.mrf.mxu3 }
 0x3f3   : > { %v2322_v44 = vsel %vm2266_vm9, %v6019_v4, -inf }
 0x3f4   : > { %v2323_v5 = vmax.f32 %v2321_v41, %v2322_v44 }
 0x3f6   : > { %v2324_v21 = vrot.slane %v2323_v5, 4 }
 0x3f7   : > { %4028 = vmatmul.msk.bf16.gmra.mxu3 %vm573_vm0, %v7441_v45  ;;  %v7442_v45 = vpack.c.b16 %v5708_v57, %v5694_v30 }
 0x3f8   : > { %v2325_v17 = vmax.f32 %v2323_v5, %v2324_v21 }
 0x3fa   : > { %v2326_v15 = vrot.slane %v2325_v17, 2  ;;  %v6027_v10 = vpop.f32.mrf.mxu3 }
 0x3fc   : > { %v2327_v50 = vmax.f32 %v2325_v17, %v2326_v15 }
 0x3fe   : > { %v2328_v48 = vrot.slane %v2327_v50, 1 }
 0x400   : > { %v2329_v37 = vmax.f32 %v2327_v50, %v2328_v48  ;;  %v2330_v48 = vsel %vm2266_vm9, %v6027_v10, -inf }
 0x402   : > { %v2453_v40 = vmax.f32 %v2329_v37, %v2437_v31  ;;  %v6030_v22 = vpop.f32.mrf.mxu3 }
 0x403   : > { %v2331_v50 = vsel %vm2266_vm9, %v6030_v22, -inf }
 0x404   : > { %v6032_v35 = vperm.slane %v2453_v40, 0  ;;  %v2669_v41 = vrot.slane %v2453_v40, 6  ;;  %v2332_v40 = vmax.f32 %v2330_v48, %v2331_v50 }
 0x406   : > { %v2670_v17 = vsel %vm1582_vm3, %v2669_v41, %v2668_v1  ;;  %v7443_v1 = vpack.c.b16 %v5714_v58, %v5712_v49 }
 0x407   : > { %4029 = vmatmul.msk.bf16.gmra.mxu3 %vm573_vm0, %v7442_v45 }
 0x40a   : > { %v6051_v15 = vpop.f32.mrf.mxu3 }
 0x40b   : > { %v2333_v31 = vsel %vm2266_vm9, %v6051_v15, -inf }
 0x40c   : > { %v2334_v21 = vmax.f32 %v2332_v40, %v2333_v31  ;;  %v7444_v31 = vld [vmem:[#allocation9_spill] sm:$0xff] }
 0x412   : > { %v6059_v37 = vpop.f32.mrf.mxu3 }
 0x413   : > { %v2335_v30 = vsel %vm2266_vm9, %v6059_v37, -inf }
 0x414   : > { %v2336_v57 = vmax.f32 %v2334_v21, %v2335_v30  ;;  %v7445_v21 = vpack.c.b16 %v5722_v13, %v7444_v31 }
 0x417   : > { %4030 = vmatmul.msk.bf16.gmra.mxu3 %vm573_vm0, %v7443_v1 }
 0x41a   : > { %v6067_v41 = vpop.f32.mrf.mxu3 }
 0x41b   : > { %v2337_v45 = vsel %vm2266_vm9, %v6067_v41, -inf }
 0x41c   : > { %v2338_v5 = vmax.f32 %v2336_v57, %v2337_v45 }
 0x422   : > { %v6071_v44 = vpop.f32.mrf.mxu3 }
 0x423   : > { %v2339_v50 = vsel %vm2266_vm9, %v6071_v44, -inf }
 0x424   : > { %v2340_v48 = vmax.f32 %v2338_v5, %v2339_v50  ;;  %v7446_v5 = vpack.c.b16 %v5732_v34, %v5726_v26  ;;  %v7447_v34 = vld [vmem:[#allocation25_spill] sm:$0xff] }
 0x427   : > { %4031 = vmatmul.msk.bf16.gmra.mxu3 %vm573_vm0, %v7445_v21 }
 0x42a   : > { %v6079_v49 = vpop.f32.mrf.mxu3 }
 0x42b   : > { %v2341_v58 = vsel %vm2266_vm9, %v6079_v49, -inf }
 0x42c   : > { %v2342_v40 = vmax.f32 %v2340_v48, %v2341_v58 }
 0x432   : > { %v6083_v30 = vpop.f32.mrf.mxu3 }
 0x433   : > { %v2343_v57 = vsel %vm2266_vm9, %v6083_v30, -inf }
 0x434   : > { %v2344_v1 = vmax.f32 %v2342_v40, %v2343_v57  ;;  %v7448_v57 = vld [vmem:[#allocation10_spill] sm:$0xff] }
 0x436   : > { %v2345_v45 = vrot.slane %v2344_v1, 4 }
 0x437   : > { %4032 = vmatmul.msk.bf16.gmra.mxu3 %vm573_vm0, %v7446_v5 }
 0x438   : > { %v2346_v13 = vmax.f32 %v2344_v1, %v2345_v45  ;;  %v7449_v1 = vpack.c.b16 %v7447_v34, %v7448_v57 }
 0x43a   : > { %v2347_v50 = vrot.slane %v2346_v13, 2  ;;  %v6092_v48 = vpop.f32.mrf.mxu3 }
 0x43c   : > { %v2348_v31 = vmax.f32 %v2346_v13, %v2347_v50 }
 0x43e   : > { %v2349_v21 = vrot.slane %v2348_v31, 1 }
 0x440   : > { %v2350_v29 = vmax.f32 %v2348_v31, %v2349_v21 }
 0x442   : > { %v2454_v58 = vmax.f32 %v2350_v29, %v2438_v23  ;;  %v6113_v50 = vpop.f32.mrf.mxu3 }
 0x443   : > { %v2352_v21 = vsel %vm2266_vm9, %v6113_v50, -inf }
 0x444   : > { %v6094_v32 = vperm.slane %v2454_v58, 0  ;;  %v2671_v3 = vrot.slane %v2454_v58, 5  ;;  %v2351_v58 = vsel %vm2266_vm9, %v6092_v48, -inf }
 0x445   : > { %v2353_v57 = vmax.f32 %v2351_v58, %v2352_v21  ;;  %v7454_v21 = vld [vmem:[#allocation8_spill] sm:$0xff] }
 0x446   : > { %v2672_v13 = vsel %vm1585_vm4, %v2671_v3, %v2670_v17  ;;  %v7455_v58 = vpack.c.b16 %v7453_v9, %v7454_v21 }
 0x447   : > { %4033 = vmatmul.msk.bf16.gmra.mxu3 %vm573_vm0, %v7449_v1  ;;  %v7450_v1 = vld [vmem:[#allocation27_spill] sm:$0xff] }
 0x448   : > { %v7451_v29 = vpack.c.b16 %v5754_v46, %v7450_v1 }
 0x44a   : > { %v6115_v31 = vpop.f32.mrf.mxu3 }
 0x44b   : > { %v2354_v34 = vsel %vm2266_vm9, %v6115_v31, -inf }
 0x44c   : > { %v2355_v3 = vmax.f32 %v2353_v57, %v2354_v34 }
 0x452   : > { %v6127_v17 = vpop.f32.mrf.mxu3 }
 0x453   : > { %v2356_v5 = vsel %vm2266_vm9, %v6127_v17, -inf }
 0x454   : > { %v2357_v23 = vmax.f32 %v2355_v3, %v2356_v5 }
 0x457   : > { %4034 = vmatmul.msk.bf16.gmra.mxu3 %vm573_vm0, %v7451_v29 }
 0x45a   : > { %v6131_v45 = vpop.f32.mrf.mxu3 }
 0x45b   : > { %7452 = vst [vmem:[#allocation40_spill] sm:$0xff] %v6131_v45  ;;  %v2358_v26 = vsel %vm2266_vm9, %v6131_v45, -inf }
 0x45c   : > { %v2359_v40 = vmax.f32 %v2357_v23, %v2358_v26  ;;  %v7458_v26 = vpack.c.b16 %v5774_v51, %v5768_v47 }
 0x462   : > { %v6139_v46 = vpop.f32.mrf.mxu3 }
 0x463   : > { %7456 = vst [vmem:[#allocation42_spill] sm:$0xff] %v6139_v46  ;;  %v2360_v29 = vsel %vm2266_vm9, %v6139_v46, -inf  ;;  %v7469_v46 = vsub.f32 %v5864_v6, %v5880_v19  ;;  %v7472_v6 = vsub.f32 %v5936_v60, %v5967_v2  ;;  %v7474_v60 = vsub.f32 %v5950_v14, %v5967_v2 }
 0x464   : > { %v2361_v34 = vmax.f32 %v2359_v40, %v2360_v29 }
 0x467   : > { %4035 = vmatmul.msk.bf16.gmra.mxu3 %vm573_vm0, %v7455_v58 }
 0x46a   : > { %v6143_v57 = vpop.f32.mrf.mxu3 }
 0x46b   : > { %7457 = vst [vmem:[#allocation43_spill] sm:$0xff] %v6143_v57  ;;  %v2362_v5 = vsel %vm2266_vm9, %v6143_v57, -inf }
 0x46c   : > { %v2363_v1 = vmax.f32 %v2361_v34, %v2362_v5  ;;  %v7460_v34 = vpack.c.b16 %v5788_v20, %v5780_v36 }
 0x472   : > { %v6151_v9 = vpop.f32.mrf.mxu3 }
 0x473   : > { %7459 = vst [vmem:[#allocation45_spill] sm:$0xff] %v6151_v9  ;;  %v2364_v23 = vsel %vm2266_vm9, %v6151_v9, -inf }
 0x474   : > { %v2365_v3 = vmax.f32 %v2363_v1, %v2364_v23 }
 0x476   : > { %v2366_v21 = vrot.slane %v2365_v3, 4 }
 0x477   : > { %4036 = vmatmul.msk.bf16.gmra.mxu3 %vm573_vm0, %v7458_v26 }
 0x478   : > { %v2367_v58 = vmax.f32 %v2365_v3, %v2366_v21  ;;  %v7461_v21 = vpack.c.b16 %v5796_v39, %v5794_v28 }
 0x47a   : > { %v2368_v40 = vrot.slane %v2367_v58, 2  ;;  %v6160_v47 = vpop.f32.mrf.mxu3 }
 0x47c   : > { %v2369_v29 = vmax.f32 %v2367_v58, %v2368_v40 }
 0x47e   : > { %v2370_v16 = vrot.slane %v2369_v29, 1 }
 0x480   : > { %v2371_v61 = vmax.f32 %v2369_v29, %v2370_v16  ;;  %v2372_v29 = vsel %vm2266_vm9, %v6160_v47, -inf }
 0x482   : > { %v2455_v51 = vmax.f32 %v2371_v61, %v2439_v55  ;;  %v6177_v3 = vpop.f32.mrf.mxu3 }
 0x483   : > { %v2373_v40 = vsel %vm2266_vm9, %v6177_v3, -inf }
 0x484   : > { %v6162_v5 = vperm.slane %v2455_v51, 0  ;;  %v2673_v26 = vrot.slane %v2455_v51, 4  ;;  %v2374_v51 = vmax.f32 %v2372_v29, %v2373_v40 }
 0x486   : > { %v2674_v61 = vsel %vm1588_vm5, %v2673_v26, %v2672_v13 }
 0x487   : > { %4037 = vmatmul.msk.bf16.gmra.mxu3 %vm573_vm0, %v7460_v34 }
 0x48a   : > { %v6183_v58 = vpop.f32.mrf.mxu3 }
 0x48b   : > { %v2375_v34 = vsel %vm2266_vm9, %v6183_v58, -inf }
 0x48c   : > { %v2376_v13 = vmax.f32 %v2374_v51, %v2375_v34 }
 0x492   : > { %v6191_v26 = vpop.f32.mrf.mxu3 }
 0x493   : > { %v2377_v28 = vsel %vm2266_vm9, %v6191_v26, -inf }
 0x494   : > { %v2378_v39 = vmax.f32 %v2376_v13, %v2377_v28 }
 0x497   : > { %4038 = vmatmul.msk.bf16.gmra.mxu3 %vm573_vm0, %v7461_v21  ;;  %v7462_v21 = vpack.c.b16 %v5802_v54, %v5800_v43 }
 0x49a   : > { %v6199_v55 = vpop.f32.mrf.mxu3 }
 0x49b   : > { %7463 = vst [vmem:[#allocation46_spill] sm:$0xff] %v6199_v55  ;;  %v2379_v20 = vsel %vm2266_vm9, %v6199_v55, -inf  ;;  %v2545_v55 = vmul.f32 1.442695, %v7469_v46  ;;  %v2483_v46 = vsub.f32 %v5962_v11, %v6032_v35 }
 0x49c   : > { %v2380_v36 = vmax.f32 %v2378_v39, %v2379_v20 }
 0x4a2   : > { %v6203_v16 = vpop.f32.mrf.mxu3 }
 0x4a3   : > { %7464 = vst [vmem:[#allocation60_spill] sm:$0xff] %v6203_v16  ;;  %v2381_v40 = vsel %vm2266_vm9, %v6203_v16, -inf }
 0x4a4   : > { %v2382_v29 = vmax.f32 %v2380_v36, %v2381_v40  ;;  %v2440_v40 = vrot.slane %v5836_v52, 5 }
 0x4a7   : > { %4039 = vmatmul.msk.bf16.gmra.mxu3 %vm573_vm0, %v7462_v21 }
 0x4aa   : > { %v6207_v34 = vpop.f32.mrf.mxu3 }
 0x4ab   : > { %7465 = vst [vmem:[#allocation48_spill] sm:$0xff] %v6207_v34  ;;  %v2383_v51 = vsel %vm2266_vm9, %v6207_v34, -inf }
 0x4ac   : > { %v2384_v43 = vmax.f32 %v2382_v29, %v2383_v51 }
 0x4b2   : > { %v6211_v54 = vpop.f32.mrf.mxu3 }
 0x4b3   : > { %7466 = vst [vmem:[#allocation49_spill] sm:$0xff] %v6211_v54  ;;  %v2385_v13 = vsel %vm2266_vm9, %v6211_v54, -inf }
 0x4b4   : > { %v2386_v28 = vmax.f32 %v2384_v43, %v2385_v13 }
 0x4b6   : > { %v2387_v21 = vrot.slane %v2386_v28, 4 }
 0x4b8   : > { %v2388_v20 = vmax.f32 %v2386_v28, %v2387_v21 }
 0x4ba   : > { %v2389_v39 = vrot.slane %v2388_v20, 2  ;;  %v6215_v7 = vpop.f32.mrf.mxu3 }
 0x4bc   : > { %v2390_v23 = vmax.f32 %v2388_v20, %v2389_v39 }
 0x4be   : > { %v2391_v1 = vrot.slane %v2390_v23, 1 }
 0x4c0   : > { %v2392_v36 = vmax.f32 %v2390_v23, %v2391_v1 }
 0x4c2   : > { %v2456_v12 = vmax.f32 %v2392_v36, %v2440_v40  ;;  %v6232_v21 = vpop.f32.mrf.mxu3  ;;  %v2393_v36 = vsel %vm2266_vm9, %v6215_v7, -inf }
 0x4c3   : > { %v2394_v39 = vsel %vm2266_vm9, %v6232_v21, -inf }
 0x4c4   : > { %v6218_v38 = vperm.slane %v2456_v12, 0  ;;  %v2675_v29 = vrot.slane %v2456_v12, 3  ;;  %v2395_v1 = vmax.f32 %v2393_v36, %v2394_v39 }
 0x4c6   : > { %v6235_v12 = vsel %vm1591_vm6, %v2675_v29, %v2674_v61 }
 0x4ca   : > { %v6237_v20 = vpop.f32.mrf.mxu3 }
 0x4cb   : > { %v2396_v40 = vsel %vm2266_vm9, %v6237_v20, -inf }
 0x4cc   : > { %v2397_v28 = vmax.f32 %v2395_v1, %v2396_v40 }
 0x4d2   : > { %v6245_v13 = vpop.f32.mrf.mxu3 }
 0x4d3   : > { %v2398_v23 = vsel %vm2266_vm9, %v6245_v13, -inf }
 0x4d4   : > { %v2399_v61 = vmax.f32 %v2397_v28, %v2398_v23 }
 0x4da   : > { %v6249_v29 = vpop.f32.mrf.mxu3 }
 0x4db   : > { %v2400_v43 = vsel %vm2266_vm9, %v6249_v29, -inf }
 0x4dc   : > { %v2401_v51 = vmax.f32 %v2399_v61, %v2400_v43  ;;  %v2475_v61 = vsub.f32 %v5872_v62, %v5967_v2  ;;  %v7470_v62 = vsub.f32 %v5896_v33, %v5967_v2  ;;  %v7473_v33 = vsub.f32 %v5942_v18, %v5967_v2 }
 0x4dd   : > { %v7475_v18 = vsub.f32 %v5954_v24, %v5967_v2  ;;  %v7487_v24 = vsub.f32 %v6067_v41, %v6094_v32 }
 0x4e2   : > { %v6253_v54 = vpop.f32.mrf.mxu3 }
 0x4e3   : > { %v2402_v9 = vsel %vm2266_vm9, %v6253_v54, -inf }
 0x4e4   : > { %v2403_v34 = vmax.f32 %v2401_v51, %v2402_v9  ;;  %v2476_v9 = vsub.f32 %v5877_v42, %v5967_v2  ;;  %v2551_v42 = vmul.f32 1.442695, %v7470_v62 }
 0x4ea   : > { %v6257_v39 = vpop.f32.mrf.mxu3 }
 0x4eb   : > { %v2404_v1 = vsel %vm2266_vm9, %v6257_v39, -inf }
 0x4ec   : > { %v2405_v36 = vmax.f32 %v2403_v34, %v2404_v1  ;;  %v7468_v34 = vsub.f32 %v5860_v53, %v5880_v19  ;;  %v2555_v19 = vmul.f32 1.442695, %v7472_v6 }
 0x4ee   : > { %v2543_v1 = vmul.f32 1.442695, %v7468_v34  ;;  %v2441_v34 = vrot.slane %v5836_v52, 6 }
 0x4f0   : > { %4334 = vpow2.f32 %v2543_v1  ;;  %v2561_v1 = vmul.f32 1.442695, %v7475_v18 }
 0x4f1   : > { %4336 = vpow2.f32 %v2545_v55  ;;  %v2557_v55 = vmul.f32 1.442695, %v7473_v33 }
 0x4f2   : > { %v6261_v40 = vpop.f32.mrf.mxu3 }
 0x4f3   : > { %v2406_v28 = vsel %vm2266_vm9, %v6261_v40, -inf }
 0x4f4   : > { %v2407_v23 = vmax.f32 %v2405_v36, %v2406_v28  ;;  %v2547_v28 = vmul.f32 1.442695, %v2475_v61  ;;  %v2559_v61 = vmul.f32 1.442695, %v7474_v60 }
 0x4f6   : > { %v2408_v57 = vrot.slane %v2407_v23, 4  ;;  %4338 = vpow2.f32 %v2547_v28 }
 0x4f8   : > { %v2409_v43 = vmax.f32 %v2407_v23, %v2408_v57  ;;  %v2549_v57 = vmul.f32 1.442695, %v2476_v9 }
 0x4fa   : > { %v2410_v51 = vrot.slane %v2409_v43, 2  ;;  %v6269_v16 = vpop.f32.mrf.mxu3  ;;  %4340 = vpow2.f32 %v2549_v57 }
 0x4fb   : > { %7467 = vst [vmem:[#allocation12_spill] sm:$0xff] %v6269_v16  ;;  %v7471_v16 = vsub.f32 %v5914_v27, %v5967_v2  ;;  %v2484_v27 = vsub.f32 %v5965_v8, %v6032_v35  ;;  %4342 = vpow2.f32 %v2551_v42  ;;  %v2563_v8 = vmul.f32 1.442695, %v2483_v46 }
 0x4fc   : > { %v2411_v36 = vmax.f32 %v2409_v43, %v2410_v51  ;;  %v6301_v51 = vpop.eup %4334  ;;  %v7477_v46 = vsub.f32 %v5995_v59, %v6032_v35 }
 0x4fd   : > { %v2553_v45 = vmul.f32 1.442695, %v7471_v16  ;;  %v2565_v28 = vmul.f32 1.442695, %v2484_v27  ;;  %v7478_v27 = vsub.f32 %v6003_v0, %v6032_v35 }
 0x4fe   : > { %v2412_v23 = vrot.slane %v2411_v36, 1  ;;  %v2569_v33 = vmul.f32 1.442695, %v7477_v46 }
 0x4ff   : > { %4344 = vpow2.f32 %v2553_v45 }
 0x500   : > { %v2413_v53 = vmax.f32 %v2411_v36, %v2412_v23  ;;  %4346 = vpow2.f32 %v2555_v19  ;;  %v6306_v36 = vpop.eup %4336 }
 0x501   : > { %4348 = vpow2.f32 %v2557_v55  ;;  %v6312_v57 = vpop.eup %4338 }
 0x502   : > { %v2457_v16 = vmax.f32 %v2413_v53, %v2441_v34  ;;  %v6294_v43 = vpop.f32.mrf.mxu3  ;;  %v6322_v42 = vpop.eup %4340  ;;  %4350 = vpow2.f32 %v2559_v61  ;;  %v7476_v53 = vsub.f32 %v5987_v56, %v6032_v35  ;;  %v2491_v56 = vsub.f32 %v6027_v10, %v6094_v32 }
 0x503   : > { %v6331_v19 = vpop.eup %4342  ;;  %4352 = vpow2.f32 %v2563_v8  ;;  %v7479_v61 = vsub.f32 %v6007_v63, %v6032_v35  ;;  %v2706_v0 = vsel %vm2266_vm9, %v6312_v57, 0.0  ;;  %v7480_v10 = vsub.f32 %v6015_v25, %v6032_v35 }
 0x504   : > { %v6299_v9 = vperm.slane %v2457_v16, 0  ;;  %v2677_v11 = vrot.slane %v2457_v16, 2  ;;  %v2567_v34 = vmul.f32 1.442695, %v7476_v53  ;;  %4354 = vpow2.f32 %v2565_v28 }
 0x505   : > { %v6336_v55 = vpop.eup %4344  ;;  %v2571_v16 = vmul.f32 1.442695, %v7478_v27  ;;  %4356 = vpow2.f32 %v2561_v1  ;;  %v2573_v59 = vmul.f32 1.442695, %v7479_v61  ;;  %v2575_v8 = vmul.f32 1.442695, %v7480_v10 }
 0x506   : > { %v6329_v6 = vsel %vm1594_vm7, %v2677_v11, %v6235_v12  ;;  %v6345_v12 = vpop.eup %4346  ;;  %v2492_v11 = vsub.f32 %v6030_v22, %v6094_v32  ;;  %4358 = vpow2.f32 %v2567_v34  ;;  %v2707_v1 = vsel %vm2266_vm9, %v6322_v42, 0.0 }
 0x507   : > { %v6352_v18 = vpop.eup %4348  ;;  %4360 = vpow2.f32 %v2569_v33  ;;  %v7481_v63 = vsub.f32 %v6019_v4, %v6032_v35  ;;  %v2499_v22 = vsub.f32 %v6092_v48, %v6162_v5  ;;  %v2579_v46 = vmul.f32 1.442695, %v2491_v56 }
 0x508   : > { %v6366_v53 = vpop.eup %4350  ;;  %4362 = vpow2.f32 %v2571_v16  ;;  %v2500_v34 = vsub.f32 %v6113_v50, %v6162_v5  ;;  %v2581_v27 = vmul.f32 1.442695, %v2492_v11  ;;  %v2708_v33 = vadd.f32 %v2707_v1, %v2706_v0 }
 0x509   : > { %v2577_v28 = vmul.f32 1.442695, %v7481_v63  ;;  %v6370_v25 = vpop.eup %4352  ;;  %4364 = vpow2.f32 %v2573_v59  ;;  %v7482_v35 = vsub.f32 %v6051_v15, %v6094_v32  ;;  %v2507_v48 = vsub.f32 %v6160_v47, %v6218_v38 }
 0x50a   : > { %v6343_v60 = vpop.f32.mrf.mxu3  ;;  %v6372_v61 = vpop.eup %4354  ;;  %4366 = vpow2.f32 %v2575_v8  ;;  %v2595_v56 = vmul.f32 1.442695, %v2499_v22  ;;  %v2508_v50 = vsub.f32 %v6177_v3, %v6218_v38  ;;  %v2709_v11 = vsel %vm2266_vm9, %v6331_v19, 0.0 }
 0x50b   : > { %v2583_v4 = vmul.f32 1.442695, %v7482_v35  ;;  %v6379_v16 = vpop.eup %4356  ;;  %4368 = vpow2.f32 %v2577_v28  ;;  %v2597_v0 = vmul.f32 1.442695, %v2500_v34  ;;  %v2727_v47 = vsel %vm2266_vm9, %v6370_v25, 0.0 }
 0x50c   : > { %v6383_v59 = vpop.eup %4358  ;;  %4370 = vpow2.f32 %v2579_v46  ;;  %v2728_v8 = vsel %vm2266_vm9, %v6372_v61, 0.0  ;;  %v7484_v3 = vsub.f32 %v6059_v37, %v6094_v32  ;;  %v2710_v28 = vadd.f32 %v2709_v11, %v2708_v33 }
 0x50d   : > { %v6389_v15 = vpop.eup %4360  ;;  %4372 = vpow2.f32 %v2581_v27  ;;  %v2611_v22 = vmul.f32 1.442695, %v2507_v48  ;;  %v2613_v34 = vmul.f32 1.442695, %v2508_v50  ;;  %v2729_v62 = vadd.f32 %v2728_v8, %v2727_v47 }
 0x50e   : > { %7483 = vst [vmem:[#allocation51_spill] sm:$0xff] %v6389_v15  ;;  %v2585_v1 = vmul.f32 1.442695, %v7484_v3  ;;  %v6398_v63 = vpop.eup %4362  ;;  %4374 = vpow2.f32 %v2583_v4  ;;  %v2587_v27 = vmul.f32 1.442695, %v7487_v24  ;;  %v2515_v37 = vsub.f32 %v6215_v7, %v6299_v9 }
 0x50f   : > { %7485 = vst [vmem:[#allocation52_spill] sm:$0xff] %v6398_v63  ;;  %v6400_v46 = vpop.eup %4364  ;;  %4376 = vpow2.f32 %v2595_v56  ;;  %v2711_v33 = vsel %vm2266_vm9, %v6336_v55, 0.0  ;;  %v7488_v4 = vsub.f32 %v6115_v31, %v6162_v5  ;;  %v2516_v56 = vsub.f32 %v6232_v21, %v6299_v9 }
 0x510   : > { %7486 = vst [vmem:[#allocation54_spill] sm:$0xff] %v6400_v46  ;;  %v6402_v35 = vpop.eup %4366  ;;  %4378 = vpow2.f32 %v2597_v0  ;;  %v2712_v41 = vadd.f32 %v2711_v33, %v2710_v28  ;;  %v7490_v24 = vsub.f32 %v6071_v44, %v6094_v32  ;;  %v2730_v0 = vsel %vm2266_vm9, %v6383_v59, 0.0 }
 0x511   : > { %v6409_v3 = vpop.eup %4368  ;;  %4380 = vpow2.f32 %v2585_v1  ;;  %v2599_v48 = vmul.f32 1.442695, %v7488_v4  ;;  %v7492_v31 = vsub.f32 %v6183_v58, %v6218_v38  ;;  %v2731_v21 = vadd.f32 %v2730_v0, %v2729_v62 }
 0x512   : > { %v6387_v10 = vpop.f32.mrf.mxu3  ;;  %v6418_v50 = vpop.eup %4370  ;;  %v2589_v7 = vmul.f32 1.442695, %v7490_v24  ;;  %4382 = vpow2.f32 %v2611_v22  ;;  %v2627_v1 = vmul.f32 1.442695, %v2515_v37  ;;  %v2713_v22 = vsel %vm2266_vm9, %v6345_v12, 0.0 }
 0x513   : > { %7489 = vst [vmem:[#allocation58_spill] sm:$0xff] %v6418_v50  ;;  %v6423_v11 = vpop.eup %4372  ;;  %4384 = vpow2.f32 %v2613_v34  ;;  %v2615_v47 = vmul.f32 1.442695, %v7492_v31  ;;  %v2629_v33 = vmul.f32 1.442695, %v2516_v56  ;;  %v2714_v34 = vadd.f32 %v2713_v22, %v2712_v41 }
 0x514   : > { %7491 = vst [vmem:[#allocation59_spill] sm:$0xff] %v6423_v11  ;;  %v6430_v8 = vpop.eup %4374  ;;  %4386 = vpow2.f32 %v2587_v27  ;;  %v2732_v58 = vsel %vm2266_vm9, %v6389_v15, 0.0  ;;  %v7496_v62 = vsub.f32 %v6079_v49, %v6094_v32  ;;  %v2748_v24 = vsel %vm2266_vm9, %v6418_v50, 0.0 }
 0x515   : > { %7493 = vst [vmem:[#allocation13_spill] sm:$0xff] %v6430_v8  ;;  %v6434_v44 = vpop.eup %4376  ;;  %4388 = vpow2.f32 %v2599_v48  ;;  %v2749_v48 = vsel %vm2266_vm9, %v6423_v11, 0.0  ;;  %v7498_v56 = vsub.f32 %v6127_v17, %v6162_v5  ;;  %v2715_v49 = vsel %vm2266_vm9, %v6352_v18, 0.0 }
 0x516   : > { %7494 = vst [vmem:[#allocation14_spill] sm:$0xff] %v6434_v44  ;;  %v6438_v4 = vpop.eup %4378  ;;  %4390 = vpow2.f32 %v2589_v7  ;;  %v2591_v27 = vmul.f32 1.442695, %v7496_v62  ;;  %v6458_v7 = vsel %vm2266_vm9, %v6301_v51, 0.0  ;;  %v2733_v31 = vadd.f32 %v2732_v58, %v2731_v21 }
 0x517   : > { %7495 = vst [vmem:[#allocation15_spill] sm:$0xff] %v6438_v4  ;;  %v6445_v37 = vpop.eup %4380  ;;  %v2601_v41 = vmul.f32 1.442695, %v7498_v56  ;;  %4392 = vpow2.f32 %v2615_v47  ;;  %v2769_v62 = vsel %vm2266_vm9, %v6434_v44, 0.0  ;;  %v2770_v17 = vsel %vm2266_vm9, %v6438_v4, 0.0 }
 0x518   : > { %7497 = vst [vmem:[#allocation16_spill] sm:$0xff] %v6445_v37  ;;  %v6454_v0 = vpop.eup %4382  ;;  %4394 = vpow2.f32 %v2627_v1  ;;  %v7501_v47 = vsub.f32 %v6191_v26, %v6218_v38  ;;  %v6473_v23 = vadd.f32 %v2715_v49, %v2714_v34  ;;  %v7503_v21 = vsub.f32 %v6083_v30, %v6094_v32  ;;  %v7506_v49 = vld [vmem:[#allocation40_spill] sm:$0xff] }
 0x519   : > { %7499 = vst [vmem:[#allocation17_spill] sm:$0xff] %v6454_v0  ;;  %v6462_v22 = vpop.eup %4384  ;;  %4396 = vpow2.f32 %v2629_v33  ;;  %v2750_v58 = vadd.f32 %v2749_v48, %v2748_v24  ;;  %v2734_v45 = vsel %vm2266_vm9, %v6398_v63, 0.0  ;;  %v6484_v26 = vsel %vm2266_vm9, %v6400_v46, 0.0 }
 0x51a   : > { %v6432_v28 = vpop.f32.mrf.mxu3  ;;  %7500 = vst [vmem:[#allocation9_spill] sm:$0xff] %v6462_v22  ;;  %v2617_v56 = vmul.f32 1.442695, %v7501_v47  ;;  %v6471_v2 = vpop.eup %4386  ;;  %4398 = vpow2.f32 %v2591_v27  ;;  %v2593_v1 = vmul.f32 1.442695, %v7503_v21  ;;  %v7505_v33 = vsub.f32 %v6237_v20, %v6299_v9 }
 0x51b   : > { %7502 = vst [vmem:[#allocation25_spill] sm:$0xff] %v6471_v2  ;;  %v6478_v14 = vpop.eup %4388  ;;  %4400 = vpow2.f32 %v2601_v41  ;;  %v7507_v32 = vsub.f32 %v7506_v49, %v6162_v5  ;;  %v2771_v24 = vadd.f32 %v2770_v17, %v2769_v62  ;;  %v2790_v48 = vsel %vm2266_vm9, %v6454_v0, 0.0 }
 0x51c   : > { %7504 = vst [vmem:[#allocation10_spill] sm:$0xff] %v6478_v14  ;;  %v2631_v34 = vmul.f32 1.442695, %v7505_v33  ;;  %v6489_v27 = vpop.eup %4390  ;;  %v2791_v47 = vsel %vm2266_vm9, %v6462_v22, 0.0  ;;  %v6502_v4 = vadd.f32 %v2734_v45, %v2733_v31  ;;  %v2751_v20 = vsel %vm2266_vm9, %v6430_v8, 0.0  ;;  %v7509_v33 = vld [vmem:[#allocation46_spill] sm:$0xff] }
 0x51d   : > { %v2603_v30 = vmul.f32 1.442695, %v7507_v32  ;;  %v6500_v41 = vpop.eup %4392  ;;  %4402 = vpow2.f32 %v2617_v56  ;;  %v7510_v49 = vsub.f32 %v7509_v33, %v6218_v38  ;;  %v2752_v32 = vadd.f32 %v2751_v20, %v2750_v58  ;;  %v7514_v58 = vld [vmem:[#allocation42_spill] sm:$0xff] }
 0x51e   : > { %7508 = vst [vmem:[#allocation27_spill] sm:$0xff] %v6500_v41  ;;  %v6509_v17 = vpop.eup %4394  ;;  %4404 = vpow2.f32 %v2593_v1  ;;  %v2753_v22 = vsel %vm2266_vm9, %v6445_v37, 0.0  ;;  %v2772_v0 = vsel %vm2266_vm9, %v6478_v14, 0.0  ;;  %v2792_v31 = vadd.f32 %v2791_v47, %v2790_v48 }
 0x51f   : > { %v2619_v62 = vmul.f32 1.442695, %v7510_v49  ;;  %7511 = vst [vmem:[#allocation28_spill] sm:$0xff] %v6509_v17  ;;  %v6515_v45 = vpop.eup %4396  ;;  %4406 = vpow2.f32 %v2631_v34  ;;  %v7513_v56 = vsub.f32 %v6245_v13, %v6299_v9  ;;  %v2415_v33 = vsel %vm2266_vm9, %v6294_v43, -inf  ;;  %v7517_v34 = vld [vmem:[#allocation60_spill] sm:$0xff] }
 0x520   : > { %7512 = vst [vmem:[#allocation8_spill] sm:$0xff] %v6515_v45  ;;  %v6522_v49 = vpop.eup %4398  ;;  %v2755_v1 = vsel %vm2266_vm9, %v6471_v2, 0.0  ;;  %4408 = vpow2.f32 %v2603_v30  ;;  %v7515_v20 = vsub.f32 %v7514_v58, %v6162_v5  ;;  %v2773_v37 = vadd.f32 %v2772_v0, %v2771_v24 }
 0x521   : > { %v2633_v44 = vmul.f32 1.442695, %v7513_v56  ;;  %v6529_v48 = vpop.eup %4400  ;;  %4410 = vpow2.f32 %v2619_v62  ;;  %v7518_v13 = vsub.f32 %v7517_v34, %v6218_v38  ;;  %v7519_v56 = vld [vmem:[#allocation12_spill] sm:$0xff]  ;;  %v2417_v11 = vsel %vm2266_vm9, %v6343_v60, -inf }
 0x522   : > { %v6498_v21 = vpop.f32.mrf.mxu3  ;;  %v2605_v14 = vmul.f32 1.442695, %v7515_v20  ;;  %7516 = vst [vmem:[#allocation40_spill] sm:$0xff] %v6529_v48  ;;  %v2414_v8 = vsel %vm2266_vm9, %v7519_v56, -inf  ;;  %v2793_v30 = vsel %vm2266_vm9, %v6500_v41, 0.0  ;;  %v2811_v58 = vsel %vm2266_vm9, %v6509_v17, 0.0 }
 0x523   : > { %v2621_v47 = vmul.f32 1.442695, %v7518_v13  ;;  %v2812_v0 = vsel %vm2266_vm9, %v6515_v45, 0.0  ;;  %v2416_v24 = vmax.f32 %v2414_v8, %v2415_v33  ;;  %v6544_v62 = vpop.eup %4402  ;;  %v2794_v20 = vadd.f32 %v2793_v30, %v2792_v31  ;;  %v7522_v41 = vld [vmem:[#allocation43_spill] sm:$0xff] }
 0x524   : > { %7520 = vst [vmem:[#allocation46_spill] sm:$0xff] %v6544_v62  ;;  %4412 = vpow2.f32 %v2633_v44  ;;  %v7521_v34 = vsub.f32 %v6249_v29, %v6299_v9  ;;  %v2419_v2 = vsel %vm2266_vm9, %v6387_v10, -inf  ;;  %v6551_v50 = vpop.eup %4404  ;;  %v7523_v17 = vsub.f32 %v7522_v41, %v6162_v5  ;;  %v7525_v29 = vld [vmem:[#allocation48_spill] sm:$0xff] }
 0x525   : > { %4414 = vpow2.f32 %v2605_v14  ;;  %v2774_v8 = vsel %vm2266_vm9, %v6529_v48, 0.0  ;;  %v2418_v33 = vmax.f32 %v2416_v24, %v2417_v11  ;;  %v6560_v44 = vpop.eup %4406  ;;  %v7526_v30 = vsub.f32 %v7525_v29, %v6218_v38 }
 0x526   : > { %v2635_v13 = vmul.f32 1.442695, %v7521_v34  ;;  %v2607_v46 = vmul.f32 1.442695, %v7523_v17  ;;  %7524 = vst [vmem:[#allocation42_spill] sm:$0xff] %v6560_v44  ;;  %4416 = vpow2.f32 %v2621_v47  ;;  %v2813_v45 = vadd.f32 %v2812_v0, %v2811_v58  ;;  %v6567_v63 = vpop.eup %4408  ;;  %v7529_v0 = vld [vmem:[#allocation45_spill] sm:$0xff] }
 0x527   : > { %v2623_v34 = vmul.f32 1.442695, %v7526_v30  ;;  %v2421_v14 = vsel %vm2266_vm9, %v6432_v28, -inf  ;;  %v2754_v41 = vadd.f32 %v2753_v22, %v2752_v32  ;;  %v2775_v17 = vadd.f32 %v2774_v8, %v2773_v37  ;;  %v6571_v48 = vpop.eup %4410 }
 0x528   : > { %v2795_v11 = vsel %vm2266_vm9, %v6544_v62, 0.0  ;;  %v2420_v24 = vmax.f32 %v2418_v33, %v2419_v2  ;;  %7527 = vst [vmem:[#allocation60_spill] sm:$0xff] %v6571_v48  ;;  %4418 = vpow2.f32 %v2635_v13  ;;  %v7528_v47 = vsub.f32 %v6253_v54, %v6299_v9 }
 0x529   : > { %v2796_v15 = vadd.f32 %v2795_v11, %v2794_v20  ;;  %v2423_v58 = vsel %vm2266_vm9, %v6498_v21, -inf  ;;  %4420 = vpow2.f32 %v2607_v46  ;;  %v7530_v22 = vsub.f32 %v7529_v0, %v6162_v5  ;;  %v7532_v20 = vld [vmem:[#allocation49_spill] sm:$0xff] }
 0x52a   : > { %v6558_v31 = vpop.f32.mrf.mxu3  ;;  %v2637_v29 = vmul.f32 1.442695, %v7528_v47  ;;  %v2814_v32 = vsel %vm2266_vm9, %v6560_v44, 0.0  ;;  %v2422_v2 = vmax.f32 %v2420_v24, %v2421_v14  ;;  %v6583_v8 = vpop.eup %4412  ;;  %4422 = vpow2.f32 %v2623_v34 }
 0x52b   : > { %v2609_v37 = vmul.f32 1.442695, %v7530_v22  ;;  %7531 = vst [vmem:[#allocation12_spill] sm:$0xff] %v6583_v8  ;;  %v7533_v13 = vsub.f32 %v7532_v20, %v6218_v38  ;;  %v2815_v33 = vadd.f32 %v2814_v32, %v2813_v45  ;;  %v2425_v30 = vsel %vm2266_vm9, %v6558_v31, -inf  ;;  %v6590_v46 = vpop.eup %4414 }
 0x52c   : > { %v2756_v11 = vadd.f32 %v2755_v1, %v2754_v41  ;;  %v2776_v5 = vsel %vm2266_vm9, %v6567_v63, 0.0  ;;  %v2797_v14 = vsel %vm2266_vm9, %v6571_v48, 0.0  ;;  %v2424_v24 = vmax.f32 %v2422_v2, %v2423_v58  ;;  %v6596_v47 = vpop.eup %4416 }
 0x52d   : > { %v2625_v54 = vmul.f32 1.442695, %v7533_v13  ;;  %7534 = vst [vmem:[#allocation43_spill] sm:$0xff] %v6596_v47  ;;  %v2777_v34 = vadd.f32 %v2776_v5, %v2775_v17  ;;  %v2798_v0 = vadd.f32 %v2797_v14, %v2796_v15  ;;  %4424 = vpow2.f32 %v2637_v29 }
 0x52e   : > { %v7535_v38 = vsub.f32 %v6257_v39, %v6299_v9  ;;  %v2737_v22 = vadd.f32 %v6484_v26, %v6502_v4  ;;  %4426 = vpow2.f32 %v2609_v37  ;;  %v2816_v1 = vsel %vm2266_vm9, %v6583_v8, 0.0  ;;  %v6607_v58 = vpop.eup %4418 }
 0x52f   : > { %v2426_v41 = vmax.f32 %v2424_v24, %v2425_v30  ;;  %7536 = vst [vmem:[#allocation48_spill] sm:$0xff] %v6607_v58  ;;  %v2757_v15 = vsel %vm2266_vm9, %v6489_v27, 0.0  ;;  %4428 = vpow2.f32 %v2625_v54  ;;  %v2817_v17 = vadd.f32 %v2816_v1, %v2815_v33  ;;  %v6613_v29 = vpop.eup %4420  ;;  %v7540_v1 = vld [vmem:[#allocation39_spill] sm:$0xff] }
 0x530   : > { %v2639_v45 = vmul.f32 1.442695, %v7535_v38  ;;  %v2758_v4 = vadd.f32 %v2757_v15, %v2756_v11  ;;  %v2778_v26 = vsel %vm2266_vm9, %v6590_v46, 0.0  ;;  %v2799_v37 = vsel %vm2266_vm9, %v6596_v47, 0.0  ;;  %v6619_v20 = vpop.eup %4422 }
 0x531   : > { %7537 = vst [vmem:[#allocation45_spill] sm:$0xff] %v6619_v20  ;;  %v2779_v13 = vadd.f32 %v2778_v26, %v2777_v34  ;;  %v2800_v30 = vadd.f32 %v2799_v37, %v2798_v0  ;;  %v7538_v54 = vsub.f32 %v6261_v40, %v6299_v9  ;;  %v2717_v5 = vsel %vm2266_vm9, %v6366_v53, 0.0 }
 0x532   : > { %v6605_v32 = vpop.f32.mrf.mxu3  ;;  %4430 = vpow2.f32 %v2639_v45  ;;  %v2738_v11 = vsel %vm2266_vm9, %v6402_v35, 0.0  ;;  %v2818_v14 = vsel %vm2266_vm9, %v6607_v58, 0.0  ;;  %v2697_v34 = vadd.f32 %v6458_v7, %v7540_v1 }
 0x533   : > { %v2427_v39 = vsel %vm2266_vm9, %v6605_v32, -inf  ;;  %v2641_v33 = vmul.f32 1.442695, %v7538_v54  ;;  %v6630_v38 = vpop.eup %4424  ;;  %v2718_v0 = vadd.f32 %v2717_v5, %v6473_v23  ;;  %v2739_v45 = vadd.f32 %v2738_v11, %v2737_v22 }
 0x534   : > { %v2428_v2 = vmax.f32 %v2426_v41, %v2427_v39  ;;  %7539 = vst [vmem:[#allocation49_spill] sm:$0xff] %v6630_v38  ;;  %v2819_v40 = vadd.f32 %v2818_v14, %v2817_v17  ;;  %v6635_v9 = vpop.eup %4426  ;;  %v2759_v41 = vsel %vm2266_vm9, %v6522_v49, 0.0  ;;  %v2780_v15 = vsel %vm2266_vm9, %v6613_v29, 0.0 }
 0x535   : > { %v2801_v39 = vsel %vm2266_vm9, %v6619_v20, 0.0  ;;  %v6643_v37 = vpop.eup %4428  ;;  %v2760_v54 = vadd.f32 %v2759_v41, %v2758_v4  ;;  %v2781_v7 = vadd.f32 %v2780_v15, %v2779_v13  ;;  %4432 = vpow2.f32 %v2641_v33 }
 0x536   : > { %v2429_v24 = vrot.slane %v2428_v2, 4  ;;  %7541 = vst [vmem:[#allocation39_spill] sm:$0xff] %v6643_v37  ;;  %v2802_v1 = vadd.f32 %v2801_v39, %v2800_v30  ;;  %v2698_v23 = vsel %vm2266_vm9, %v6306_v36, 0.0  ;;  %v2719_v22 = vsel %vm2266_vm9, %v6379_v16, 0.0 }
 0x537   : > { %v2820_v17 = vsel %vm2266_vm9, %v6630_v38, 0.0  ;;  %v2699_v14 = vadd.f32 %v2698_v23, %v2697_v34  ;;  %v2740_v4 = vsel %vm2266_vm9, %v6409_v3, 0.0  ;;  %v2761_v30 = vsel %vm2266_vm9, %v6551_v50, 0.0 }
 0x538   : > { %v2430_v26 = vmax.f32 %v2428_v2, %v2429_v24  ;;  %v6651_v11 = vpop.eup %4430  ;;  %v2720_v2 = vadd.f32 %v2719_v22, %v2718_v0  ;;  %v2821_v13 = vadd.f32 %v2820_v17, %v2819_v40  ;;  %v2782_v33 = vsel %vm2266_vm9, %v6635_v9, 0.0 }
 0x539   : > { %7542 = vst [vmem:[#allocation61_spill] sm:$0xff] %v6651_v11  ;;  %v2803_v24 = vsel %vm2266_vm9, %v6643_v37, 0.0  ;;  %v2741_v15 = vadd.f32 %v2740_v4, %v2739_v45  ;;  %v2762_v39 = vadd.f32 %v2761_v30, %v2760_v54  ;;  %v2783_v38 = vadd.f32 %v2782_v33, %v2781_v7 }
 0x53a   : > { %v2431_v5 = vrot.slane %v2430_v26, 2  ;;  %v2804_v58 = vadd.f32 %v2803_v24, %v2802_v1  ;;  %v2822_v34 = vsel %vm2266_vm9, %v6651_v11, 0.0  ;;  %v2700_v22 = vrot.slane %v2699_v14, 4 }
 0x53b   : > { %v6663_v23 = vpop.eup %4432  ;;  %v2823_v40 = vadd.f32 %v2822_v34, %v2821_v13  ;;  %v2721_v17 = vrot.slane %v2720_v2, 4  ;;  %v2442_v44 = vrot.slane %v5836_v52, 7  ;;  %v2742_v20 = vrot.slane %v2741_v15, 4 }
 0x53c   : > { %v2432_v41 = vmax.f32 %v2430_v26, %v2431_v5  ;;  %v2763_v47 = vrot.slane %v2762_v39, 4  ;;  %v2784_v37 = vrot.slane %v2783_v38, 4  ;;  %v2805_v26 = vrot.slane %v2804_v58, 4 }
 0x53d   : > { %v2824_v45 = vsel %vm2266_vm9, %v6663_v23, 0.0  ;;  %v2701_v1 = vadd.f32 %v2700_v22, %v2699_v14  ;;  %v2722_v5 = vadd.f32 %v2721_v17, %v2720_v2  ;;  %v2743_v33 = vadd.f32 %v2742_v20, %v2741_v15 }
 0x53e   : > { %v2433_v0 = vrot.slane %v2432_v41, 1  ;;  %v2825_v7 = vadd.f32 %v2824_v45, %v2823_v40  ;;  %v2764_v13 = vadd.f32 %v2763_v47, %v2762_v39  ;;  %v2785_v24 = vadd.f32 %v2784_v37, %v2783_v38 }
 0x53f   : > { %v2806_v34 = vadd.f32 %v2805_v26, %v2804_v58  ;;  %v2723_v38 = vrot.slane %v2722_v5, 2  ;;  %v2744_v37 = vrot.slane %v2743_v33, 2 }
 0x540   : > { %v2434_v8 = vmax.f32 %v2432_v41, %v2433_v0  ;;  %v2826_v62 = vrot.slane %v2825_v7, 4  ;;  %v2765_v15 = vrot.slane %v2764_v13, 2 }
 0x541   : > { %v2807_v39 = vrot.slane %v2806_v34, 2  ;;  %v2724_v22 = vadd.f32 %v2723_v38, %v2722_v5  ;;  %v2745_v17 = vadd.f32 %v2744_v37, %v2743_v33 }
 0x542   : > { %v2458_v54 = vmax.f32 %v2434_v8, %v2442_v44  ;;  %v2766_v26 = vadd.f32 %v2765_v15, %v2764_v13 }
 0x543   : > { %v2725_v5 = vrot.slane %v2724_v22, 1  ;;  %v2746_v13 = vrot.slane %v2745_v17, 1 }
 0x544   : > { %v2466_v4 = vperm.slane %v2458_v54, 0  ;;  %v2679_v30 = vrot.slane %v2458_v54, 1  ;;  %v2808_v54 = vadd.f32 %v2807_v39, %v2806_v34 }
 0x545   : > { %v2726_v38 = vadd.f32 %v2725_v5, %v2724_v22  ;;  %v2747_v37 = vadd.f32 %v2746_v13, %v2745_v17  ;;  %v3021_v17 = vld [vmem:[%s7171_s4] sm:$0x3] }
 0x546   : > { %v2523_v41 = vsub.f32 %v7519_v56, %v2466_v4  ;;  %v2524_v0 = vsub.f32 %v6294_v43, %v2466_v4  ;;  %v2525_v11 = vsub.f32 %v6343_v60, %v2466_v4  ;;  %v2526_v48 = vsub.f32 %v6387_v10, %v2466_v4 }
 0x547   : > { %v2527_v44 = vsub.f32 %v6432_v28, %v2466_v4  ;;  %v2528_v8 = vsub.f32 %v6498_v21, %v2466_v4  ;;  %v2529_v14 = vsub.f32 %v6558_v31, %v2466_v4  ;;  %v2680_v58 = vsel %vm1597_vm8, %v2679_v30, %v6329_v6 }
 0x548   : > { %v2643_v2 = vmul.f32 1.442695, %v2523_v41  ;;  %v2645_v20 = vmul.f32 1.442695, %v2524_v0  ;;  %v2647_v47 = vmul.f32 1.442695, %v2525_v11  ;;  %v2682_v10 = vsub.f32 %v5836_v52, %v2680_v58 }
 0x549   : > { %v2702_v56 = vrot.slane %v2701_v1, 2  ;;  %v2649_v43 = vmul.f32 1.442695, %v2526_v48  ;;  %v2651_v60 = vmul.f32 1.442695, %v2527_v44  ;;  %v2786_v28 = vrot.slane %v2785_v24, 2 }
 0x54a   : > { %4434 = vpow2.f32 %v2643_v2  ;;  %v2653_v21 = vmul.f32 1.442695, %v2528_v8  ;;  %v2827_v31 = vadd.f32 %v2826_v62, %v2825_v7  ;;  %v2655_v40 = vmul.f32 1.442695, %v2529_v14 }
 0x54b   : > { %4436 = vpow2.f32 %v2645_v20  ;;  %v2530_v11 = vsub.f32 %v6605_v32, %v2466_v4  ;;  %v2703_v6 = vadd.f32 %v2702_v56, %v2701_v1  ;;  %v2683_v48 = vmul.f32 1.442695, %v2682_v10 }
 0x54c   : > { %4438 = vpow2.f32 %v2647_v47  ;;  %v2787_v45 = vadd.f32 %v2786_v28, %v2785_v24  ;;  %v2828_v30 = vrot.slane %v2827_v31, 2  ;;  %v2767_v24 = vrot.slane %v2766_v26, 1 }
 0x54d   : > { %4440 = vpow2.f32 %v2649_v43  ;;  %v2657_v62 = vmul.f32 1.442695, %v2530_v11  ;;  %v2704_v1 = vrot.slane %v2703_v6, 1  ;;  %v2809_v8 = vrot.slane %v2808_v54, 1 }
 0x54e   : > { %4442 = vpow2.f32 %v2651_v60  ;;  %v2788_v34 = vrot.slane %v2787_v45, 1  ;;  %v2829_v14 = vadd.f32 %v2828_v30, %v2827_v31  ;;  %v2768_v60 = vadd.f32 %v2767_v24, %v2766_v26 }
 0x54f   : > { %4444 = vpow2.f32 %v2653_v21  ;;  %v2705_v56 = vadd.f32 %v2704_v1, %v2703_v6  ;;  %v2810_v21 = vadd.f32 %v2809_v8, %v2808_v54 }
 0x550   : > { %v6679_v52 = vpop.eup %4434  ;;  %4446 = vpow2.f32 %v2655_v40  ;;  %v2789_v10 = vadd.f32 %v2788_v34, %v2787_v45  ;;  %v2830_v39 = vrot.slane %v2829_v14, 1 }
 0x551   : > { %v6681_v41 = vpop.eup %4436  ;;  %v2832_v32 = vsel %vm2266_vm9, %v6679_v52, 0.0  ;;  %4448 = vpow2.f32 %v2683_v48 }
 0x552   : > { %v6685_v7 = vpop.eup %4438  ;;  %v2833_v4 = vsel %vm2266_vm9, %v6681_v41, 0.0  ;;  %4450 = vpow2.f32 %v2657_v62  ;;  %v2831_v34 = vadd.f32 %v2830_v39, %v2829_v14  ;;  %v7543_v14 = vld [vmem:[#allocation31_spill] sm:$0xff] }
 0x553   : > { %v6689_v33 = vpop.eup %4440  ;;  %v2834_v0 = vadd.f32 %v2833_v4, %v2832_v32  ;;  %v2835_v2 = vsel %vm2266_vm9, %v6685_v7, 0.0  ;;  %v3280_v32 = vsel %vm3278_vm10, %v3021_v17, 0 }
 0x554   : > { %v6691_v44 = vpop.eup %4442  ;;  %v2837_v43 = vsel %vm2266_vm9, %v6689_v33, 0.0  ;;  %3289 = vmatpush.bf16.msra.mxu2 %v3280_v32  ;;  %3486 = vmatpush.bf16.msra.mxu0 %v3280_v32 }
 0x555   : > { %v6695_v20 = vpop.eup %4444  ;;  %v2836_v47 = vadd.f32 %v2835_v2, %v2834_v0  ;;  %v2839_v31 = vsel %vm2266_vm9, %v6691_v44, 0.0 }
 0x556   : > { %v6697_v58 = vpop.eup %4446  ;;  %v2841_v40 = vsel %vm2266_vm9, %v6695_v20, 0.0 }
 0x557   : > { %v2838_v15 = vadd.f32 %v2837_v43, %v2836_v47  ;;  %v6701_v28 = vpop.eup %4448  ;;  %v2843_v6 = vsel %vm2266_vm9, %v6697_v58, 0.0 }
 0x558   : > { %v2869_v22 = vadd.f32 %v6701_v28, %v2705_v56  ;;  %v2854_v48 = vrot.slane %v6701_v28, 1  ;;  %v2855_v26 = vrot.slane %v6701_v28, 2  ;;  %v2856_v45 = vrot.slane %v6701_v28, 3  ;;  %v6717_v30 = vpop.eup %4450 }
 0x559   : > { %v2840_v11 = vadd.f32 %v2839_v31, %v2838_v15  ;;  %v2857_v54 = vrot.slane %v6701_v28, 4  ;;  %v2858_v1 = vrot.slane %v6701_v28, 5  ;;  %v2859_v5 = vrot.slane %v6701_v28, 6 }
 0x55a   : > { %4452 = vrcp.f32 %v2869_v22  ;;  %v2870_v4 = vadd.f32 %v2854_v48, %v2726_v38  ;;  %v2871_v13 = vadd.f32 %v2855_v26, %v2747_v37  ;;  %v2872_v24 = vadd.f32 %v2856_v45, %v2768_v60  ;;  %v7547_v45 = vld [vmem:[#allocation36_spill] sm:$0xff] }
 0x55b   : > { %v2842_v62 = vadd.f32 %v2841_v40, %v2840_v11  ;;  %v2873_v8 = vadd.f32 %v2857_v54, %v2789_v10  ;;  %v2845_v2 = vsel %vm2266_vm9, %v6717_v30, 0.0  ;;  %v2874_v47 = vadd.f32 %v2858_v1, %v2810_v21  ;;  %v7544_v10 = vld [vmem:[#allocation33_spill] sm:$0xff]  ;;  %v7545_v11 = vld [vmem:[#allocation34_spill] sm:$0xff] }
 0x55c   : > { %4454 = vrcp.f32 %v2870_v4  ;;  %v2875_v43 = vadd.f32 %v2859_v5, %v2831_v34 }
 0x55d   : > { %v2844_v0 = vadd.f32 %v2843_v6, %v2842_v62  ;;  %4456 = vrcp.f32 %v2871_v13  ;;  %v7546_v6 = vld [vmem:[#allocation11_spill] sm:$0xff]  ;;  %v7548_v62 = vld [vmem:[#allocation37_spill] sm:$0xff] }
 0x55e   : > { %4458 = vrcp.f32 %v2872_v24 }
 0x55f   : > { %v2846_v56 = vadd.f32 %v2845_v2, %v2844_v0  ;;  %4460 = vrcp.f32 %v2873_v8 }
 0x560   : > { %v4453_v15 = vpop.eup %4452  ;;  %4462 = vrcp.f32 %v2874_v47 }
 0x561   : > { %v2847_v31 = vrot.slane %v2846_v56, 4  ;;  %v2885_v40 = vperm.slane %v4453_v15, 0  ;;  %4464 = vrcp.f32 %v2875_v43 }
 0x562   : > { %v6723_v37 = vpop.eup %4454 }
 0x563   : > { %v2848_v38 = vadd.f32 %v2847_v31, %v2846_v56  ;;  %v2893_v60 = vmul.f32 %v7543_v14, %v2885_v40  ;;  %v2894_v39 = vmul.f32 %v7544_v10, %v2885_v40  ;;  %v2895_v21 = vmul.f32 %v7545_v11, %v2885_v40  ;;  %v6729_v48 = vpop.eup %4456 }
 0x564   : > { %v2896_v22 = vmul.f32 %v7546_v6, %v2885_v40  ;;  %v3459_v26 = vrot.slane %v6723_v37, 7  ;;  %v2897_v54 = vmul.f32 %v7547_v45, %v2885_v40  ;;  %v2898_v32 = vmul.f32 %v7548_v62, %v2885_v40  ;;  %v6734_v1 = vpop.eup %4458 }
 0x565   : > { %v2849_v17 = vrot.slane %v2848_v38, 2  ;;  %v2957_v5 = vpack.c.bf16 %v2893_v60, %v2893_v60  ;;  %v2958_v4 = vpack.c.bf16 %v2894_v39, %v2894_v39  ;;  %v2959_v13 = vpack.c.bf16 %v2895_v21, %v2895_v21  ;;  %v6736_v34 = vpop.eup %4460 }
 0x566   : > { %v2960_v24 = vpack.c.bf16 %v2896_v22, %v2896_v22  ;;  %v3460_v8 = vsel %vm1579_vm2, %v3459_v26, %v4453_v15  ;;  %v3461_v2 = vrot.slane %v6729_v48, 6  ;;  %v3463_v47 = vrot.slane %v6734_v1, 5  ;;  %v6741_v56 = vpop.eup %4462 }
 0x567   : > { %v2850_v0 = vadd.f32 %v2849_v17, %v2848_v38  ;;  %v3086_v43 = vunpack.c.l.b16 %v2957_v5  ;;  %v3087_v31 = vunpack.c.l.b16 %v2958_v4  ;;  %v3088_v14 = vunpack.c.l.b16 %v2959_v13  ;;  %v6743_v11 = vpop.eup %4464 }
 0x568   : > { %v3089_v10 = vunpack.c.l.b16 %v2960_v24  ;;  %v3462_v39 = vsel %vm1582_vm3, %v3461_v2, %v3460_v8  ;;  %v3465_v21 = vrot.slane %v6736_v34, 4  ;;  %v2860_v17 = vrot.slane %v6701_v28, 7 }
 0x569   : > { %v2851_v60 = vrot.slane %v2850_v0, 1  ;;  %v3150_v38 = vpack.c.b16 %v3087_v31, %v3086_v43  ;;  %v3464_v15 = vsel %vm1585_vm4, %v3463_v47, %v3462_v39  ;;  %v3467_v45 = vrot.slane %v6741_v56, 3 }
 0x56a   : > { %v3151_v6 = vpack.c.b16 %v3089_v10, %v3088_v14  ;;  %v3466_v26 = vsel %vm1588_vm5, %v3465_v21, %v3464_v15  ;;  %v3469_v62 = vrot.slane %v6743_v11, 2  ;;  %v2961_v5 = vpack.c.bf16 %v2897_v54, %v2897_v54 }
 0x56b   : > { %v2852_v22 = vadd.f32 %v2851_v60, %v2850_v0  ;;  %4041 = vmatmul.msk.bf16.vlgmr.msra.gmra.mxu2 %vm2266_vm9, %v3150_v38  ;;  %v2962_v4 = vpack.c.bf16 %v2898_v32, %v2898_v32  ;;  %v3468_v24 = vsel %vm1591_vm6, %v3467_v45, %v3466_v26  ;;  %v2899_v39 = vmul.f32 %v6301_v51, %v2885_v40 }
 0x56c   : > { %v3470_v8 = vsel %vm1594_vm7, %v3469_v62, %v3468_v24  ;;  %v3090_v2 = vunpack.c.l.b16 %v2961_v5  ;;  %v2900_v21 = vmul.f32 %v6306_v36, %v2885_v40  ;;  %v2886_v26 = vperm.slane %v6723_v37, 0 }
 0x56d   : > { %v2876_v13 = vadd.f32 %v2860_v17, %v2852_v22  ;;  %v3091_v47 = vunpack.c.l.b16 %v2962_v4  ;;  %v2963_v38 = vpack.c.bf16 %v2899_v39, %v2899_v39 }
 0x56e   : > { %v2964_v15 = vpack.c.bf16 %v2900_v21, %v2900_v21  ;;  %v2902_v45 = vmul.f32 %v6322_v42, %v2886_v26  ;;  %v2904_v42 = vmul.f32 %v6336_v55, %v2886_v26  ;;  %v7549_v55 = vld [vmem:[#allocation18_spill] sm:$0xff] }
 0x56f   : > { %4466 = vrcp.f32 %v2876_v13  ;;  %v3152_v0 = vpack.c.b16 %v3091_v47, %v3090_v2  ;;  %v3092_v22 = vunpack.c.l.b16 %v2963_v38 }
 0x570   : > { %v3093_v17 = vunpack.c.l.b16 %v2964_v15  ;;  %v2966_v40 = vpack.c.bf16 %v2902_v45, %v2902_v45  ;;  %v2968_v2 = vpack.c.bf16 %v2904_v42, %v2904_v42  ;;  %v2907_v15 = vmul.f32 %v6366_v53, %v2886_v26  ;;  %v7551_v42 = vld [vmem:[#allocation20_spill] sm:$0xff] }
 0x571   : > { %v2887_v45 = vperm.slane %v6729_v48, 0 }
 0x572   : > { %v3095_v24 = vunpack.c.l.b16 %v2966_v40 }
 0x573   : > { %v2910_v53 = vmul.f32 %v6372_v61, %v2887_v45 }
 0x575   : > { %v4467_v43 = vpop.eup %4466 }
 0x576   : > { %v6755_v31 = vperm.slane %v4467_v43, 0  ;;  %v3471_v14 = vrot.slane %v4467_v43, 1 }
 0x578   : > { %v2956_v10 = vmul.f32 %v6717_v30, %v6755_v31  ;;  %v3472_v60 = vsel %vm1597_vm8, %v3471_v14, %v3470_v8  ;;  %v3153_v30 = vpack.c.b16 %v3093_v17, %v3092_v22  ;;  %v2955_v62 = vmul.f32 %v6697_v58, %v6755_v31 }
 0x579   : > { %v3474_v54 = vmul.f32 %v6701_v28, %v3472_v60  ;;  %v2905_v14 = vmul.f32 %v6345_v12, %v2886_v26  ;;  %v2908_v22 = vmul.f32 %v6379_v16, %v2886_v26  ;;  %v2971_v17 = vpack.c.bf16 %v2907_v15, %v2907_v15 }
 0x57a   : > { %v3020_v28 = vpack.c.bf16 %v2956_v10, %v2956_v10  ;;  %v3019_v51 = vpack.c.bf16 %v2955_v62, %v2955_v62  ;;  %v2906_v10 = vmul.f32 %v6352_v18, %v2886_v26  ;;  %v2974_v16 = vpack.c.bf16 %v2910_v53, %v2910_v53 }
 0x57b   : > { %v3475_v32 = vpack.c.bf16 %v3474_v54, %v3474_v54  ;;  %4042 = vmatmul.msk.bf16.gmra.mxu2 %vm2266_vm9, %v3151_v6  ;;  %v2901_v6 = vmul.f32 %v6312_v57, %v2886_v26  ;;  %v2903_v57 = vmul.f32 %v6331_v19, %v2886_v26  ;;  %v2969_v60 = vpack.c.bf16 %v2905_v14, %v2905_v14  ;;  %v4097_v26 = vld [vmem:[%s7178_s11 + $0x8] sm:$0xff] }
 0x57c   : > { %v6772_v5 = vunpack.c.l.b16 %v3020_v28  ;;  %v6774_v4 = vunpack.c.l.b16 %v3019_v51  ;;  %v2970_v54 = vpack.c.bf16 %v2906_v10, %v2906_v10  ;;  %v2972_v12 = vpack.c.bf16 %v2908_v22, %v2908_v22  ;;  %v7550_v51 = vld [vmem:[#allocation19_spill] sm:$0xff]  ;;  %3817 = vmatpush.bf16.msrb.mxu1 %v4097_v26 }
 0x57d   : > { %4073 = vmatmul.msk.bf16.vlgmr.msra.gmra.mxu0 %vm2266_vm9, %v3475_v32  ;;  %v2965_v36 = vpack.c.bf16 %v2901_v6, %v2901_v6  ;;  %v2967_v58 = vpack.c.bf16 %v2903_v57, %v2903_v57  ;;  %v1394_v32 = vpop.f32.mrf.mxu1  ;;  %v3098_v39 = vunpack.c.l.b16 %v2969_v60  ;;  %v3100_v18 = vunpack.c.l.b16 %v2971_v17 }
 0x57e   : > { %v3181_v37 = vpack.c.b16 %v6772_v5, %v6774_v4  ;;  %v3099_v21 = vunpack.c.l.b16 %v2970_v54  ;;  %v3101_v28 = vunpack.c.l.b16 %v2972_v12  ;;  %v3103_v48 = vunpack.c.l.b16 %v2974_v16 }
 0x57f   : > { %v3094_v13 = vunpack.c.l.b16 %v2965_v36  ;;  %v3096_v47 = vunpack.c.l.b16 %v2967_v58  ;;  %v2909_v36 = vmul.f32 %v6370_v25, %v2887_v45  ;;  %v2911_v58 = vmul.f32 %v6383_v59, %v2887_v45 }
 0x580   : > { %v3156_v38 = vpack.c.b16 %v3099_v21, %v3098_v39  ;;  %v3157_v6 = vpack.c.b16 %v3101_v28, %v3100_v18 }
 0x581   : > { %v3154_v8 = vpack.c.b16 %v3095_v24, %v3094_v13  ;;  %v2973_v40 = vpack.c.bf16 %v2909_v36, %v2909_v36  ;;  %v2975_v14 = vpack.c.bf16 %v2911_v58, %v2911_v58  ;;  %v7555_v36 = vld [vmem:[#allocation52_spill] sm:$0xff] }
 0x582   : > { %v2913_v53 = vmul.f32 %v7555_v36, %v2887_v45 }
 0x583   : > { %v3102_v24 = vunpack.c.l.b16 %v2973_v40  ;;  %v3104_v39 = vunpack.c.l.b16 %v2975_v14  ;;  %v7556_v40 = vld [vmem:[#allocation54_spill] sm:$0xff] }
 0x584   : > { %v2914_v16 = vmul.f32 %v7556_v40, %v2887_v45 }
 0x585   : > { %v1396_v19 = vpop.f32.mrf.mxu1  ;;  %3969 = vmatmul.msk.bf16.gmra.mxu1 %vm573_vm0, %v7549_v55  ;;  %v3158_v57 = vpack.c.b16 %v3103_v48, %v3102_v24  ;;  %v7553_v55 = vld [vmem:[#allocation30_spill] sm:$0xff] }
 0x58b   : > { %4043 = vmatmul.msk.bf16.gmra.mxu2 %vm2266_vm9, %v3152_v0  ;;  %v3097_v0 = vunpack.c.l.b16 %v2968_v2  ;;  %v7552_v2 = vld [vmem:[#allocation51_spill] sm:$0xff] }
 0x58d   : > { %v3155_v43 = vpack.c.b16 %v3097_v0, %v3096_v47  ;;  %v2912_v47 = vmul.f32 %v7552_v2, %v2887_v45 }
 0x58f   : > { %v2976_v10 = vpack.c.bf16 %v2912_v47, %v2912_v47 }
 0x591   : > { %v3105_v21 = vunpack.c.l.b16 %v2976_v10 }
 0x593   : > { %v3159_v17 = vpack.c.b16 %v3105_v21, %v3104_v39  ;;  %v2915_v21 = vmul.f32 %v6402_v35, %v2887_v45  ;;  %v6833_v35 = vperm.slane %v6734_v1, 0 }
 0x59b   : > { %4044 = vmatmul.msk.bf16.gmra.mxu2 %vm2266_vm9, %v3153_v30  ;;  %v1399_v30 = vpop.f32.mrf.mxu1 }
 0x5a3   : > { %v1401_v62 = vpop.f32.mrf.mxu1  ;;  %3970 = vmatmul.msk.bf16.gmra.mxu1 %vm573_vm0, %v7550_v51  ;;  %v7554_v51 = vld [vmem:[#allocation21_spill] sm:$0xff] }
 0x5ab   : > { %4045 = vmatmul.msk.bf16.gmra.mxu2 %vm2266_vm9, %v3154_v8  ;;  %v1404_v13 = vpop.f32.mrf.mxu1  ;;  %v6801_v8 = vld [vmem:[%s7177_s10] ss:$0 sm:$0xff] }
 0x5ac   : > { %v1395_v25 = vadd.f32 %v6801_v8, %v1394_v32  ;;  %v1397_v54 = vadd.f32 %v6801_v8, %v1396_v19  ;;  %v1652_v15 = vadd.f32 %v6801_v8, %v7553_v55  ;;  %v1405_v39 = vadd.f32 %v6801_v8, %v1404_v13 }
 0x5b3   : > { %v1406_v61 = vpop.f32.mrf.mxu1  ;;  %3971 = vmatmul.msk.bf16.gmra.mxu1 %vm573_vm0, %v7551_v42  ;;  %v2978_v42 = vpack.c.bf16 %v2914_v16, %v2914_v16  ;;  %v7557_v16 = vld [vmem:[#allocation22_spill] sm:$0xff] }
 0x5b5   : > { %v3107_v47 = vunpack.c.l.b16 %v2978_v42 }
 0x5bb   : > { %4046 = vmatmul.msk.bf16.gmra.mxu2 %vm2266_vm9, %v3155_v43  ;;  %v1409_v60 = vpop.f32.mrf.mxu1 }
 0x5c3   : > { %v1411_v19 = vpop.f32.mrf.mxu1  ;;  %3972 = vmatmul.msk.bf16.gmra.mxu1 %vm573_vm0, %v7554_v51 }
 0x5cb   : > { %4047 = vmatmul.msk.bf16.gmra.mxu2 %vm2266_vm9, %v3156_v38 }
 0x5db   : > { %4048 = vmatmul.msk.bf16.gmra.mxu2 %vm2266_vm9, %v3157_v6  ;;  %v1400_v6 = vadd.f32 %v6801_v8, %v1399_v30  ;;  %v1402_v30 = vadd.f32 %v6801_v8, %v1401_v62 }
 0x5eb   : > { %4049 = vmatmul.msk.bf16.gmra.mxu2 %vm2266_vm9, %v3158_v57 }
 0x5ee   : > { %v3291_v0 = vpop.f32.mrf.mxu2 }
 0x5ef   : > { %v3492_v43 = vmul.f32 %v3291_v0, %v1395_v25  ;;  %v2977_v25 = vpack.c.bf16 %v2913_v53, %v2913_v53 }
 0x5f1   : > { %v3556_v22 = vsel %vm573_vm0, %v3492_v43, 0.0  ;;  %v3106_v2 = vunpack.c.l.b16 %v2977_v25 }
 0x5f3   : > { %v3160_v10 = vpack.c.b16 %v3107_v47, %v3106_v2  ;;  %v1412_v2 = vadd.f32 %v6801_v8, %v1411_v19 }
 0x5f6   : > { %v3293_v32 = vpop.f32.mrf.mxu2 }
 0x5f7   : > { %v3493_v38 = vmul.f32 %v3293_v32, %v1397_v54  ;;  %v2916_v32 = vmul.f32 %v6409_v3, %v2887_v45  ;;  %v1410_v45 = vadd.f32 %v6801_v8, %v1409_v60 }
 0x5f9   : > { %v3557_v59 = vsel %vm573_vm0, %v3493_v38, 0.0 }
 0x5fa   : > { %v3488_v12 = vpop.f32.mrf.mxu0  ;;  %v3558_v18 = vadd.f32 %v3557_v59, %v3556_v22  ;;  %v2980_v22 = vpack.c.bf16 %v2916_v32, %v2916_v32 }
 0x5fb   : > { %v6814_v28 = vmul.f32 %v3488_v12, %v1652_v15  ;;  %4050 = vmatmul.msk.bf16.gmra.mxu2 %vm2266_vm9, %v3159_v17  ;;  %v2979_v15 = vpack.c.bf16 %v2915_v21, %v2915_v21  ;;  %v1414_v17 = vpop.f32.mrf.mxu1  ;;  %v1407_v12 = vadd.f32 %v6801_v8, %v1406_v61  ;;  %v7558_v61 = vld [vmem:[#allocation58_spill] sm:$0xff] }
 0x5fc   : > { %v1415_v21 = vadd.f32 %v6801_v8, %v1414_v17 }
 0x5fe   : > { %v3296_v26 = vpop.f32.mrf.mxu2 }
 0x5ff   : > { %v3494_v24 = vmul.f32 %v3296_v26, %v1400_v6  ;;  %v3109_v6 = vunpack.c.l.b16 %v2980_v22  ;;  %v2917_v26 = vmul.f32 %v7558_v61, %v6833_v35 }
 0x601   : > { %v3559_v48 = vsel %vm573_vm0, %v3494_v24, 0.0  ;;  %v7559_v24 = vld [vmem:[#allocation59_spill] sm:$0xff]  ;;  %v2981_v42 = vpack.c.bf16 %v2917_v26, %v2917_v26 }
 0x602   : > { %v3490_v57 = vpop.f32.mrf.mxu0  ;;  %v3560_v58 = vadd.f32 %v3559_v48, %v3558_v18  ;;  %v3108_v18 = vunpack.c.l.b16 %v2979_v15  ;;  %v2918_v48 = vmul.f32 %v7559_v24, %v6833_v35  ;;  %v7562_v15 = vld [vmem:[#allocation16_spill] sm:$0xff] }
 0x603   : > { %v1416_v40 = vpop.f32.mrf.mxu1  ;;  %3973 = vmatmul.msk.bf16.gmra.mxu1 %vm573_vm0, %v7557_v16  ;;  %v3110_v47 = vunpack.c.l.b16 %v2981_v42  ;;  %v2920_v22 = vmul.f32 %v7562_v15, %v6833_v35 }
 0x604   : > { %v3161_v53 = vpack.c.b16 %v3109_v6, %v3108_v18 }
 0x606   : > { %v3298_v0 = vpop.f32.mrf.mxu2 }
 0x607   : > { %v3495_v43 = vmul.f32 %v3298_v0, %v1402_v30 }
 0x609   : > { %v3561_v14 = vsel %vm573_vm0, %v3495_v43, 0.0 }
 0x60a   : > { %v3562_v54 = vadd.f32 %v3561_v14, %v3560_v58  ;;  %v2982_v58 = vpack.c.bf16 %v2918_v48, %v2918_v48 }
 0x60b   : > { %4051 = vmatmul.msk.bf16.gmra.mxu2 %vm2266_vm9, %v3160_v10  ;;  %v1419_v60 = vpop.f32.mrf.mxu1 }
 0x60c   : > { %v3111_v0 = vunpack.c.l.b16 %v2982_v58  ;;  %v1420_v58 = vadd.f32 %v6801_v8, %v1419_v60 }
 0x60e   : > { %v3301_v38 = vpop.f32.mrf.mxu2 }
 0x60f   : > { %v3496_v55 = vmul.f32 %v3301_v38, %v1405_v39 }
 0x611   : > { %v3563_v62 = vsel %vm573_vm0, %v3496_v55, 0.0  ;;  %v7560_v55 = vld [vmem:[#allocation23_spill] sm:$0xff] }
 0x612   : > { %v3564_v59 = vadd.f32 %v3563_v62, %v3562_v54  ;;  %v3162_v54 = vpack.c.b16 %v3111_v0, %v3110_v47  ;;  %v7561_v62 = vld [vmem:[#allocation13_spill] sm:$0xff]  ;;  %v2922_v0 = vmul.f32 %v6489_v27, %v6833_v35 }
 0x613   : > { %v1421_v38 = vpop.f32.mrf.mxu1  ;;  %3974 = vmatmul.msk.bf16.gmra.mxu1 %vm573_vm0, %v7560_v55  ;;  %v2919_v19 = vmul.f32 %v7561_v62, %v6833_v35 }
 0x616   : > { %v3303_v51 = vpop.f32.mrf.mxu2 }
 0x617   : > { %v3497_v13 = vmul.f32 %v3303_v51, %v1407_v12  ;;  %v2983_v51 = vpack.c.bf16 %v2919_v19, %v2919_v19 }
 0x619   : > { %v3565_v36 = vsel %vm573_vm0, %v3497_v13, 0.0  ;;  %v2984_v13 = vpack.c.bf16 %v2920_v22, %v2920_v22 }
 0x61a   : > { %v3566_v3 = vadd.f32 %v3565_v36, %v3564_v59 }
 0x61b   : > { %4052 = vmatmul.msk.bf16.gmra.mxu2 %vm2266_vm9, %v3161_v53  ;;  %v1424_v53 = vpop.f32.mrf.mxu1  ;;  %v3113_v16 = vunpack.c.l.b16 %v2984_v13 }
 0x61c   : > { %v1425_v27 = vadd.f32 %v6801_v8, %v1424_v53 }
 0x61e   : > { %v3306_v57 = vpop.f32.mrf.mxu2 }
 0x61f   : > { %v3498_v25 = vmul.f32 %v3306_v57, %v1410_v45  ;;  %v3112_v45 = vunpack.c.l.b16 %v2983_v51  ;;  %v2923_v51 = vmul.f32 %v6522_v49, %v6833_v35 }
 0x621   : > { %v3567_v1 = vsel %vm573_vm0, %v3498_v25, 0.0 }
 0x622   : > { %v3568_v30 = vadd.f32 %v3567_v1, %v3566_v3  ;;  %v1417_v3 = vadd.f32 %v6801_v8, %v1416_v40  ;;  %v3163_v1 = vpack.c.b16 %v3113_v16, %v3112_v45  ;;  %v7563_v40 = vld [vmem:[#allocation24_spill] sm:$0xff] }
 0x626   : > { %v3308_v43 = vpop.f32.mrf.mxu2 }
 0x627   : > { %v3499_v14 = vmul.f32 %v3308_v43, %v1412_v2  ;;  %v7564_v2 = vld [vmem:[#allocation25_spill] sm:$0xff] }
 0x628   : > { %v2921_v47 = vmul.f32 %v7564_v2, %v6833_v35 }
 0x629   : > { %v3569_v10 = vsel %vm573_vm0, %v3499_v14, 0.0 }
 0x62a   : > { %v3570_v39 = vadd.f32 %v3569_v10, %v3568_v30  ;;  %v1426_v30 = vpop.f32.mrf.mxu1  ;;  %3975 = vmatmul.msk.bf16.gmra.mxu1 %vm573_vm0, %v7563_v40 }
 0x62b   : > { %4053 = vmatmul.msk.bf16.gmra.mxu2 %vm2266_vm9, %v3162_v54  ;;  %v2985_v54 = vpack.c.bf16 %v2921_v47, %v2921_v47  ;;  %v1427_v53 = vadd.f32 %v6801_v8, %v1426_v30  ;;  %v7567_v30 = vld [vmem:[#allocation15_spill] sm:$0xff] }
 0x62c   : > { %v3571_v32 = vrot.slane %v3570_v39, 4 }
 0x62d   : > { %v3114_v55 = vunpack.c.l.b16 %v2985_v54 }
 0x62e   : > { %v3572_v59 = vadd.f32 %v3571_v32, %v3570_v39  ;;  %v3311_v12 = vpop.f32.mrf.mxu2  ;;  %v2986_v39 = vpack.c.bf16 %v2922_v0, %v2922_v0  ;;  %v1422_v32 = vadd.f32 %v6801_v8, %v1421_v38  ;;  %v2924_v38 = vmul.f32 %v6551_v50, %v6833_v35 }
 0x62f   : > { %v3500_v18 = vmul.f32 %v3311_v12, %v1415_v21 }
 0x630   : > { %v3573_v6 = vrot.slane %v3572_v59, 2  ;;  %v3115_v62 = vunpack.c.l.b16 %v2986_v39  ;;  %v2988_v45 = vpack.c.bf16 %v2924_v38, %v2924_v38  ;;  %v7570_v38 = vld [vmem:[#allocation40_spill] sm:$0xff] }
 0x631   : > { %v3577_v57 = vsel %vm573_vm0, %v3500_v18, 0.0 }
 0x632   : > { %v3574_v17 = vadd.f32 %v3573_v6, %v3572_v59  ;;  %v1429_v60 = vpop.f32.mrf.mxu1  ;;  %v3164_v59 = vpack.c.b16 %v3115_v62, %v3114_v55  ;;  %v7565_v6 = vld [vmem:[#allocation26_spill] sm:$0xff] }
 0x633   : > { %v1430_v35 = vadd.f32 %v6801_v8, %v1429_v60 }
 0x634   : > { %v3575_v36 = vrot.slane %v3574_v17, 1 }
 0x636   : > { %v3576_v61 = vadd.f32 %v3575_v36, %v3574_v17  ;;  %v3313_v26 = vpop.f32.mrf.mxu2 }
 0x637   : > { %v3501_v24 = vmul.f32 %v3313_v26, %v1417_v3  ;;  %v2987_v3 = vpack.c.bf16 %v2923_v51, %v2923_v51  ;;  %v3117_v26 = vunpack.c.l.b16 %v2988_v45 }
 0x638   : > { %v6856_v48 = vadd.f32 %v6814_v28, %v3576_v61 }
 0x639   : > { %v3578_v25 = vsel %vm573_vm0, %v3501_v24, 0.0  ;;  %v3116_v61 = vunpack.c.l.b16 %v2987_v3 }
 0x63a   : > { %v3579_v42 = vadd.f32 %v3578_v25, %v3577_v57  ;;  %v1431_v18 = vpop.f32.mrf.mxu1  ;;  %3976 = vmatmul.msk.bf16.gmra.mxu1 %vm573_vm0, %v7565_v6  ;;  %v7569_v6 = vld [vmem:[#allocation10_spill] sm:$0xff] }
 0x63b   : > { %4054 = vmatmul.msk.bf16.gmra.mxu2 %vm2266_vm9, %v3163_v1  ;;  %v3165_v49 = vpack.c.b16 %v3117_v26, %v3116_v61 }
 0x63e   : > { %v3316_v43 = vpop.f32.mrf.mxu2 }
 0x63f   : > { %v3502_v14 = vmul.f32 %v3316_v43, %v1420_v58  ;;  %v7566_v58 = vld [vmem:[#allocation14_spill] sm:$0xff] }
 0x641   : > { %v3580_v10 = vsel %vm573_vm0, %v3502_v14, 0.0  ;;  %v7568_v14 = vld [vmem:[#allocation29_spill] sm:$0xff] }
 0x642   : > { %v3581_v21 = vadd.f32 %v3580_v10, %v3579_v42  ;;  %v1434_v57 = vpop.f32.mrf.mxu1  ;;  %v6883_v42 = vperm.slane %v6736_v34, 0 }
 0x644   : > { %v2925_v40 = vmul.f32 %v7566_v58, %v6883_v42  ;;  %v2926_v2 = vmul.f32 %v7567_v30, %v6883_v42  ;;  %v2927_v51 = vmul.f32 %v7569_v6, %v6883_v42 }
 0x646   : > { %v3318_v19 = vpop.f32.mrf.mxu2  ;;  %v2989_v10 = vpack.c.bf16 %v2925_v40, %v2925_v40  ;;  %v2990_v54 = vpack.c.bf16 %v2926_v2, %v2926_v2 }
 0x647   : > { %v3503_v15 = vmul.f32 %v3318_v19, %v1422_v32 }
 0x648   : > { %v3118_v60 = vunpack.c.l.b16 %v2989_v10  ;;  %v3119_v32 = vunpack.c.l.b16 %v2990_v54 }
 0x649   : > { %v3582_v22 = vsel %vm573_vm0, %v3503_v15, 0.0 }
 0x64a   : > { %v3583_v12 = vadd.f32 %v3582_v22, %v3581_v21  ;;  %v1436_v43 = vpop.f32.mrf.mxu1  ;;  %3977 = vmatmul.msk.bf16.gmra.mxu1 %vm573_vm0, %v7568_v14  ;;  %v1432_v21 = vadd.f32 %v6801_v8, %v1431_v18  ;;  %v3166_v22 = vpack.c.b16 %v3119_v32, %v3118_v60  ;;  %v2928_v18 = vmul.f32 %v7570_v38, %v6883_v42 }
 0x64b   : > { %4055 = vmatmul.msk.bf16.gmra.mxu2 %vm2266_vm9, %v3164_v59  ;;  %v3749_v14 = vpack.c.bf16 %v6856_v48, %v6856_v48 }
 0x64c   : > { %v2992_v61 = vpack.c.bf16 %v2928_v18, %v2928_v18 }
 0x64d   : > { %v3773_v60 = vunpack.c.l.b16 %v3749_v14  ;;  %v7574_v14 = vld [vmem:[#allocation17_spill] sm:$0xff] }
 0x64e   : > { %v3321_v13 = vpop.f32.mrf.mxu2 }
 0x64f   : > { %v3504_v17 = vmul.f32 %v3321_v13, %v1425_v27 }
 0x651   : > { %v3584_v36 = vsel %vm573_vm0, %v3504_v17, 0.0 }
 0x652   : > { %v3585_v16 = vadd.f32 %v3584_v36, %v3583_v12  ;;  %v1439_v19 = vpop.f32.mrf.mxu1  ;;  %v1435_v12 = vadd.f32 %v6801_v8, %v1434_v57  ;;  %v1437_v57 = vadd.f32 %v6801_v8, %v1436_v43 }
 0x653   : > { %v1440_v43 = vadd.f32 %v6801_v8, %v1439_v19 }
 0x656   : > { %v3323_v24 = vpop.f32.mrf.mxu2 }
 0x657   : > { %v3505_v25 = vmul.f32 %v3323_v24, %v1427_v53  ;;  %v2991_v53 = vpack.c.bf16 %v2927_v51, %v2927_v51 }
 0x659   : > { %v3586_v1 = vsel %vm573_vm0, %v3505_v25, 0.0  ;;  %v3120_v25 = vunpack.c.l.b16 %v2991_v53  ;;  %v2932_v53 = vmul.f32 %v6635_v9, %v6883_v42  ;;  %v6935_v9 = vperm.slane %v6741_v56, 0 }
 0x65a   : > { %v3587_v50 = vadd.f32 %v3586_v1, %v3585_v16  ;;  %v1441_v45 = vpop.f32.mrf.mxu1  ;;  %v7571_v16 = vld [vmem:[#allocation32_spill] sm:$0xff]  ;;  %v3121_v1 = vunpack.c.l.b16 %v2992_v61 }
 0x65b   : > { %4056 = vmatmul.msk.bf16.gmra.mxu2 %vm2266_vm9, %v3165_v49  ;;  %3978 = vmatmul.msk.bf16.gmra.mxu1 %vm573_vm0, %v7571_v16  ;;  %v2931_v16 = vmul.f32 %v6613_v29, %v6883_v42 }
 0x65e   : > { %v3326_v47 = vpop.f32.mrf.mxu2 }
 0x65f   : > { %v3506_v0 = vmul.f32 %v3326_v47, %v1430_v35 }
 0x661   : > { %v3588_v34 = vsel %vm573_vm0, %v3506_v0, 0.0  ;;  %v3167_v0 = vpack.c.b16 %v3121_v1, %v3120_v25  ;;  %v2995_v25 = vpack.c.bf16 %v2931_v16, %v2931_v16  ;;  %v2996_v1 = vpack.c.bf16 %v2932_v53, %v2932_v53 }
 0x662   : > { %v3589_v39 = vadd.f32 %v3588_v34, %v3587_v50  ;;  %v3726_v50 = vrot.slane %v6814_v28, 1  ;;  %v1444_v30 = vpop.f32.mrf.mxu1 }
 0x666   : > { %v3328_v55 = vpop.f32.mrf.mxu2 }
 0x667   : > { %v3507_v62 = vmul.f32 %v3328_v55, %v1432_v21  ;;  %v2930_v21 = vmul.f32 %v6590_v46, %v6883_v42 }
 0x669   : > { %v3590_v15 = vsel %vm573_vm0, %v3507_v62, 0.0 }
 0x66a   : > { %v3591_v59 = vadd.f32 %v3590_v15, %v3589_v39  ;;  %v2929_v39 = vmul.f32 %v6567_v63, %v6883_v42  ;;  %v1446_v48 = vpop.f32.mrf.mxu1  ;;  %v1442_v63 = vadd.f32 %v6801_v8, %v1441_v45 }
 0x66b   : > { %4057 = vmatmul.msk.bf16.gmra.mxu2 %vm2266_vm9, %v3166_v22  ;;  %v7572_v22 = vld [vmem:[#allocation35_spill] sm:$0xff] }
 0x66c   : > { %v3592_v27 = vrot.slane %v3591_v59, 4  ;;  %3979 = vmatmul.msk.bf16.gmra.mxu1 %vm573_vm0, %v7572_v22 }
 0x66e   : > { %v3593_v13 = vadd.f32 %v3592_v27, %v3591_v59  ;;  %v3331_v17 = vpop.f32.mrf.mxu2  ;;  %v2993_v59 = vpack.c.bf16 %v2929_v39, %v2929_v39 }
 0x66f   : > { %v3508_v36 = vmul.f32 %v3331_v17, %v1435_v12  ;;  %v2994_v12 = vpack.c.bf16 %v2930_v21, %v2930_v21 }
 0x670   : > { %v3594_v3 = vrot.slane %v3593_v13, 2  ;;  %v3122_v6 = vunpack.c.l.b16 %v2993_v59 }
 0x671   : > { %v3598_v2 = vsel %vm573_vm0, %v3508_v36, 0.0  ;;  %v3123_v46 = vunpack.c.l.b16 %v2994_v12 }
 0x672   : > { %v3595_v26 = vadd.f32 %v3594_v3, %v3593_v13  ;;  %v1449_v18 = vpop.f32.mrf.mxu1  ;;  %v1445_v3 = vadd.f32 %v6801_v8, %v1444_v30 }
 0x673   : > { %v3168_v17 = vpack.c.b16 %v3123_v46, %v3122_v6 }
 0x674   : > { %v3596_v24 = vrot.slane %v3595_v26, 1 }
 0x676   : > { %v3597_v49 = vadd.f32 %v3596_v24, %v3595_v26  ;;  %v3333_v35 = vpop.f32.mrf.mxu2  ;;  %v7573_v24 = vld [vmem:[#allocation38_spill] sm:$0xff] }
 0x677   : > { %v3509_v58 = vmul.f32 %v3333_v35, %v1437_v57  ;;  %v3124_v35 = vunpack.c.l.b16 %v2995_v25 }
 0x678   : > { %v3742_v40 = vadd.f32 %v3726_v50, %v3597_v49  ;;  %v1447_v50 = vadd.f32 %v6801_v8, %v1446_v48 }
 0x679   : > { %v3599_v47 = vsel %vm573_vm0, %v3509_v58, 0.0  ;;  %v3125_v58 = vunpack.c.l.b16 %v2996_v1 }
 0x67a   : > { %v3750_v34 = vpack.c.bf16 %v3742_v40, %v3742_v40  ;;  %v3600_v10 = vadd.f32 %v3599_v47, %v3598_v2  ;;  %v1451_v26 = vpop.f32.mrf.mxu1 }
 0x67b   : > { %4058 = vmatmul.msk.bf16.gmra.mxu2 %vm2266_vm9, %v3167_v0  ;;  %v3169_v2 = vpack.c.b16 %v3125_v58, %v3124_v35  ;;  %v1450_v0 = vadd.f32 %v6801_v8, %v1449_v18  ;;  %v1452_v48 = vadd.f32 %v6801_v8, %v1451_v26  ;;  %v7577_v18 = vld [vmem:[#allocation27_spill] sm:$0xff]  ;;  %v7579_v26 = vld [vmem:[#allocation44_spill] sm:$0xff] }
 0x67c   : > { %v3774_v54 = vunpack.c.l.b16 %v3750_v34  ;;  %3980 = vmatmul.msk.bf16.gmra.mxu1 %vm573_vm0, %v7573_v24  ;;  %v2933_v34 = vmul.f32 %v7574_v14, %v6935_v9 }
 0x67e   : > { %v3781_v32 = vrot.slane %v3774_v54, 7  ;;  %v3336_v55 = vpop.f32.mrf.mxu2 }
 0x67f   : > { %v3510_v62 = vmul.f32 %v3336_v55, %v1440_v43 }
 0x680   : > { %v6917_v15 = vsel %vm1579_vm2, %v3781_v32, %v3773_v60  ;;  %v7576_v60 = vld [vmem:[#allocation41_spill] sm:$0xff]  ;;  %v2997_v32 = vpack.c.bf16 %v2933_v34, %v2933_v34 }
 0x681   : > { %v3601_v19 = vsel %vm573_vm0, %v3510_v62, 0.0 }
 0x682   : > { %v3602_v27 = vadd.f32 %v3601_v19, %v3600_v10  ;;  %v1454_v30 = vpop.f32.mrf.mxu1  ;;  %v7575_v10 = vld [vmem:[#allocation9_spill] sm:$0xff]  ;;  %v3126_v22 = vunpack.c.l.b16 %v2997_v32 }
 0x683   : > { %v2934_v43 = vmul.f32 %v7575_v10, %v6935_v9 }
 0x685   : > { %v2998_v55 = vpack.c.bf16 %v2934_v43, %v2934_v43 }
 0x686   : > { %v3338_v51 = vpop.f32.mrf.mxu2 }
 0x687   : > { %v3511_v38 = vmul.f32 %v3338_v51, %v1442_v63  ;;  %v3127_v19 = vunpack.c.l.b16 %v2998_v55  ;;  %v1455_v51 = vadd.f32 %v6801_v8, %v1454_v30 }
 0x689   : > { %v3603_v13 = vsel %vm573_vm0, %v3511_v38, 0.0  ;;  %v3170_v6 = vpack.c.b16 %v3127_v19, %v3126_v22  ;;  %v7582_v19 = vld [vmem:[#allocation47_spill] sm:$0xff] }
 0x68a   : > { %v3604_v36 = vadd.f32 %v3603_v13, %v3602_v27  ;;  %v1456_v21 = vpop.f32.mrf.mxu1  ;;  %v2935_v13 = vmul.f32 %v7577_v18, %v6935_v9 }
 0x68b   : > { %4059 = vmatmul.msk.bf16.gmra.mxu2 %vm2266_vm9, %v3168_v17  ;;  %v7578_v17 = vld [vmem:[#allocation46_spill] sm:$0xff] }
 0x68c   : > { %3981 = vmatmul.msk.bf16.gmra.mxu1 %vm573_vm0, %v7576_v60  ;;  %v2999_v24 = vpack.c.bf16 %v2935_v13, %v2935_v13  ;;  %v7581_v60 = vld [vmem:[#allocation43_spill] sm:$0xff] }
 0x68e   : > { %v3341_v45 = vpop.f32.mrf.mxu2 }
 0x68f   : > { %v3512_v61 = vmul.f32 %v3341_v45, %v1445_v3 }
 0x691   : > { %v3605_v57 = vsel %vm573_vm0, %v3512_v61, 0.0 }
 0x692   : > { %v3606_v49 = vadd.f32 %v3605_v57, %v3604_v36  ;;  %v1459_v27 = vpop.f32.mrf.mxu1  ;;  %v2936_v36 = vmul.f32 %v7578_v17, %v6935_v9 }
 0x693   : > { %v1460_v43 = vadd.f32 %v6801_v8, %v1459_v27 }
 0x694   : > { %v3000_v57 = vpack.c.bf16 %v2936_v36, %v2936_v36 }
 0x696   : > { %v3343_v40 = vpop.f32.mrf.mxu2  ;;  %v3129_v35 = vunpack.c.l.b16 %v3000_v57 }
 0x697   : > { %v3513_v29 = vmul.f32 %v3343_v40, %v1447_v50  ;;  %v3128_v50 = vunpack.c.l.b16 %v2999_v24  ;;  %v3727_v40 = vrot.slane %v6814_v28, 2 }
 0x699   : > { %v3607_v42 = vsel %vm573_vm0, %v3513_v29, 0.0  ;;  %v3171_v14 = vpack.c.b16 %v3129_v35, %v3128_v50 }
 0x69a   : > { %v3608_v47 = vadd.f32 %v3607_v42, %v3606_v49  ;;  %v1461_v61 = vpop.f32.mrf.mxu1  ;;  %v1457_v49 = vadd.f32 %v6801_v8, %v1456_v21 }
 0x69b   : > { %4060 = vmatmul.msk.bf16.gmra.mxu2 %vm2266_vm9, %v3169_v2 }
 0x69c   : > { %3982 = vmatmul.msk.bf16.gmra.mxu1 %vm573_vm0, %v7579_v26 }
 0x69e   : > { %v3346_v54 = vpop.f32.mrf.mxu2 }
 0x69f   : > { %v3514_v39 = vmul.f32 %v3346_v54, %v1450_v0 }
 0x6a1   : > { %v3609_v56 = vsel %vm573_vm0, %v3514_v39, 0.0  ;;  %v7580_v39 = vld [vmem:[#allocation60_spill] sm:$0xff] }
 0x6a2   : > { %v3610_v62 = vadd.f32 %v3609_v56, %v3608_v47  ;;  %v1464_v2 = vpop.f32.mrf.mxu1  ;;  %v2937_v21 = vmul.f32 %v7580_v39, %v6935_v9  ;;  %v2938_v56 = vmul.f32 %v7581_v60, %v6935_v9 }
 0x6a4   : > { %v3002_v27 = vpack.c.bf16 %v2938_v56, %v2938_v56 }
 0x6a6   : > { %v3348_v59 = vpop.f32.mrf.mxu2 }
 0x6a7   : > { %v3515_v12 = vmul.f32 %v3348_v59, %v1452_v48 }
 0x6a9   : > { %v3611_v63 = vsel %vm573_vm0, %v3515_v12, 0.0  ;;  %v3001_v12 = vpack.c.bf16 %v2937_v21, %v2937_v21 }
 0x6aa   : > { %v3612_v46 = vadd.f32 %v3611_v63, %v3610_v62  ;;  %v1466_v22 = vpop.f32.mrf.mxu1 }
 0x6ab   : > { %4061 = vmatmul.msk.bf16.gmra.mxu2 %vm2266_vm9, %v3170_v6  ;;  %v1462_v6 = vadd.f32 %v6801_v8, %v1461_v61 }
 0x6ac   : > { %v3613_v38 = vrot.slane %v3612_v46, 4  ;;  %3983 = vmatmul.msk.bf16.gmra.mxu1 %vm573_vm0, %v7582_v19  ;;  %v4096_v19 = vld [vmem:[%s7178_s11] sm:$0xff] }
 0x6ad   : > { %3818 = vmatpush.bf16.msrb.mxu1 %v4096_v19 }
 0x6ae   : > { %v3614_v3 = vadd.f32 %v3613_v38, %v3612_v46  ;;  %v3351_v16 = vpop.f32.mrf.mxu2  ;;  %v3130_v46 = vunpack.c.l.b16 %v3001_v12 }
 0x6af   : > { %v3516_v53 = vmul.f32 %v3351_v16, %v1455_v51  ;;  %v3131_v51 = vunpack.c.l.b16 %v3002_v27  ;;  %v7583_v16 = vld [vmem:[#allocation45_spill] sm:$0xff] }
 0x6b0   : > { %v3615_v45 = vrot.slane %v3614_v3, 2 }
 0x6b1   : > { %v3619_v47 = vsel %vm573_vm0, %v3516_v53, 0.0  ;;  %v2939_v53 = vmul.f32 %v7583_v16, %v6935_v9 }
 0x6b2   : > { %v3616_v25 = vadd.f32 %v3615_v45, %v3614_v3  ;;  %v1469_v13 = vpop.f32.mrf.mxu1  ;;  %v1465_v3 = vadd.f32 %v6801_v8, %v1464_v2  ;;  %v7584_v45 = vld [vmem:[#allocation39_spill] sm:$0xff] }
 0x6b3   : > { %v2940_v26 = vmul.f32 %v7584_v45, %v6935_v9  ;;  %v6987_v9 = vperm.slane %v6743_v11, 0 }
 0x6b4   : > { %v3617_v1 = vrot.slane %v3616_v25, 1 }
 0x6b5   : > { %v3004_v50 = vpack.c.bf16 %v2940_v26, %v2940_v26 }
 0x6b6   : > { %v3618_v58 = vadd.f32 %v3617_v1, %v3616_v25  ;;  %v3353_v29 = vpop.f32.mrf.mxu2  ;;  %v7585_v25 = vld [vmem:[#allocation50_spill] sm:$0xff] }
 0x6b7   : > { %v3517_v30 = vmul.f32 %v3353_v29, %v1457_v49  ;;  %v3003_v49 = vpack.c.bf16 %v2939_v53, %v2939_v53  ;;  %v3133_v29 = vunpack.c.l.b16 %v3004_v50 }
 0x6b8   : > { %v3743_v42 = vadd.f32 %v3727_v40, %v3618_v58  ;;  %v1467_v58 = vadd.f32 %v6801_v8, %v1466_v22 }
 0x6b9   : > { %v3620_v0 = vsel %vm573_vm0, %v3517_v30, 0.0  ;;  %v3132_v40 = vunpack.c.l.b16 %v3003_v49 }
 0x6ba   : > { %v3751_v34 = vpack.c.bf16 %v3743_v42, %v3743_v42  ;;  %v3621_v10 = vadd.f32 %v3620_v0, %v3619_v47  ;;  %v1471_v57 = vpop.f32.mrf.mxu1 }
 0x6bb   : > { %4062 = vmatmul.msk.bf16.gmra.mxu2 %vm2266_vm9, %v3171_v14  ;;  %v3173_v0 = vpack.c.b16 %v3133_v29, %v3132_v40 }
 0x6bc   : > { %v3775_v54 = vunpack.c.l.b16 %v3751_v34  ;;  %3984 = vmatmul.msk.bf16.gmra.mxu1 %vm573_vm0, %v7585_v25  ;;  %v1470_v34 = vadd.f32 %v6801_v8, %v1469_v13 }
 0x6be   : > { %v3783_v32 = vrot.slane %v3775_v54, 6  ;;  %v3356_v55 = vpop.f32.mrf.mxu2  ;;  %v7587_v54 = vld [vmem:[#allocation8_spill] sm:$0xff] }
 0x6bf   : > { %v3518_v62 = vmul.f32 %v3356_v55, %v1460_v43  ;;  %v2942_v39 = vmul.f32 %v7587_v54, %v6987_v9 }
 0x6c0   : > { %v6969_v48 = vsel %vm1582_vm3, %v3783_v32, %v6917_v15  ;;  %v3172_v15 = vpack.c.b16 %v3131_v51, %v3130_v46  ;;  %v7588_v32 = vld [vmem:[#allocation53_spill] sm:$0xff] }
 0x6c1   : > { %v3622_v59 = vsel %vm573_vm0, %v3518_v62, 0.0  ;;  %v3006_v62 = vpack.c.bf16 %v2942_v39, %v2942_v39 }
 0x6c2   : > { %v3623_v63 = vadd.f32 %v3622_v59, %v3621_v10  ;;  %v1474_v2 = vpop.f32.mrf.mxu1  ;;  %v7586_v10 = vld [vmem:[#allocation28_spill] sm:$0xff]  ;;  %v1472_v59 = vadd.f32 %v6801_v8, %v1471_v57  ;;  %v7591_v57 = vld [vmem:[#allocation55_spill] sm:$0xff] }
 0x6c3   : > { %v2941_v43 = vmul.f32 %v7586_v10, %v6987_v9  ;;  %v3135_v27 = vunpack.c.l.b16 %v3006_v62  ;;  %v1475_v13 = vadd.f32 %v6801_v8, %v1474_v2 }
 0x6c5   : > { %v3005_v55 = vpack.c.bf16 %v2941_v43, %v2941_v43 }
 0x6c6   : > { %v3358_v38 = vpop.f32.mrf.mxu2 }
 0x6c7   : > { %v3519_v18 = vmul.f32 %v3358_v38, %v1462_v6  ;;  %v3134_v12 = vunpack.c.l.b16 %v3005_v55 }
 0x6c9   : > { %v3624_v17 = vsel %vm573_vm0, %v3519_v18, 0.0  ;;  %v3174_v38 = vpack.c.b16 %v3135_v27, %v3134_v12  ;;  %v7594_v12 = vld [vmem:[#allocation56_spill] sm:$0xff] }
 0x6ca   : > { %v3625_v36 = vadd.f32 %v3624_v17, %v3623_v63  ;;  %v1476_v56 = vpop.f32.mrf.mxu1 }
 0x6cb   : > { %4063 = vmatmul.msk.bf16.gmra.mxu2 %vm2266_vm9, %v3172_v15  ;;  %v7589_v15 = vld [vmem:[#allocation42_spill] sm:$0xff] }
 0x6cc   : > { %3985 = vmatmul.msk.bf16.gmra.mxu1 %vm573_vm0, %v7588_v32  ;;  %v7593_v32 = vld [vmem:[#allocation49_spill] sm:$0xff] }
 0x6ce   : > { %v3361_v61 = vpop.f32.mrf.mxu2 }
 0x6cf   : > { %v3520_v24 = vmul.f32 %v3361_v61, %v1465_v3  ;;  %v7590_v3 = vld [vmem:[#allocation12_spill] sm:$0xff] }
 0x6d0   : > { %v2944_v16 = vmul.f32 %v7590_v3, %v6987_v9 }
 0x6d1   : > { %v3626_v1 = vsel %vm573_vm0, %v3520_v24, 0.0 }
 0x6d2   : > { %v3627_v35 = vadd.f32 %v3626_v1, %v3625_v36  ;;  %v1479_v46 = vpop.f32.mrf.mxu1  ;;  %v2943_v36 = vmul.f32 %v7589_v15, %v6987_v9  ;;  %v3008_v1 = vpack.c.bf16 %v2944_v16, %v2944_v16 }
 0x6d3   : > { %v1480_v39 = vadd.f32 %v6801_v8, %v1479_v46 }
 0x6d4   : > { %v3007_v25 = vpack.c.bf16 %v2943_v36, %v2943_v36  ;;  %v3137_v40 = vunpack.c.l.b16 %v3008_v1 }
 0x6d6   : > { %v3363_v30 = vpop.f32.mrf.mxu2 }
 0x6d7   : > { %v3521_v42 = vmul.f32 %v3363_v30, %v1467_v58  ;;  %v3136_v58 = vunpack.c.l.b16 %v3007_v25  ;;  %v3728_v30 = vrot.slane %v6814_v28, 3  ;;  %v7596_v25 = vld [vmem:[#allocation57_spill] sm:$0xff] }
 0x6d9   : > { %v3628_v47 = vsel %vm573_vm0, %v3521_v42, 0.0  ;;  %v3175_v10 = vpack.c.b16 %v3137_v40, %v3136_v58 }
 0x6da   : > { %v3629_v14 = vadd.f32 %v3628_v47, %v3627_v35  ;;  %v1481_v24 = vpop.f32.mrf.mxu1  ;;  %v1477_v35 = vadd.f32 %v6801_v8, %v1476_v56 }
 0x6db   : > { %4064 = vmatmul.msk.bf16.gmra.mxu2 %vm2266_vm9, %v3173_v0 }
 0x6dc   : > { %3986 = vmatmul.msk.bf16.gmra.mxu1 %vm573_vm0, %v7591_v57 }
 0x6de   : > { %v3366_v21 = vpop.f32.mrf.mxu2 }
 0x6df   : > { %v3522_v60 = vmul.f32 %v3366_v21, %v1470_v34 }
 0x6e1   : > { %v3630_v11 = vsel %vm573_vm0, %v3522_v60, 0.0  ;;  %v7592_v60 = vld [vmem:[#allocation48_spill] sm:$0xff] }
 0x6e2   : > { %v3631_v22 = vadd.f32 %v3630_v11, %v3629_v14  ;;  %v1484_v0 = vpop.f32.mrf.mxu1  ;;  %v2945_v56 = vmul.f32 %v7592_v60, %v6987_v9  ;;  %v2946_v11 = vmul.f32 %v7593_v32, %v6987_v9 }
 0x6e3   : > { %v1485_v16 = vadd.f32 %v6801_v8, %v1484_v0 }
 0x6e6   : > { %v3368_v63 = vpop.f32.mrf.mxu2 }
 0x6e7   : > { %v3523_v6 = vmul.f32 %v3368_v63, %v1472_v59  ;;  %v3009_v63 = vpack.c.bf16 %v2945_v56, %v2945_v56 }
 0x6e9   : > { %v3632_v51 = vsel %vm573_vm0, %v3523_v6, 0.0  ;;  %v3010_v6 = vpack.c.bf16 %v2946_v11, %v2946_v11 }
 0x6ea   : > { %v3633_v18 = vadd.f32 %v3632_v51, %v3631_v22  ;;  %v1486_v59 = vpop.f32.mrf.mxu1  ;;  %v1482_v51 = vadd.f32 %v6801_v8, %v1481_v24 }
 0x6eb   : > { %4065 = vmatmul.msk.bf16.gmra.mxu2 %vm2266_vm9, %v3174_v38  ;;  %v3138_v38 = vunpack.c.l.b16 %v3009_v63  ;;  %v1487_v58 = vadd.f32 %v6801_v8, %v1486_v59 }
 0x6ec   : > { %v3634_v17 = vrot.slane %v3633_v18, 4  ;;  %3987 = vmatmul.msk.bf16.gmra.mxu1 %vm573_vm0, %v7594_v12 }
 0x6ee   : > { %v3635_v53 = vadd.f32 %v3634_v17, %v3633_v18  ;;  %v3371_v45 = vpop.f32.mrf.mxu2  ;;  %v3139_v18 = vunpack.c.l.b16 %v3010_v6  ;;  %v2951_v6 = vmul.f32 %v6685_v7, %v6755_v31 }
 0x6ef   : > { %v3524_v26 = vmul.f32 %v3371_v45, %v1475_v13 }
 0x6f0   : > { %v3636_v61 = vrot.slane %v3635_v53, 2 }
 0x6f1   : > { %v3640_v14 = vsel %vm573_vm0, %v3524_v26, 0.0  ;;  %v2948_v26 = vmul.f32 %v6663_v23, %v6987_v9 }
 0x6f2   : > { %v3637_v49 = vadd.f32 %v3636_v61, %v3635_v53  ;;  %v1489_v15 = vpop.f32.mrf.mxu1  ;;  %v7595_v53 = vld [vmem:[#allocation61_spill] sm:$0xff] }
 0x6f3   : > { %v2947_v45 = vmul.f32 %v7595_v53, %v6987_v9  ;;  %v1490_v0 = vadd.f32 %v6801_v8, %v1489_v15  ;;  %v3015_v15 = vpack.c.bf16 %v2951_v6, %v2951_v6 }
 0x6f4   : > { %v3638_v50 = vrot.slane %v3637_v49, 1 }
 0x6f5   : > { %v3144_v53 = vunpack.c.l.b16 %v3015_v15 }
 0x6f6   : > { %v3639_v29 = vadd.f32 %v3638_v50, %v3637_v49  ;;  %v3373_v42 = vpop.f32.mrf.mxu2  ;;  %v3011_v49 = vpack.c.bf16 %v2947_v45, %v2947_v45  ;;  %v3012_v50 = vpack.c.bf16 %v2948_v26, %v2948_v26 }
 0x6f7   : > { %v3525_v2 = vmul.f32 %v3373_v42, %v1477_v35 }
 0x6f8   : > { %v3744_v47 = vadd.f32 %v3728_v30, %v3639_v29  ;;  %v3140_v40 = vunpack.c.l.b16 %v3011_v49  ;;  %v3141_v29 = vunpack.c.l.b16 %v3012_v50 }
 0x6f9   : > { %v3641_v34 = vsel %vm573_vm0, %v3525_v2, 0.0 }
 0x6fa   : > { %v3752_v43 = vpack.c.bf16 %v3744_v47, %v3744_v47  ;;  %v3642_v54 = vadd.f32 %v3641_v34, %v3640_v14  ;;  %v1491_v57 = vpop.f32.mrf.mxu1  ;;  %v3177_v9 = vpack.c.b16 %v3141_v29, %v3140_v40  ;;  %v2949_v14 = vmul.f32 %v6679_v52, %v6755_v31 }
 0x6fb   : > { %4066 = vmatmul.msk.bf16.gmra.mxu2 %vm2266_vm9, %v3175_v10  ;;  %v2950_v34 = vmul.f32 %v6681_v41, %v6755_v31  ;;  %v1492_v32 = vadd.f32 %v6801_v8, %v1491_v57  ;;  %v2953_v29 = vmul.f32 %v6691_v44, %v6755_v31 }
 0x6fc   : > { %v3776_v21 = vunpack.c.l.b16 %v3752_v43  ;;  %3988 = vmatmul.msk.bf16.gmra.mxu1 %vm573_vm0, %v7596_v25 }
 0x6fd   : > { %v3014_v60 = vpack.c.bf16 %v2950_v34, %v2950_v34 }
 0x6fe   : > { %v3785_v55 = vrot.slane %v3776_v21, 5  ;;  %v3376_v62 = vpop.f32.mrf.mxu2  ;;  %v3013_v21 = vpack.c.bf16 %v2949_v14, %v2949_v14  ;;  %v3017_v14 = vpack.c.bf16 %v2953_v29, %v2953_v29 }
 0x6ff   : > { %v3526_v22 = vmul.f32 %v3376_v62, %v1480_v39 }
 0x700   : > { %v7024_v19 = vsel %vm1585_vm4, %v3785_v55, %v6969_v48  ;;  %v3176_v48 = vpack.c.b16 %v3139_v18, %v3138_v38  ;;  %v3142_v11 = vunpack.c.l.b16 %v3013_v21  ;;  %v3143_v55 = vunpack.c.l.b16 %v3014_v60 }
 0x701   : > { %v3643_v27 = vsel %vm573_vm0, %v3526_v22, 0.0 }
 0x702   : > { %v3644_v46 = vadd.f32 %v3643_v27, %v3642_v54  ;;  %v1494_v2 = vpop.f32.mrf.mxu1  ;;  %v3178_v12 = vpack.c.b16 %v3143_v55, %v3142_v11 }
 0x703   : > { %v1495_v41 = vadd.f32 %v6801_v8, %v1494_v2 }
 0x706   : > { %v3378_v13 = vpop.f32.mrf.mxu2 }
 0x707   : > { %v3527_v17 = vmul.f32 %v3378_v13, %v1482_v51 }
 0x709   : > { %v3645_v36 = vsel %vm573_vm0, %v3527_v17, 0.0 }
 0x70a   : > { %v3646_v3 = vadd.f32 %v3645_v36, %v3644_v46  ;;  %v1496_v54 = vpop.f32.mrf.mxu1  ;;  %v2952_v46 = vmul.f32 %v6689_v33, %v6755_v31 }
 0x70b   : > { %4067 = vmatmul.msk.bf16.gmra.mxu2 %vm2266_vm9, %v3176_v48 }
 0x70c   : > { %v3016_v36 = vpack.c.bf16 %v2952_v46, %v2952_v46 }
 0x70e   : > { %v3381_v61 = vpop.f32.mrf.mxu2  ;;  %v3145_v45 = vunpack.c.l.b16 %v3016_v36 }
 0x70f   : > { %v3528_v24 = vmul.f32 %v3381_v61, %v1485_v16  ;;  %v1497_v16 = vadd.f32 %v6801_v8, %v1496_v54  ;;  %v3729_v61 = vrot.slane %v6814_v28, 4  ;;  %v3146_v54 = vunpack.c.l.b16 %v3017_v14 }
 0x710   : > { %v3179_v49 = vpack.c.b16 %v3145_v45, %v3144_v53 }
 0x711   : > { %v3647_v1 = vsel %vm573_vm0, %v3528_v24, 0.0 }
 0x712   : > { %v3648_v35 = vadd.f32 %v3647_v1, %v3646_v3  ;;  %v1499_v59 = vpop.f32.mrf.mxu1 }
 0x716   : > { %v3383_v30 = vpop.f32.mrf.mxu2 }
 0x717   : > { %v3529_v42 = vmul.f32 %v3383_v30, %v1487_v58  ;;  %v1500_v58 = vadd.f32 %v6801_v8, %v1499_v59  ;;  %v2954_v30 = vmul.f32 %v6695_v20, %v6755_v31 }
 0x719   : > { %v3649_v23 = vsel %vm573_vm0, %v3529_v42, 0.0  ;;  %v3018_v34 = vpack.c.bf16 %v2954_v30, %v2954_v30 }
 0x71a   : > { %v3650_v47 = vadd.f32 %v3649_v23, %v3648_v35  ;;  %v1501_v17 = vpop.f32.mrf.mxu1 }
 0x71b   : > { %4068 = vmatmul.msk.bf16.gmra.mxu2 %vm2266_vm9, %v3177_v9  ;;  %v3147_v44 = vunpack.c.l.b16 %v3018_v34 }
 0x71d   : > { %v3180_v60 = vpack.c.b16 %v3147_v44, %v3146_v54 }
 0x71e   : > { %v3386_v10 = vpop.f32.mrf.mxu2 }
 0x71f   : > { %v3530_v43 = vmul.f32 %v3386_v10, %v1490_v0 }
 0x721   : > { %v3651_v39 = vsel %vm573_vm0, %v3530_v43, 0.0  ;;  %v1502_v43 = vadd.f32 %v6801_v8, %v1501_v17 }
 0x722   : > { %v3652_v56 = vadd.f32 %v3651_v39, %v3650_v47  ;;  %v1504_v33 = vpop.f32.mrf.mxu1 }
 0x726   : > { %v3388_v62 = vpop.f32.mrf.mxu2 }
 0x727   : > { %v3531_v22 = vmul.f32 %v3388_v62, %v1492_v32 }
 0x729   : > { %v3653_v52 = vsel %vm573_vm0, %v3531_v22, 0.0 }
 0x72a   : > { %v3654_v27 = vadd.f32 %v3653_v52, %v3652_v56  ;;  %v1506_v47 = vpop.f32.mrf.mxu1 }
 0x72b   : > { %4069 = vmatmul.msk.bf16.gmra.mxu2 %vm2266_vm9, %v3178_v12 }
 0x72c   : > { %v3655_v63 = vrot.slane %v3654_v27, 4 }
 0x72e   : > { %v3656_v51 = vadd.f32 %v3655_v63, %v3654_v27  ;;  %v3391_v38 = vpop.f32.mrf.mxu2 }
 0x72f   : > { %v3532_v18 = vmul.f32 %v3391_v38, %v1495_v41 }
 0x730   : > { %v3657_v13 = vrot.slane %v3656_v51, 2 }
 0x731   : > { %v3661_v25 = vsel %vm573_vm0, %v3532_v18, 0.0 }
 0x732   : > { %v3658_v48 = vadd.f32 %v3657_v13, %v3656_v51  ;;  %v1509_v20 = vpop.f32.mrf.mxu1 }
 0x734   : > { %v3659_v3 = vrot.slane %v3658_v48, 1 }
 0x736   : > { %v3660_v26 = vadd.f32 %v3659_v3, %v3658_v48  ;;  %v3393_v7 = vpop.f32.mrf.mxu2 }
 0x737   : > { %v3533_v24 = vmul.f32 %v3393_v7, %v1497_v16 }
 0x738   : > { %v3745_v57 = vadd.f32 %v3729_v61, %v3660_v26 }
 0x739   : > { %v3662_v1 = vsel %vm573_vm0, %v3533_v24, 0.0 }
 0x73a   : > { %v3753_v50 = vpack.c.bf16 %v3745_v57, %v3745_v57  ;;  %v3663_v35 = vadd.f32 %v3662_v1, %v3661_v25  ;;  %v1511_v55 = vpop.f32.mrf.mxu1  ;;  %v3730_v25 = vrot.slane %v6814_v28, 5 }
 0x73b   : > { %4070 = vmatmul.msk.bf16.gmra.mxu2 %vm2266_vm9, %v3179_v49 }
 0x73c   : > { %v3777_v40 = vunpack.c.l.b16 %v3753_v50 }
 0x73e   : > { %v3787_v42 = vrot.slane %v3777_v40, 4  ;;  %v3396_v2 = vpop.f32.mrf.mxu2 }
 0x73f   : > { %v3534_v23 = vmul.f32 %v3396_v2, %v1500_v58 }
 0x740   : > { %v7069_v9 = vsel %vm1588_vm5, %v3787_v42, %v7024_v19  ;;  %v7077_v19 = vld [vmem:[%s7177_s10] ss:$0 sm:$0xff] }
 0x741   : > { %v3664_v0 = vsel %vm573_vm0, %v3534_v23, 0.0  ;;  %v1505_v32 = vadd.f32 %v7077_v19, %v1504_v33  ;;  %v1507_v59 = vadd.f32 %v7077_v19, %v1506_v47  ;;  %v1510_v6 = vadd.f32 %v7077_v19, %v1509_v20 }
 0x742   : > { %v3665_v10 = vadd.f32 %v3664_v0, %v3663_v35  ;;  %v1514_v27 = vpop.f32.mrf.mxu1  ;;  %v1512_v17 = vadd.f32 %v7077_v19, %v1511_v55 }
 0x743   : > { %v1515_v53 = vadd.f32 %v7077_v19, %v1514_v27 }
 0x746   : > { %v3398_v39 = vpop.f32.mrf.mxu2 }
 0x747   : > { %v3535_v21 = vmul.f32 %v3398_v39, %v1502_v43 }
 0x749   : > { %v3666_v31 = vsel %vm573_vm0, %v3535_v21, 0.0 }
 0x74a   : > { %v3667_v56 = vadd.f32 %v3666_v31, %v3665_v10  ;;  %v1516_v38 = vpop.f32.mrf.mxu1 }
 0x74b   : > { %4071 = vmatmul.msk.bf16.gmra.mxu2 %vm2266_vm9, %v3180_v60  ;;  %v1517_v57 = vadd.f32 %v7077_v19, %v1516_v38 }
 0x74e   : > { %v3401_v11 = vpop.f32.mrf.mxu2 }
 0x74f   : > { %v3536_v8 = vmul.f32 %v3401_v11, %v1505_v32 }
 0x751   : > { %v3668_v62 = vsel %vm573_vm0, %v3536_v8, 0.0 }
 0x752   : > { %v3669_v22 = vadd.f32 %v3668_v62, %v3667_v56  ;;  %v1519_v48 = vpop.f32.mrf.mxu1 }
 0x753   : > { %v1520_v30 = vadd.f32 %v7077_v19, %v1519_v48 }
 0x756   : > { %v3403_v52 = vpop.f32.mrf.mxu2 }
 0x757   : > { %v3537_v12 = vmul.f32 %v3403_v52, %v1507_v59 }
 0x759   : > { %v3670_v41 = vsel %vm573_vm0, %v3537_v12, 0.0 }
 0x75a   : > { %v3671_v63 = vadd.f32 %v3670_v41, %v3669_v22  ;;  %v1521_v61 = vpop.f32.mrf.mxu1 }
 0x75b   : > { %4072 = vmatmul.msk.bf16.gmra.mxu2 %vm2266_vm9, %v3181_v37  ;;  %v1522_v14 = vadd.f32 %v7077_v19, %v1521_v61 }
 0x75e   : > { %v3406_v46 = vpop.f32.mrf.mxu2 }
 0x75f   : > { %v3538_v51 = vmul.f32 %v3406_v46, %v1510_v6 }
 0x761   : > { %v3672_v18 = vsel %vm573_vm0, %v3538_v51, 0.0 }
 0x762   : > { %v3673_v13 = vadd.f32 %v3672_v18, %v3671_v63  ;;  %v1524_v35 = vpop.f32.mrf.mxu1 }
 0x763   : > { %v1525_v20 = vadd.f32 %v7077_v19, %v1524_v35 }
 0x766   : > { %v3408_v15 = vpop.f32.mrf.mxu2 }
 0x767   : > { %v3539_v36 = vmul.f32 %v3408_v15, %v1512_v17 }
 0x769   : > { %v3674_v3 = vsel %vm573_vm0, %v3539_v36, 0.0 }
 0x76a   : > { %v3675_v16 = vadd.f32 %v3674_v3, %v3673_v13  ;;  %v1526_v23 = vpop.f32.mrf.mxu1 }
 0x76b   : > { %v1527_v62 = vadd.f32 %v7077_v19, %v1526_v23 }
 0x76c   : > { %v3676_v45 = vrot.slane %v3675_v16, 4 }
 0x76e   : > { %v3677_v5 = vadd.f32 %v3676_v45, %v3675_v16  ;;  %v3411_v4 = vpop.f32.mrf.mxu2 }
 0x76f   : > { %v3540_v37 = vmul.f32 %v3411_v4, %v1515_v53 }
 0x770   : > { %v3678_v26 = vrot.slane %v3677_v5, 2 }
 0x771   : > { %v3682_v58 = vsel %vm573_vm0, %v3540_v37, 0.0  ;;  %v3731_v37 = vrot.slane %v6814_v28, 6 }
 0x772   : > { %v3679_v7 = vadd.f32 %v3678_v26, %v3677_v5  ;;  %v1529_v54 = vpop.f32.mrf.mxu1 }
 0x773   : > { %v1530_v27 = vadd.f32 %v7077_v19, %v1529_v54 }
 0x774   : > { %v3680_v24 = vrot.slane %v3679_v7, 1 }
 0x776   : > { %v3681_v33 = vadd.f32 %v3680_v24, %v3679_v7  ;;  %v3413_v1 = vpop.f32.mrf.mxu2 }
 0x777   : > { %v3541_v49 = vmul.f32 %v3413_v1, %v1517_v57 }
 0x778   : > { %v3746_v50 = vadd.f32 %v3730_v25, %v3681_v33 }
 0x779   : > { %v3683_v40 = vsel %vm573_vm0, %v3541_v49, 0.0 }
 0x77a   : > { %v3684_v29 = vadd.f32 %v3683_v40, %v3682_v58  ;;  %v3754_v10 = vpack.c.bf16 %v3746_v50, %v3746_v50  ;;  %v1531_v8 = vpop.f32.mrf.mxu1 }
 0x77b   : > { %v1532_v38 = vadd.f32 %v7077_v19, %v1531_v8 }
 0x77c   : > { %v3778_v21 = vunpack.c.l.b16 %v3754_v10 }
 0x77e   : > { %v3416_v42 = vpop.f32.mrf.mxu2  ;;  %v3789_v60 = vrot.slane %v3778_v21, 3 }
 0x77f   : > { %v3542_v2 = vmul.f32 %v3416_v42, %v1520_v30 }
 0x780   : > { %v3790_v55 = vsel %vm1591_vm6, %v3789_v60, %v7069_v9 }
 0x781   : > { %v3685_v47 = vsel %vm573_vm0, %v3542_v2, 0.0 }
 0x782   : > { %v3686_v0 = vadd.f32 %v3685_v47, %v3684_v29  ;;  %v1534_v41 = vpop.f32.mrf.mxu1 }
 0x783   : > { %v1535_v40 = vadd.f32 %v7077_v19, %v1534_v41 }
 0x786   : > { %v3418_v34 = vpop.f32.mrf.mxu2 }
 0x787   : > { %v3543_v43 = vmul.f32 %v3418_v34, %v1522_v14 }
 0x789   : > { %v3687_v44 = vsel %vm573_vm0, %v3543_v43, 0.0 }
 0x78a   : > { %v3688_v39 = vadd.f32 %v3687_v44, %v3686_v0  ;;  %v1536_v13 = vpop.f32.mrf.mxu1 }
 0x78b   : > { %v1537_v29 = vadd.f32 %v7077_v19, %v1536_v13 }
 0x78e   : > { %v3421_v31 = vpop.f32.mrf.mxu2 }
 0x78f   : > { %v3544_v56 = vmul.f32 %v3421_v31, %v1525_v20 }
 0x791   : > { %v3689_v32 = vsel %vm573_vm0, %v3544_v56, 0.0 }
 0x792   : > { %v3690_v11 = vadd.f32 %v3689_v32, %v3688_v39  ;;  %v1539_v53 = vpop.f32.mrf.mxu1 }
 0x793   : > { %v1540_v30 = vadd.f32 %v7077_v19, %v1539_v53 }
 0x796   : > { %v3423_v22 = vpop.f32.mrf.mxu2 }
 0x797   : > { %v3545_v59 = vmul.f32 %v3423_v22, %v1527_v62 }
 0x799   : > { %v3691_v52 = vsel %vm573_vm0, %v3545_v59, 0.0 }
 0x79a   : > { %v3692_v12 = vadd.f32 %v3691_v52, %v3690_v11  ;;  %v1541_v7 = vpop.f32.mrf.mxu1 }
 0x79b   : > { %v1542_v0 = vadd.f32 %v7077_v19, %v1541_v7 }
 0x79e   : > { %v3426_v63 = vpop.f32.mrf.mxu2 }
 0x79f   : > { %v3546_v6 = vmul.f32 %v3426_v63, %v1530_v27 }
 0x7a1   : > { %v3693_v46 = vsel %vm573_vm0, %v3546_v6, 0.0 }
 0x7a2   : > { %v3694_v51 = vadd.f32 %v3693_v46, %v3692_v12  ;;  %v1544_v57 = vpop.f32.mrf.mxu1 }
 0x7a3   : > { %v1545_v34 = vadd.f32 %v7077_v19, %v1544_v57 }
 0x7a6   : > { %v3428_v18 = vpop.f32.mrf.mxu2 }
 0x7a7   : > { %v3547_v9 = vmul.f32 %v3428_v18, %v1532_v38 }
 0x7a9   : > { %v3695_v17 = vsel %vm573_vm0, %v3547_v9, 0.0 }
 0x7aa   : > { %v3696_v15 = vadd.f32 %v3695_v17, %v3694_v51  ;;  %v1546_v49 = vpop.f32.mrf.mxu1 }
 0x7ab   : > { %v1547_v39 = vadd.f32 %v7077_v19, %v1546_v49 }
 0x7ac   : > { %v3697_v36 = vrot.slane %v3696_v15, 4 }
 0x7ae   : > { %v3698_v48 = vadd.f32 %v3697_v36, %v3696_v15  ;;  %v3431_v3 = vpop.f32.mrf.mxu2 }
 0x7af   : > { %v3548_v23 = vmul.f32 %v3431_v3, %v1535_v40 }
 0x7b0   : > { %v3699_v16 = vrot.slane %v3698_v48, 2 }
 0x7b1   : > { %v3703_v54 = vsel %vm573_vm0, %v3548_v23, 0.0 }
 0x7b2   : > { %v3700_v45 = vadd.f32 %v3699_v16, %v3698_v48  ;;  %v1549_v47 = vpop.f32.mrf.mxu1  ;;  %v3732_v48 = vrot.slane %v6814_v28, 7  ;;  %v4319_v28 = vld [vmem:[%s7179_s12] ss:$0 sm:$0xff] }
 0x7b3   : > { %v1550_v20 = vadd.f32 %v7077_v19, %v1549_v47 }
 0x7b4   : > { %v3701_v5 = vrot.slane %v3700_v45, 1 }
 0x7b6   : > { %v3702_v4 = vadd.f32 %v3701_v5, %v3700_v45  ;;  %v3433_v26 = vpop.f32.mrf.mxu2 }
 0x7b7   : > { %v3549_v2 = vmul.f32 %v3433_v26, %v1537_v29 }
 0x7b8   : > { %v3747_v61 = vadd.f32 %v3731_v37, %v3702_v4 }
 0x7b9   : > { %v3704_v10 = vsel %vm573_vm0, %v3549_v2, 0.0 }
 0x7ba   : > { %v3755_v25 = vpack.c.bf16 %v3747_v61, %v3747_v61  ;;  %v3705_v31 = vadd.f32 %v3704_v10, %v3703_v54  ;;  %v1551_v22 = vpop.f32.mrf.mxu1 }
 0x7bb   : > { %v1552_v12 = vadd.f32 %v7077_v19, %v1551_v22 }
 0x7bc   : > { %v3779_v1 = vunpack.c.l.b16 %v3755_v25 }
 0x7be   : > { %v3436_v24 = vpop.f32.mrf.mxu2  ;;  %v3791_v35 = vrot.slane %v3779_v1, 2 }
 0x7bf   : > { %v3550_v14 = vmul.f32 %v3436_v24, %v1540_v30 }
 0x7c0   : > { %v3792_v58 = vsel %vm1594_vm7, %v3791_v35, %v3790_v55 }
 0x7c1   : > { %v3706_v44 = vsel %vm573_vm0, %v3550_v14, 0.0 }
 0x7c2   : > { %v3707_v11 = vadd.f32 %v3706_v44, %v3705_v31 }
 0x7c6   : > { %v3438_v33 = vpop.f32.mrf.mxu2 }
 0x7c7   : > { %v3551_v43 = vmul.f32 %v3438_v33, %v1542_v0 }
 0x7c9   : > { %v3708_v56 = vsel %vm573_vm0, %v3551_v43, 0.0 }
 0x7ca   : > { %v3709_v62 = vadd.f32 %v3708_v56, %v3707_v11 }
 0x7ce   : > { %v3441_v50 = vpop.f32.mrf.mxu2 }
 0x7cf   : > { %v3552_v21 = vmul.f32 %v3441_v50, %v1545_v34 }
 0x7d1   : > { %v3710_v8 = vsel %vm573_vm0, %v3552_v21, 0.0 }
 0x7d2   : > { %v3711_v52 = vadd.f32 %v3710_v8, %v3709_v62 }
 0x7d6   : > { %v3443_v42 = vpop.f32.mrf.mxu2 }
 0x7d7   : > { %v3553_v32 = vmul.f32 %v3443_v42, %v1547_v39 }
 0x7d9   : > { %v3712_v59 = vsel %vm573_vm0, %v3553_v32, 0.0 }
 0x7da   : > { %v3713_v41 = vadd.f32 %v3712_v59, %v3711_v52 }
 0x7de   : > { %v3446_v60 = vpop.f32.mrf.mxu2 }
 0x7df   : > { %v3554_v55 = vmul.f32 %v3446_v60, %v1550_v20 }
 0x7e1   : > { %v3714_v27 = vsel %vm573_vm0, %v3554_v55, 0.0 }
 0x7e2   : > { %v3715_v46 = vadd.f32 %v3714_v27, %v3713_v41 }
 0x7e6   : > { %v3448_v63 = vpop.f32.mrf.mxu2 }
 0x7e7   : > { %v3555_v6 = vmul.f32 %v3448_v63, %v1552_v12 }
 0x7e9   : > { %v3716_v51 = vsel %vm573_vm0, %v3555_v6, 0.0 }
 0x7ea   : > { %v3717_v38 = vadd.f32 %v3716_v51, %v3715_v46 }
 0x7ec   : > { %v3718_v18 = vrot.slane %v3717_v38, 4 }
 0x7ee   : > { %v3719_v13 = vadd.f32 %v3718_v18, %v3717_v38 }
 0x7f0   : > { %v3720_v9 = vrot.slane %v3719_v13, 2 }
 0x7f2   : > { %v3721_v17 = vadd.f32 %v3720_v9, %v3719_v13 }
 0x7f4   : > { %v3722_v15 = vrot.slane %v3721_v17, 1 }
 0x7f6   : > { %v3723_v36 = vadd.f32 %v3722_v15, %v3721_v17 }
 0x7f8   : > { %v3748_v19 = vadd.f32 %v3732_v48, %v3723_v36 }
 0x7fa   : > { %v3756_v3 = vpack.c.bf16 %v3748_v19, %v3748_v19 }
 0x7fc   : > { %v3780_v16 = vunpack.c.l.b16 %v3756_v3 }
 0x7fe   : > { %v3793_v53 = vrot.slane %v3780_v16, 1 }
 0x800   : > { %v3794_v45 = vsel %vm1597_vm8, %v3793_v53, %v3792_v58 }
 0x801   : > { %v3795_v5 = vpack.c.b16 %v3794_v45, %v3794_v45 }
 0x803   : > { %4082 = vmatmul.msk.bf16.vlgmr.msrb.gmra.mxu1 %vm573_vm0, %v3795_v5 }
 0x880   : > { %v3820_v4 = vpop.f32.mrf.mxu1 }
 0x881   : > { %v3821_v37 = vadd.f32 %v4319_v28, %v3820_v4 }
 0x883   : > { %3825 = vst.msk [vmem:[%s436_s16] sm:$0xff] %vm3824_vm11, %v3821_v37 }
 0x884   : > { %4496 = shalt.err (!%p4493_p3)
}
 0x885   : > { %4276 = dma.vmem_to_hbm [thread:$0]  (%p4639_p5), %s3840_s29, 128, %s3842_s20, %s3827_s21  }
 0x888   : > { %v3822_v26 = vpop.f32.mrf.mxu1 }
 0x889 PF: > { %p4282_p4 = scmp.ge.s32.totalorder %s4531_s28, 2  ;;  %s3853_s14 = sand.u32 1, %s4519_s25  }
 0x88a   : > { %s3854_s30 = scalar_lea.sflag [#allocation3], %s3853_s14 }
 0x88b   : > { %p4279_p7 = pnand %p4282_p4, %p4643_p6 }
 0x88d   : > { %p4280_p8 = pneg %p4279_p7 }
 0x88f   : > { %4514 = dma.done.wait (%p4280_p8), %s3854_s30, 128  }
 0x890   : > { %4516 = vsyncadd (%p4280_p8), %s3854_s30, 4294967168  ;;  %s7597_s28 = sld [smem:[#allocation6_spill]]  ;;  %s7600_s25 = smov %s4523_s26 }
 0x891   : > { %s7598_s0 = sld [smem:[#allocation5_spill]] }
 0x892   : > { %s7599_s27 = sld [smem:[#allocation7_spill]] }
 0x896   : > { %p23_p9 = scmp.ge.s32.totalorder %s7597_s28, 4  }
 0x897   : > { %s7601_s26 = smov %s7598_s0 }
 0x898   :  { %25 = sbr.rel (!%p23_p9) target bundleno = 6 (0x6), region = 107 }
 0x89d   :  { %3860 = vsyncpa [#allocation3], 1 }
 0x89e   :  { %3862 = vsyncpa [#allocation3 + $0x1], 1 }

</bundles_post_ra>
